<compile_context>
chip_gen: v6e
topology: v6e:2x2x1
jax: 0.10.0
libtpu: 0.0.40
codegen_flags: <defaults>
</compile_context>

<pallas_src>
import jax
import jax.numpy as jnp
from jax import lax
from jax.experimental import pallas as pl
from jax.experimental.pallas import tpu as pltpu

# ---- model hyper-params (small, synthetic stand-in for the split client) ----
D = 32         # hidden size
H = 4          # attention heads
DH = D // H    # head dim
S = 8          # sequence length
B = 2          # batch
BS = B * S     # flattened rows
R = H * BS     # head-replicated key/value rows for batched attention
VOCAB = 128
MAX_POS = 64
N_LAYER = 6    # split_layer = 6 -> 6 client-side transformer blocks
EPS = 1e-5


def _layernorm_no_affine(h):
    # gamma/beta are folded into the following matmul's weights/bias.
    mu = jnp.mean(h, axis=-1, keepdims=True)
    var = jnp.mean((h - mu) ** 2, axis=-1, keepdims=True)
    return (h - mu) * lax.rsqrt(var + EPS)


def _gelu_new(x):
    # GPT-2 "gelu_new" (tanh approximation)
    c = 0.7978845608028654  # sqrt(2/pi)
    return 0.5 * x * (1.0 + jnp.tanh(c * (x + 0.044715 * x * x * x)))


def client_kernel(x_ref,
                  wqkv_ref, bqkv_ref, wpr_ref, bpr_ref,
                  wfc_ref, bfc_ref, wp2_ref, bp2_ref,
                  hmask_ref, bias_ref, jblk_ref,
                  o_ref):
    x = x_ref[...]                 # (BS, D)   f32 activations
    head_mask = hmask_ref[...]     # (R, D)    f32, row-block h keeps head h cols
    attn_bias = bias_ref[...]      # (BS, R)   f32, 0 / -1e30 causal+batch mask
    j_blk = jblk_ref[...]          # (R, R)    f32, block-diagonal ones per head

    for l in range(N_LAYER):       # static unroll, 6 layers
        # ---------------- causal self-attention ----------------
        # LN1 gamma/beta and 1/sqrt(DH) are pre-folded into w_qkv/b_qkv.
        h1 = _layernorm_no_affine(x)
        qkv = jnp.dot(h1.astype(jnp.bfloat16), wqkv_ref[l],
                      preferred_element_type=jnp.float32) + bqkv_ref[l]   # (BS, 3D)
        q = qkv[:, :D]
        k = qkv[:, D:2 * D]
        v = qkv[:, 2 * D:]

        # Block-diagonal ("head-replicated") K / V: one matmul per step for
        # all heads and both batch rows, lane-dense (16, 64) scores.
        kb = jnp.tile(k, (H, 1)) * head_mask                  # (R, D)
        vb = jnp.tile(v, (H, 1)) * head_mask                  # (R, D)

        scores = jnp.einsum('qd,kd->qk', q, kb,
                            preferred_element_type=jnp.float32)           # (BS, R)
        scores = scores + attn_bias
        # Per-row GLOBAL max is exact for per-head softmax (constant cancels).
        scores = scores - jnp.max(scores, axis=-1, keepdims=True)
        p = jnp.exp(scores)
        # Per-head sums via a tiny MXU matmul; comes back already broadcast
        # into each head's 16-lane segment.
        denom = jnp.dot(p, j_blk, preferred_element_type=jnp.float32)     # (BS, R)
        p = p * pl.reciprocal(denom, approx=True)
        ctx = jnp.dot(p, vb, preferred_element_type=jnp.float32)          # (BS, D)

        attn_out = jnp.dot(ctx.astype(jnp.bfloat16), wpr_ref[l],
                           preferred_element_type=jnp.float32) + bpr_ref[l]
        x = x + attn_out

        # ------------------------- MLP --------------------------
        # LN2 gamma/beta pre-folded into w_fc/b_fc.
        h2 = _layernorm_no_affine(x)
        f = jnp.dot(h2.astype(jnp.bfloat16), wfc_ref[l],
                    preferred_element_type=jnp.float32) + bfc_ref[l]       # (BS, 4D)
        f = _gelu_new(f)
        m = jnp.dot(f.astype(jnp.bfloat16), wp2_ref[l],
                    preferred_element_type=jnp.float32) + bp2_ref[l]
        x = x + m

    # Single final store (only one (16,32) write in the whole kernel).
    o_ref[...] = x.astype(o_ref.dtype)


_N_KERNEL_INPUTS = 12  # x + 8 stacked weight/bias tensors + 3 precomputed masks


def _fused_client_call(x_flat, packed):
    in_specs = [pl.BlockSpec(memory_space=pltpu.MemorySpace.VMEM)] * _N_KERNEL_INPUTS
    return pl.pallas_call(
        client_kernel,
        out_shape=jax.ShapeDtypeStruct((BS, D), jnp.float32),
        in_specs=in_specs,
        out_specs=pl.BlockSpec(memory_space=pltpu.MemorySpace.VMEM),
    )(x_flat,
      packed['w_qkv'], packed['b_qkv'],
      packed['w_proj'], packed['b_proj'],
      packed['w_fc'], packed['b_fc'],
      packed['w_proj2'], packed['b_proj2'],
      packed['head_mask'], packed['attn_bias'], packed['j_blk'])


@jax.jit
def client_forward(input_ids, wte, wpe, packed):
    # Embedding lookups (pure gather) kept as jitted JAX glue; matches
    # wte(input_ids) + wpe(arange(seq_len)) broadcast over batch.
    pos = jnp.arange(input_ids.shape[1])
    x = wte[input_ids] + wpe[pos][None, :, :]        # (B, S, D)
    x_flat = x.reshape(BS, D)
    out = _fused_client_call(x_flat, packed)
    return out.reshape(B, S, D)


# ----------------------- host-side parameter packing -----------------------

def _build_attention_constants():
    # head_mask (R, D): row-block h keeps only head h's hidden columns.
    hm_row = jnp.arange(R)[:, None] // BS
    hm_col = jnp.arange(D)[None, :] // DH
    head_mask = (hm_row == hm_col).astype(jnp.float32)

    # attn_bias (BS, R): rows are (batch_q, q-pos); cols are (head, batch_k, k-pos).
    # Valid iff same batch AND causal.
    r = jnp.arange(BS)
    c = jnp.arange(R)
    bq = (r // S)[:, None]
    qp = (r % S)[:, None]
    bk = ((c % BS) // S)[None, :]
    kp = (c % S)[None, :]
    attn_bias = jnp.where((bq == bk) & (kp <= qp), 0.0, -1e30).astype(jnp.float32)

    # j_blk (R, R): block-diagonal all-ones, one BSxBS block per head.
    hr = jnp.arange(R) // BS
    j_blk = (hr[:, None] == hr[None, :]).astype(jnp.float32)
    return head_mask, attn_bias, j_blk


def init_params(key):
    keys = jax.random.split(key, 2 + N_LAYER)
    wte = jax.random.normal(keys[0], (VOCAB, D), jnp.float32) * 0.02
    wpe = jax.random.normal(keys[1], (MAX_POS, D), jnp.float32) * 0.02
    layers = []
    for i in range(N_LAYER):
        lk = jax.random.split(keys[2 + i], 4)
        layers.append(dict(
            ln1_g=jnp.ones((1, D), jnp.float32),
            ln1_b=jnp.zeros((1, D), jnp.float32),
            w_qkv=jax.random.normal(lk[0], (D, 3 * D), jnp.float32) * 0.02,
            b_qkv=jnp.zeros((1, 3 * D), jnp.float32),
            w_proj=jax.random.normal(lk[1], (D, D), jnp.float32) * 0.02,
            b_proj=jnp.zeros((1, D), jnp.float32),
            ln2_g=jnp.ones((1, D), jnp.float32),
            ln2_b=jnp.zeros((1, D), jnp.float32),
            w_fc=jax.random.normal(lk[2], (D, 4 * D), jnp.float32) * 0.02,
            b_fc=jnp.zeros((1, 4 * D), jnp.float32),
            w_proj2=jax.random.normal(lk[3], (4 * D, D), jnp.float32) * 0.02,
            b_proj2=jnp.zeros((1, D), jnp.float32),
        ))
    return wte, wpe, layers


def pack_layers(layers):
    """Fold LN affines + attention scale into the weights, stack over layers,
    and store the four large weight tensors in bf16 (MXU operand dtype)."""
    scale = 1.0 / (DH ** 0.5)
    acc = {k: [] for k in ('w_qkv', 'b_qkv', 'w_proj', 'b_proj',
                           'w_fc', 'b_fc', 'w_proj2', 'b_proj2')}
    for p in layers:
        # y = LN(x; g,b) @ W + bw  ==  x_hat @ (diag(g) W) + (b @ W + bw)
        wq = p['ln1_g'].reshape(D, 1) * p['w_qkv']
        bq = p['ln1_b'] @ p['w_qkv'] + p['b_qkv']
        # Fold the 1/sqrt(DH) attention scale into the Q columns.
        wq = wq.at[:, :D].multiply(scale)
        bq = bq.at[:, :D].multiply(scale)
        wf = p['ln2_g'].reshape(D, 1) * p['w_fc']
        bf = p['ln2_b'] @ p['w_fc'] + p['b_fc']
        acc['w_qkv'].append(wq);      acc['b_qkv'].append(bq)
        acc['w_proj'].append(p['w_proj']);   acc['b_proj'].append(p['b_proj'])
        acc['w_fc'].append(wf);       acc['b_fc'].append(bf)
        acc['w_proj2'].append(p['w_proj2']); acc['b_proj2'].append(p['b_proj2'])

    head_mask, attn_bias, j_blk = _build_attention_constants()
    return dict(
        w_qkv=jnp.stack(acc['w_qkv']).astype(jnp.bfloat16),
        b_qkv=jnp.stack(acc['b_qkv']),
        w_proj=jnp.stack(acc['w_proj']).astype(jnp.bfloat16),
        b_proj=jnp.stack(acc['b_proj']),
        w_fc=jnp.stack(acc['w_fc']).astype(jnp.bfloat16),
        b_fc=jnp.stack(acc['b_fc']),
        w_proj2=jnp.stack(acc['w_proj2']).astype(jnp.bfloat16),
        b_proj2=jnp.stack(acc['b_proj2']),
        head_mask=head_mask,
        attn_bias=attn_bias,
        j_blk=j_blk,
    )


if __name__ == "__main__":
    key = jax.random.PRNGKey(0)
    pkey, ikey = jax.random.split(key)
    wte, wpe, layers = init_params(pkey)
    packed = pack_layers(layers)
    input_ids = jax.random.randint(ikey, (B, S), 0, VOCAB, dtype=jnp.int32)
    out = client_forward(input_ids, wte, wpe, packed)
    jax.block_until_ready(out)
    assert out.shape == (B, S, D)
    print("KERNEL_OK")
</pallas_src>

<mosaic_0001>
module attributes {stable_mosaic.version = 11 : i64} {
  func.func @client_kernel(%arg0: memref<16x32xf32, #tpu.memory_space<vmem>>, %arg1: memref<6x32x96xbf16, #tpu.memory_space<vmem>>, %arg2: memref<6x1x96xf32, #tpu.memory_space<vmem>>, %arg3: memref<6x32x32xbf16, #tpu.memory_space<vmem>>, %arg4: memref<6x1x32xf32, #tpu.memory_space<vmem>>, %arg5: memref<6x32x128xbf16, #tpu.memory_space<vmem>>, %arg6: memref<6x1x128xf32, #tpu.memory_space<vmem>>, %arg7: memref<6x128x32xbf16, #tpu.memory_space<vmem>>, %arg8: memref<6x1x32xf32, #tpu.memory_space<vmem>>, %arg9: memref<64x32xf32, #tpu.memory_space<vmem>>, %arg10: memref<16x64xf32, #tpu.memory_space<vmem>>, %arg11: memref<64x64xf32, #tpu.memory_space<vmem>>, %arg12: memref<16x32xf32, #tpu.memory_space<vmem>>) attributes {dimension_semantics = [], scalar_prefetch = 0 : i64, scratch_operands = 0 : i64, tpu.core_type = #tpu.core_type<tc>} {
    %c0 = arith.constant 0 : index
    %c0_0 = arith.constant 0 : index
    %0 = vector.load %arg0[%c0, %c0_0] : memref<16x32xf32, #tpu.memory_space<vmem>>, vector<16x32xf32>
    %c0_1 = arith.constant 0 : index
    %c0_2 = arith.constant 0 : index
    %1 = vector.load %arg9[%c0_1, %c0_2] : memref<64x32xf32, #tpu.memory_space<vmem>>, vector<64x32xf32>
    %c0_3 = arith.constant 0 : index
    %c0_4 = arith.constant 0 : index
    %2 = vector.load %arg10[%c0_3, %c0_4] : memref<16x64xf32, #tpu.memory_space<vmem>>, vector<16x64xf32>
    %c0_5 = arith.constant 0 : index
    %c0_6 = arith.constant 0 : index
    %3 = vector.load %arg11[%c0_5, %c0_6] : memref<64x64xf32, #tpu.memory_space<vmem>>, vector<64x64xf32>
    %cst = arith.constant dense<0.000000e+00> : vector<16xf32>
    %4 = vector.multi_reduction <add>, %0, %cst [1] : vector<16x32xf32> to vector<16xf32>
    %5 = vector.shape_cast %4 : vector<16xf32> to vector<16x1xf32>
    %cst_7 = arith.constant 3.200000e+01 : f32
    %6 = vector.broadcast %cst_7 : f32 to vector<16x1xf32>
    %7 = arith.divf %5, %6 : vector<16x1xf32>
    %8 = vector.broadcast %7 : vector<16x1xf32> to vector<16x32xf32>
    %9 = arith.subf %0, %8 : vector<16x32xf32>
    %10 = arith.mulf %9, %9 : vector<16x32xf32>
    %cst_8 = arith.constant dense<0.000000e+00> : vector<16xf32>
    %11 = vector.multi_reduction <add>, %10, %cst_8 [1] : vector<16x32xf32> to vector<16xf32>
    %12 = vector.shape_cast %11 : vector<16xf32> to vector<16x1xf32>
    %cst_9 = arith.constant 3.200000e+01 : f32
    %13 = vector.broadcast %cst_9 : f32 to vector<16x1xf32>
    %14 = arith.divf %12, %13 : vector<16x1xf32>
    %15 = vector.broadcast %7 : vector<16x1xf32> to vector<16x32xf32>
    %16 = arith.subf %0, %15 : vector<16x32xf32>
    %cst_10 = arith.constant 9.99999974E-6 : f32
    %17 = vector.broadcast %cst_10 : f32 to vector<16x1xf32>
    %18 = arith.addf %14, %17 : vector<16x1xf32>
    %19 = math.rsqrt %18 : vector<16x1xf32>
    %20 = vector.broadcast %19 : vector<16x1xf32> to vector<16x32xf32>
    %21 = arith.mulf %16, %20 : vector<16x32xf32>
    %22 = arith.truncf %21 : vector<16x32xf32> to vector<16x32xbf16>
    %c0_11 = arith.constant 0 : index
    %c0_12 = arith.constant 0 : index
    %c0_13 = arith.constant 0 : index
    %23 = vector.load %arg1[%c0_11, %c0_12, %c0_13] : memref<6x32x96xbf16, #tpu.memory_space<vmem>>, vector<1x32x96xbf16>
    %24 = vector.shape_cast %23 : vector<1x32x96xbf16> to vector<32x96xbf16>
    %cst_14 = arith.constant dense<0.000000e+00> : vector<16x96xf32>
    %25 = tpu.matmul %22, %24, %cst_14 {dimension_numbers = #tpu.dot_dimension_numbers<[1], [0], [0], [1], [0, 0, 1, 1], [], []>} : vector<16x32xbf16>, vector<32x96xbf16>, vector<16x96xf32> -> vector<16x96xf32>
    %c0_15 = arith.constant 0 : index
    %c0_16 = arith.constant 0 : index
    %c0_17 = arith.constant 0 : index
    %26 = vector.load %arg2[%c0_15, %c0_16, %c0_17] : memref<6x1x96xf32, #tpu.memory_space<vmem>>, vector<1x1x96xf32>
    %27 = vector.shape_cast %26 : vector<1x1x96xf32> to vector<1x96xf32>
    %28 = vector.broadcast %27 : vector<1x96xf32> to vector<16x96xf32>
    %29 = arith.addf %25, %28 : vector<16x96xf32>
    %30 = vector.extract_strided_slice %29 {offsets = [0, 0], sizes = [16, 32], strides = [1, 1]} : vector<16x96xf32> to vector<16x32xf32>
    %31 = vector.extract_strided_slice %29 {offsets = [0, 32], sizes = [16, 32], strides = [1, 1]} : vector<16x96xf32> to vector<16x32xf32>
    %32 = vector.extract_strided_slice %29 {offsets = [0, 64], sizes = [16, 32], strides = [1, 1]} : vector<16x96xf32> to vector<16x32xf32>
    %33 = tpu.concatenate %31, %31, %31, %31 in 0 : vector<16x32xf32>, vector<16x32xf32>, vector<16x32xf32>, vector<16x32xf32> -> vector<64x32xf32>
    %34 = arith.mulf %33, %1 : vector<64x32xf32>
    %35 = tpu.concatenate %32, %32, %32, %32 in 0 : vector<16x32xf32>, vector<16x32xf32>, vector<16x32xf32>, vector<16x32xf32> -> vector<64x32xf32>
    %36 = arith.mulf %35, %1 : vector<64x32xf32>
    "tpu.trace_start"() <{level = 10 : i32, message = "qd,kd->qk"}> : () -> ()
    %cst_18 = arith.constant dense<0.000000e+00> : vector<16x64xf32>
    %37 = tpu.matmul %30, %34, %cst_18 {dimension_numbers = #tpu.dot_dimension_numbers<[1], [1], [0], [0], [0, 0, 1, 0], [], []>} : vector<16x32xf32>, vector<64x32xf32>, vector<16x64xf32> -> vector<16x64xf32>
    "tpu.trace_stop"() : () -> ()
    %38 = arith.addf %37, %2 : vector<16x64xf32>
    %cst_19 = arith.constant dense<0xFF800000> : vector<16xf32>
    %39 = vector.multi_reduction <maximumf>, %38, %cst_19 [1] : vector<16x64xf32> to vector<16xf32>
    %40 = vector.shape_cast %39 : vector<16xf32> to vector<16x1xf32>
    %41 = vector.broadcast %40 : vector<16x1xf32> to vector<16x64xf32>
    %42 = arith.subf %38, %41 : vector<16x64xf32>
    %43 = math.exp %42 : vector<16x64xf32>
    %cst_20 = arith.constant dense<0.000000e+00> : vector<16x64xf32>
    %44 = tpu.matmul %43, %3, %cst_20 {dimension_numbers = #tpu.dot_dimension_numbers<[1], [0], [0], [1], [0, 0, 1, 1], [], []>} : vector<16x64xf32>, vector<64x64xf32>, vector<16x64xf32> -> vector<16x64xf32>
    %45 = tpu.reciprocal %44 {approx = true} : vector<16x64xf32> -> vector<16x64xf32>
    %46 = arith.mulf %43, %45 : vector<16x64xf32>
    %cst_21 = arith.constant dense<0.000000e+00> : vector<16x32xf32>
    %47 = tpu.matmul %46, %36, %cst_21 {dimension_numbers = #tpu.dot_dimension_numbers<[1], [0], [0], [1], [0, 0, 1, 1], [], []>} : vector<16x64xf32>, vector<64x32xf32>, vector<16x32xf32> -> vector<16x32xf32>
    %48 = arith.truncf %47 : vector<16x32xf32> to vector<16x32xbf16>
    %c0_22 = arith.constant 0 : index
    %c0_23 = arith.constant 0 : index
    %c0_24 = arith.constant 0 : index
    %49 = vector.load %arg3[%c0_22, %c0_23, %c0_24] : memref<6x32x32xbf16, #tpu.memory_space<vmem>>, vector<1x32x32xbf16>
    %50 = vector.shape_cast %49 : vector<1x32x32xbf16> to vector<32x32xbf16>
    %cst_25 = arith.constant dense<0.000000e+00> : vector<16x32xf32>
    %51 = tpu.matmul %48, %50, %cst_25 {dimension_numbers = #tpu.dot_dimension_numbers<[1], [0], [0], [1], [0, 0, 1, 1], [], []>} : vector<16x32xbf16>, vector<32x32xbf16>, vector<16x32xf32> -> vector<16x32xf32>
    %c0_26 = arith.constant 0 : index
    %c0_27 = arith.constant 0 : index
    %c0_28 = arith.constant 0 : index
    %52 = vector.load %arg4[%c0_26, %c0_27, %c0_28] : memref<6x1x32xf32, #tpu.memory_space<vmem>>, vector<1x1x32xf32>
    %53 = vector.shape_cast %52 : vector<1x1x32xf32> to vector<1x32xf32>
    %54 = vector.broadcast %53 : vector<1x32xf32> to vector<16x32xf32>
    %55 = arith.addf %51, %54 : vector<16x32xf32>
    %56 = arith.addf %0, %55 : vector<16x32xf32>
    %cst_29 = arith.constant dense<0.000000e+00> : vector<16xf32>
    %57 = vector.multi_reduction <add>, %56, %cst_29 [1] : vector<16x32xf32> to vector<16xf32>
    %58 = vector.shape_cast %57 : vector<16xf32> to vector<16x1xf32>
    %cst_30 = arith.constant 3.200000e+01 : f32
    %59 = vector.broadcast %cst_30 : f32 to vector<16x1xf32>
    %60 = arith.divf %58, %59 : vector<16x1xf32>
    %61 = vector.broadcast %60 : vector<16x1xf32> to vector<16x32xf32>
    %62 = arith.subf %56, %61 : vector<16x32xf32>
    %63 = arith.mulf %62, %62 : vector<16x32xf32>
    %cst_31 = arith.constant dense<0.000000e+00> : vector<16xf32>
    %64 = vector.multi_reduction <add>, %63, %cst_31 [1] : vector<16x32xf32> to vector<16xf32>
    %65 = vector.shape_cast %64 : vector<16xf32> to vector<16x1xf32>
    %cst_32 = arith.constant 3.200000e+01 : f32
    %66 = vector.broadcast %cst_32 : f32 to vector<16x1xf32>
    %67 = arith.divf %65, %66 : vector<16x1xf32>
    %68 = vector.broadcast %60 : vector<16x1xf32> to vector<16x32xf32>
    %69 = arith.subf %56, %68 : vector<16x32xf32>
    %cst_33 = arith.constant 9.99999974E-6 : f32
    %70 = vector.broadcast %cst_33 : f32 to vector<16x1xf32>
    %71 = arith.addf %67, %70 : vector<16x1xf32>
    %72 = math.rsqrt %71 : vector<16x1xf32>
    %73 = vector.broadcast %72 : vector<16x1xf32> to vector<16x32xf32>
    %74 = arith.mulf %69, %73 : vector<16x32xf32>
    %75 = arith.truncf %74 : vector<16x32xf32> to vector<16x32xbf16>
    %c0_34 = arith.constant 0 : index
    %c0_35 = arith.constant 0 : index
    %c0_36 = arith.constant 0 : index
    %76 = vector.load %arg5[%c0_34, %c0_35, %c0_36] : memref<6x32x128xbf16, #tpu.memory_space<vmem>>, vector<1x32x128xbf16>
    %77 = vector.shape_cast %76 : vector<1x32x128xbf16> to vector<32x128xbf16>
    %cst_37 = arith.constant dense<0.000000e+00> : vector<16x128xf32>
    %78 = tpu.matmul %75, %77, %cst_37 {dimension_numbers = #tpu.dot_dimension_numbers<[1], [0], [0], [1], [0, 0, 1, 1], [], []>} : vector<16x32xbf16>, vector<32x128xbf16>, vector<16x128xf32> -> vector<16x128xf32>
    %c0_38 = arith.constant 0 : index
    %c0_39 = arith.constant 0 : index
    %c0_40 = arith.constant 0 : index
    %79 = vector.load %arg6[%c0_38, %c0_39, %c0_40] : memref<6x1x128xf32, #tpu.memory_space<vmem>>, vector<1x1x128xf32>
    %80 = vector.shape_cast %79 : vector<1x1x128xf32> to vector<1x128xf32>
    %81 = vector.broadcast %80 : vector<1x128xf32> to vector<16x128xf32>
    %82 = arith.addf %78, %81 : vector<16x128xf32>
    %cst_41 = arith.constant 5.000000e-01 : f32
    %83 = vector.broadcast %cst_41 : f32 to vector<16x128xf32>
    %84 = arith.mulf %83, %82 : vector<16x128xf32>
    %cst_42 = arith.constant 4.471500e-02 : f32
    %85 = vector.broadcast %cst_42 : f32 to vector<16x128xf32>
    %86 = arith.mulf %85, %82 : vector<16x128xf32>
    %87 = arith.mulf %86, %82 : vector<16x128xf32>
    %88 = arith.mulf %87, %82 : vector<16x128xf32>
    %89 = arith.addf %82, %88 : vector<16x128xf32>
    %cst_43 = arith.constant 0.797884583 : f32
    %90 = vector.broadcast %cst_43 : f32 to vector<16x128xf32>
    %91 = arith.mulf %90, %89 : vector<16x128xf32>
    %92 = math.tanh %91 : vector<16x128xf32>
    %cst_44 = arith.constant 1.000000e+00 : f32
    %93 = vector.broadcast %cst_44 : f32 to vector<16x128xf32>
    %94 = arith.addf %93, %92 : vector<16x128xf32>
    %95 = arith.mulf %84, %94 : vector<16x128xf32>
    %96 = arith.truncf %95 : vector<16x128xf32> to vector<16x128xbf16>
    %c0_45 = arith.constant 0 : index
    %c0_46 = arith.constant 0 : index
    %c0_47 = arith.constant 0 : index
    %97 = vector.load %arg7[%c0_45, %c0_46, %c0_47] : memref<6x128x32xbf16, #tpu.memory_space<vmem>>, vector<1x128x32xbf16>
    %98 = vector.shape_cast %97 : vector<1x128x32xbf16> to vector<128x32xbf16>
    %cst_48 = arith.constant dense<0.000000e+00> : vector<16x32xf32>
    %99 = tpu.matmul %96, %98, %cst_48 {dimension_numbers = #tpu.dot_dimension_numbers<[1], [0], [0], [1], [0, 0, 1, 1], [], []>} : vector<16x128xbf16>, vector<128x32xbf16>, vector<16x32xf32> -> vector<16x32xf32>
    %c0_49 = arith.constant 0 : index
    %c0_50 = arith.constant 0 : index
    %c0_51 = arith.constant 0 : index
    %100 = vector.load %arg8[%c0_49, %c0_50, %c0_51] : memref<6x1x32xf32, #tpu.memory_space<vmem>>, vector<1x1x32xf32>
    %101 = vector.shape_cast %100 : vector<1x1x32xf32> to vector<1x32xf32>
    %102 = vector.broadcast %101 : vector<1x32xf32> to vector<16x32xf32>
    %103 = arith.addf %99, %102 : vector<16x32xf32>
    %104 = arith.addf %56, %103 : vector<16x32xf32>
    %cst_52 = arith.constant dense<0.000000e+00> : vector<16xf32>
    %105 = vector.multi_reduction <add>, %104, %cst_52 [1] : vector<16x32xf32> to vector<16xf32>
    %106 = vector.shape_cast %105 : vector<16xf32> to vector<16x1xf32>
    %cst_53 = arith.constant 3.200000e+01 : f32
    %107 = vector.broadcast %cst_53 : f32 to vector<16x1xf32>
    %108 = arith.divf %106, %107 : vector<16x1xf32>
    %109 = vector.broadcast %108 : vector<16x1xf32> to vector<16x32xf32>
    %110 = arith.subf %104, %109 : vector<16x32xf32>
    %111 = arith.mulf %110, %110 : vector<16x32xf32>
    %cst_54 = arith.constant dense<0.000000e+00> : vector<16xf32>
    %112 = vector.multi_reduction <add>, %111, %cst_54 [1] : vector<16x32xf32> to vector<16xf32>
    %113 = vector.shape_cast %112 : vector<16xf32> to vector<16x1xf32>
    %cst_55 = arith.constant 3.200000e+01 : f32
    %114 = vector.broadcast %cst_55 : f32 to vector<16x1xf32>
    %115 = arith.divf %113, %114 : vector<16x1xf32>
    %116 = vector.broadcast %108 : vector<16x1xf32> to vector<16x32xf32>
    %117 = arith.subf %104, %116 : vector<16x32xf32>
    %cst_56 = arith.constant 9.99999974E-6 : f32
    %118 = vector.broadcast %cst_56 : f32 to vector<16x1xf32>
    %119 = arith.addf %115, %118 : vector<16x1xf32>
    %120 = math.rsqrt %119 : vector<16x1xf32>
    %121 = vector.broadcast %120 : vector<16x1xf32> to vector<16x32xf32>
    %122 = arith.mulf %117, %121 : vector<16x32xf32>
    %123 = arith.truncf %122 : vector<16x32xf32> to vector<16x32xbf16>
    %c1 = arith.constant 1 : index
    %c0_57 = arith.constant 0 : index
    %c0_58 = arith.constant 0 : index
    %124 = vector.load %arg1[%c1, %c0_57, %c0_58] : memref<6x32x96xbf16, #tpu.memory_space<vmem>>, vector<1x32x96xbf16>
    %125 = vector.shape_cast %124 : vector<1x32x96xbf16> to vector<32x96xbf16>
    %cst_59 = arith.constant dense<0.000000e+00> : vector<16x96xf32>
    %126 = tpu.matmul %123, %125, %cst_59 {dimension_numbers = #tpu.dot_dimension_numbers<[1], [0], [0], [1], [0, 0, 1, 1], [], []>} : vector<16x32xbf16>, vector<32x96xbf16>, vector<16x96xf32> -> vector<16x96xf32>
    %c1_60 = arith.constant 1 : index
    %c0_61 = arith.constant 0 : index
    %c0_62 = arith.constant 0 : index
    %127 = vector.load %arg2[%c1_60, %c0_61, %c0_62] : memref<6x1x96xf32, #tpu.memory_space<vmem>>, vector<1x1x96xf32>
    %128 = vector.shape_cast %127 : vector<1x1x96xf32> to vector<1x96xf32>
    %129 = vector.broadcast %128 : vector<1x96xf32> to vector<16x96xf32>
    %130 = arith.addf %126, %129 : vector<16x96xf32>
    %131 = vector.extract_strided_slice %130 {offsets = [0, 0], sizes = [16, 32], strides = [1, 1]} : vector<16x96xf32> to vector<16x32xf32>
    %132 = vector.extract_strided_slice %130 {offsets = [0, 32], sizes = [16, 32], strides = [1, 1]} : vector<16x96xf32> to vector<16x32xf32>
    %133 = vector.extract_strided_slice %130 {offsets = [0, 64], sizes = [16, 32], strides = [1, 1]} : vector<16x96xf32> to vector<16x32xf32>
    %134 = tpu.concatenate %132, %132, %132, %132 in 0 : vector<16x32xf32>, vector<16x32xf32>, vector<16x32xf32>, vector<16x32xf32> -> vector<64x32xf32>
    %135 = arith.mulf %134, %1 : vector<64x32xf32>
    %136 = tpu.concatenate %133, %133, %133, %133 in 0 : vector<16x32xf32>, vector<16x32xf32>, vector<16x32xf32>, vector<16x32xf32> -> vector<64x32xf32>
    %137 = arith.mulf %136, %1 : vector<64x32xf32>
    "tpu.trace_start"() <{level = 10 : i32, message = "qd,kd->qk"}> : () -> ()
    %cst_63 = arith.constant dense<0.000000e+00> : vector<16x64xf32>
    %138 = tpu.matmul %131, %135, %cst_63 {dimension_numbers = #tpu.dot_dimension_numbers<[1], [1], [0], [0], [0, 0, 1, 0], [], []>} : vector<16x32xf32>, vector<64x32xf32>, vector<16x64xf32> -> vector<16x64xf32>
    "tpu.trace_stop"() : () -> ()
    %139 = arith.addf %138, %2 : vector<16x64xf32>
    %cst_64 = arith.constant dense<0xFF800000> : vector<16xf32>
    %140 = vector.multi_reduction <maximumf>, %139, %cst_64 [1] : vector<16x64xf32> to vector<16xf32>
    %141 = vector.shape_cast %140 : vector<16xf32> to vector<16x1xf32>
    %142 = vector.broadcast %141 : vector<16x1xf32> to vector<16x64xf32>
    %143 = arith.subf %139, %142 : vector<16x64xf32>
    %144 = math.exp %143 : vector<16x64xf32>
    %cst_65 = arith.constant dense<0.000000e+00> : vector<16x64xf32>
    %145 = tpu.matmul %144, %3, %cst_65 {dimension_numbers = #tpu.dot_dimension_numbers<[1], [0], [0], [1], [0, 0, 1, 1], [], []>} : vector<16x64xf32>, vector<64x64xf32>, vector<16x64xf32> -> vector<16x64xf32>
    %146 = tpu.reciprocal %145 {approx = true} : vector<16x64xf32> -> vector<16x64xf32>
    %147 = arith.mulf %144, %146 : vector<16x64xf32>
    %cst_66 = arith.constant dense<0.000000e+00> : vector<16x32xf32>
    %148 = tpu.matmul %147, %137, %cst_66 {dimension_numbers = #tpu.dot_dimension_numbers<[1], [0], [0], [1], [0, 0, 1, 1], [], []>} : vector<16x64xf32>, vector<64x32xf32>, vector<16x32xf32> -> vector<16x32xf32>
    %149 = arith.truncf %148 : vector<16x32xf32> to vector<16x32xbf16>
    %c1_67 = arith.constant 1 : index
    %c0_68 = arith.constant 0 : index
    %c0_69 = arith.constant 0 : index
    %150 = vector.load %arg3[%c1_67, %c0_68, %c0_69] : memref<6x32x32xbf16, #tpu.memory_space<vmem>>, vector<1x32x32xbf16>
    %151 = vector.shape_cast %150 : vector<1x32x32xbf16> to vector<32x32xbf16>
    %cst_70 = arith.constant dense<0.000000e+00> : vector<16x32xf32>
    %152 = tpu.matmul %149, %151, %cst_70 {dimension_numbers = #tpu.dot_dimension_numbers<[1], [0], [0], [1], [0, 0, 1, 1], [], []>} : vector<16x32xbf16>, vector<32x32xbf16>, vector<16x32xf32> -> vector<16x32xf32>
    %c1_71 = arith.constant 1 : index
    %c0_72 = arith.constant 0 : index
    %c0_73 = arith.constant 0 : index
    %153 = vector.load %arg4[%c1_71, %c0_72, %c0_73] : memref<6x1x32xf32, #tpu.memory_space<vmem>>, vector<1x1x32xf32>
    %154 = vector.shape_cast %153 : vector<1x1x32xf32> to vector<1x32xf32>
    %155 = vector.broadcast %154 : vector<1x32xf32> to vector<16x32xf32>
    %156 = arith.addf %152, %155 : vector<16x32xf32>
    %157 = arith.addf %104, %156 : vector<16x32xf32>
    %cst_74 = arith.constant dense<0.000000e+00> : vector<16xf32>
    %158 = vector.multi_reduction <add>, %157, %cst_74 [1] : vector<16x32xf32> to vector<16xf32>
    %159 = vector.shape_cast %158 : vector<16xf32> to vector<16x1xf32>
    %cst_75 = arith.constant 3.200000e+01 : f32
    %160 = vector.broadcast %cst_75 : f32 to vector<16x1xf32>
    %161 = arith.divf %159, %160 : vector<16x1xf32>
    %162 = vector.broadcast %161 : vector<16x1xf32> to vector<16x32xf32>
    %163 = arith.subf %157, %162 : vector<16x32xf32>
    %164 = arith.mulf %163, %163 : vector<16x32xf32>
    %cst_76 = arith.constant dense<0.000000e+00> : vector<16xf32>
    %165 = vector.multi_reduction <add>, %164, %cst_76 [1] : vector<16x32xf32> to vector<16xf32>
    %166 = vector.shape_cast %165 : vector<16xf32> to vector<16x1xf32>
    %cst_77 = arith.constant 3.200000e+01 : f32
    %167 = vector.broadcast %cst_77 : f32 to vector<16x1xf32>
    %168 = arith.divf %166, %167 : vector<16x1xf32>
    %169 = vector.broadcast %161 : vector<16x1xf32> to vector<16x32xf32>
    %170 = arith.subf %157, %169 : vector<16x32xf32>
    %cst_78 = arith.constant 9.99999974E-6 : f32
    %171 = vector.broadcast %cst_78 : f32 to vector<16x1xf32>
    %172 = arith.addf %168, %171 : vector<16x1xf32>
    %173 = math.rsqrt %172 : vector<16x1xf32>
    %174 = vector.broadcast %173 : vector<16x1xf32> to vector<16x32xf32>
    %175 = arith.mulf %170, %174 : vector<16x32xf32>
    %176 = arith.truncf %175 : vector<16x32xf32> to vector<16x32xbf16>
    %c1_79 = arith.constant 1 : index
    %c0_80 = arith.constant 0 : index
    %c0_81 = arith.constant 0 : index
    %177 = vector.load %arg5[%c1_79, %c0_80, %c0_81] : memref<6x32x128xbf16, #tpu.memory_space<vmem>>, vector<1x32x128xbf16>
    %178 = vector.shape_cast %177 : vector<1x32x128xbf16> to vector<32x128xbf16>
    %cst_82 = arith.constant dense<0.000000e+00> : vector<16x128xf32>
    %179 = tpu.matmul %176, %178, %cst_82 {dimension_numbers = #tpu.dot_dimension_numbers<[1], [0], [0], [1], [0, 0, 1, 1], [], []>} : vector<16x32xbf16>, vector<32x128xbf16>, vector<16x128xf32> -> vector<16x128xf32>
    %c1_83 = arith.constant 1 : index
    %c0_84 = arith.constant 0 : index
    %c0_85 = arith.constant 0 : index
    %180 = vector.load %arg6[%c1_83, %c0_84, %c0_85] : memref<6x1x128xf32, #tpu.memory_space<vmem>>, vector<1x1x128xf32>
    %181 = vector.shape_cast %180 : vector<1x1x128xf32> to vector<1x128xf32>
    %182 = vector.broadcast %181 : vector<1x128xf32> to vector<16x128xf32>
    %183 = arith.addf %179, %182 : vector<16x128xf32>
    %cst_86 = arith.constant 5.000000e-01 : f32
    %184 = vector.broadcast %cst_86 : f32 to vector<16x128xf32>
    %185 = arith.mulf %184, %183 : vector<16x128xf32>
    %cst_87 = arith.constant 4.471500e-02 : f32
    %186 = vector.broadcast %cst_87 : f32 to vector<16x128xf32>
    %187 = arith.mulf %186, %183 : vector<16x128xf32>
    %188 = arith.mulf %187, %183 : vector<16x128xf32>
    %189 = arith.mulf %188, %183 : vector<16x128xf32>
    %190 = arith.addf %183, %189 : vector<16x128xf32>
    %cst_88 = arith.constant 0.797884583 : f32
    %191 = vector.broadcast %cst_88 : f32 to vector<16x128xf32>
    %192 = arith.mulf %191, %190 : vector<16x128xf32>
    %193 = math.tanh %192 : vector<16x128xf32>
    %cst_89 = arith.constant 1.000000e+00 : f32
    %194 = vector.broadcast %cst_89 : f32 to vector<16x128xf32>
    %195 = arith.addf %194, %193 : vector<16x128xf32>
    %196 = arith.mulf %185, %195 : vector<16x128xf32>
    %197 = arith.truncf %196 : vector<16x128xf32> to vector<16x128xbf16>
    %c1_90 = arith.constant 1 : index
    %c0_91 = arith.constant 0 : index
    %c0_92 = arith.constant 0 : index
    %198 = vector.load %arg7[%c1_90, %c0_91, %c0_92] : memref<6x128x32xbf16, #tpu.memory_space<vmem>>, vector<1x128x32xbf16>
    %199 = vector.shape_cast %198 : vector<1x128x32xbf16> to vector<128x32xbf16>
    %cst_93 = arith.constant dense<0.000000e+00> : vector<16x32xf32>
    %200 = tpu.matmul %197, %199, %cst_93 {dimension_numbers = #tpu.dot_dimension_numbers<[1], [0], [0], [1], [0, 0, 1, 1], [], []>} : vector<16x128xbf16>, vector<128x32xbf16>, vector<16x32xf32> -> vector<16x32xf32>
    %c1_94 = arith.constant 1 : index
    %c0_95 = arith.constant 0 : index
    %c0_96 = arith.constant 0 : index
    %201 = vector.load %arg8[%c1_94, %c0_95, %c0_96] : memref<6x1x32xf32, #tpu.memory_space<vmem>>, vector<1x1x32xf32>
    %202 = vector.shape_cast %201 : vector<1x1x32xf32> to vector<1x32xf32>
    %203 = vector.broadcast %202 : vector<1x32xf32> to vector<16x32xf32>
    %204 = arith.addf %200, %203 : vector<16x32xf32>
    %205 = arith.addf %157, %204 : vector<16x32xf32>
    %cst_97 = arith.constant dense<0.000000e+00> : vector<16xf32>
    %206 = vector.multi_reduction <add>, %205, %cst_97 [1] : vector<16x32xf32> to vector<16xf32>
    %207 = vector.shape_cast %206 : vector<16xf32> to vector<16x1xf32>
    %cst_98 = arith.constant 3.200000e+01 : f32
    %208 = vector.broadcast %cst_98 : f32 to vector<16x1xf32>
    %209 = arith.divf %207, %208 : vector<16x1xf32>
    %210 = vector.broadcast %209 : vector<16x1xf32> to vector<16x32xf32>
    %211 = arith.subf %205, %210 : vector<16x32xf32>
    %212 = arith.mulf %211, %211 : vector<16x32xf32>
    %cst_99 = arith.constant dense<0.000000e+00> : vector<16xf32>
    %213 = vector.multi_reduction <add>, %212, %cst_99 [1] : vector<16x32xf32> to vector<16xf32>
    %214 = vector.shape_cast %213 : vector<16xf32> to vector<16x1xf32>
    %cst_100 = arith.constant 3.200000e+01 : f32
    %215 = vector.broadcast %cst_100 : f32 to vector<16x1xf32>
    %216 = arith.divf %214, %215 : vector<16x1xf32>
    %217 = vector.broadcast %209 : vector<16x1xf32> to vector<16x32xf32>
    %218 = arith.subf %205, %217 : vector<16x32xf32>
    %cst_101 = arith.constant 9.99999974E-6 : f32
    %219 = vector.broadcast %cst_101 : f32 to vector<16x1xf32>
    %220 = arith.addf %216, %219 : vector<16x1xf32>
    %221 = math.rsqrt %220 : vector<16x1xf32>
    %222 = vector.broadcast %221 : vector<16x1xf32> to vector<16x32xf32>
    %223 = arith.mulf %218, %222 : vector<16x32xf32>
    %224 = arith.truncf %223 : vector<16x32xf32> to vector<16x32xbf16>
    %c2 = arith.constant 2 : index
    %c0_102 = arith.constant 0 : index
    %c0_103 = arith.constant 0 : index
    %225 = vector.load %arg1[%c2, %c0_102, %c0_103] : memref<6x32x96xbf16, #tpu.memory_space<vmem>>, vector<1x32x96xbf16>
    %226 = vector.shape_cast %225 : vector<1x32x96xbf16> to vector<32x96xbf16>
    %cst_104 = arith.constant dense<0.000000e+00> : vector<16x96xf32>
    %227 = tpu.matmul %224, %226, %cst_104 {dimension_numbers = #tpu.dot_dimension_numbers<[1], [0], [0], [1], [0, 0, 1, 1], [], []>} : vector<16x32xbf16>, vector<32x96xbf16>, vector<16x96xf32> -> vector<16x96xf32>
    %c2_105 = arith.constant 2 : index
    %c0_106 = arith.constant 0 : index
    %c0_107 = arith.constant 0 : index
    %228 = vector.load %arg2[%c2_105, %c0_106, %c0_107] : memref<6x1x96xf32, #tpu.memory_space<vmem>>, vector<1x1x96xf32>
    %229 = vector.shape_cast %228 : vector<1x1x96xf32> to vector<1x96xf32>
    %230 = vector.broadcast %229 : vector<1x96xf32> to vector<16x96xf32>
    %231 = arith.addf %227, %230 : vector<16x96xf32>
    %232 = vector.extract_strided_slice %231 {offsets = [0, 0], sizes = [16, 32], strides = [1, 1]} : vector<16x96xf32> to vector<16x32xf32>
    %233 = vector.extract_strided_slice %231 {offsets = [0, 32], sizes = [16, 32], strides = [1, 1]} : vector<16x96xf32> to vector<16x32xf32>
    %234 = vector.extract_strided_slice %231 {offsets = [0, 64], sizes = [16, 32], strides = [1, 1]} : vector<16x96xf32> to vector<16x32xf32>
    %235 = tpu.concatenate %233, %233, %233, %233 in 0 : vector<16x32xf32>, vector<16x32xf32>, vector<16x32xf32>, vector<16x32xf32> -> vector<64x32xf32>
    %236 = arith.mulf %235, %1 : vector<64x32xf32>
    %237 = tpu.concatenate %234, %234, %234, %234 in 0 : vector<16x32xf32>, vector<16x32xf32>, vector<16x32xf32>, vector<16x32xf32> -> vector<64x32xf32>
    %238 = arith.mulf %237, %1 : vector<64x32xf32>
    "tpu.trace_start"() <{level = 10 : i32, message = "qd,kd->qk"}> : () -> ()
    %cst_108 = arith.constant dense<0.000000e+00> : vector<16x64xf32>
    %239 = tpu.matmul %232, %236, %cst_108 {dimension_numbers = #tpu.dot_dimension_numbers<[1], [1], [0], [0], [0, 0, 1, 0], [], []>} : vector<16x32xf32>, vector<64x32xf32>, vector<16x64xf32> -> vector<16x64xf32>
    "tpu.trace_stop"() : () -> ()
    %240 = arith.addf %239, %2 : vector<16x64xf32>
    %cst_109 = arith.constant dense<0xFF800000> : vector<16xf32>
    %241 = vector.multi_reduction <maximumf>, %240, %cst_109 [1] : vector<16x64xf32> to vector<16xf32>
    %242 = vector.shape_cast %241 : vector<16xf32> to vector<16x1xf32>
    %243 = vector.broadcast %242 : vector<16x1xf32> to vector<16x64xf32>
    %244 = arith.subf %240, %243 : vector<16x64xf32>
    %245 = math.exp %244 : vector<16x64xf32>
    %cst_110 = arith.constant dense<0.000000e+00> : vector<16x64xf32>
    %246 = tpu.matmul %245, %3, %cst_110 {dimension_numbers = #tpu.dot_dimension_numbers<[1], [0], [0], [1], [0, 0, 1, 1], [], []>} : vector<16x64xf32>, vector<64x64xf32>, vector<16x64xf32> -> vector<16x64xf32>
    %247 = tpu.reciprocal %246 {approx = true} : vector<16x64xf32> -> vector<16x64xf32>
    %248 = arith.mulf %245, %247 : vector<16x64xf32>
    %cst_111 = arith.constant dense<0.000000e+00> : vector<16x32xf32>
    %249 = tpu.matmul %248, %238, %cst_111 {dimension_numbers = #tpu.dot_dimension_numbers<[1], [0], [0], [1], [0, 0, 1, 1], [], []>} : vector<16x64xf32>, vector<64x32xf32>, vector<16x32xf32> -> vector<16x32xf32>
    %250 = arith.truncf %249 : vector<16x32xf32> to vector<16x32xbf16>
    %c2_112 = arith.constant 2 : index
    %c0_113 = arith.constant 0 : index
    %c0_114 = arith.constant 0 : index
    %251 = vector.load %arg3[%c2_112, %c0_113, %c0_114] : memref<6x32x32xbf16, #tpu.memory_space<vmem>>, vector<1x32x32xbf16>
    %252 = vector.shape_cast %251 : vector<1x32x32xbf16> to vector<32x32xbf16>
    %cst_115 = arith.constant dense<0.000000e+00> : vector<16x32xf32>
    %253 = tpu.matmul %250, %252, %cst_115 {dimension_numbers = #tpu.dot_dimension_numbers<[1], [0], [0], [1], [0, 0, 1, 1], [], []>} : vector<16x32xbf16>, vector<32x32xbf16>, vector<16x32xf32> -> vector<16x32xf32>
    %c2_116 = arith.constant 2 : index
    %c0_117 = arith.constant 0 : index
    %c0_118 = arith.constant 0 : index
    %254 = vector.load %arg4[%c2_116, %c0_117, %c0_118] : memref<6x1x32xf32, #tpu.memory_space<vmem>>, vector<1x1x32xf32>
    %255 = vector.shape_cast %254 : vector<1x1x32xf32> to vector<1x32xf32>
    %256 = vector.broadcast %255 : vector<1x32xf32> to vector<16x32xf32>
    %257 = arith.addf %253, %256 : vector<16x32xf32>
    %258 = arith.addf %205, %257 : vector<16x32xf32>
    %cst_119 = arith.constant dense<0.000000e+00> : vector<16xf32>
    %259 = vector.multi_reduction <add>, %258, %cst_119 [1] : vector<16x32xf32> to vector<16xf32>
    %260 = vector.shape_cast %259 : vector<16xf32> to vector<16x1xf32>
    %cst_120 = arith.constant 3.200000e+01 : f32
    %261 = vector.broadcast %cst_120 : f32 to vector<16x1xf32>
    %262 = arith.divf %260, %261 : vector<16x1xf32>
    %263 = vector.broadcast %262 : vector<16x1xf32> to vector<16x32xf32>
    %264 = arith.subf %258, %263 : vector<16x32xf32>
    %265 = arith.mulf %264, %264 : vector<16x32xf32>
    %cst_121 = arith.constant dense<0.000000e+00> : vector<16xf32>
    %266 = vector.multi_reduction <add>, %265, %cst_121 [1] : vector<16x32xf32> to vector<16xf32>
    %267 = vector.shape_cast %266 : vector<16xf32> to vector<16x1xf32>
    %cst_122 = arith.constant 3.200000e+01 : f32
    %268 = vector.broadcast %cst_122 : f32 to vector<16x1xf32>
    %269 = arith.divf %267, %268 : vector<16x1xf32>
    %270 = vector.broadcast %262 : vector<16x1xf32> to vector<16x32xf32>
    %271 = arith.subf %258, %270 : vector<16x32xf32>
    %cst_123 = arith.constant 9.99999974E-6 : f32
    %272 = vector.broadcast %cst_123 : f32 to vector<16x1xf32>
    %273 = arith.addf %269, %272 : vector<16x1xf32>
    %274 = math.rsqrt %273 : vector<16x1xf32>
    %275 = vector.broadcast %274 : vector<16x1xf32> to vector<16x32xf32>
    %276 = arith.mulf %271, %275 : vector<16x32xf32>
    %277 = arith.truncf %276 : vector<16x32xf32> to vector<16x32xbf16>
    %c2_124 = arith.constant 2 : index
    %c0_125 = arith.constant 0 : index
    %c0_126 = arith.constant 0 : index
    %278 = vector.load %arg5[%c2_124, %c0_125, %c0_126] : memref<6x32x128xbf16, #tpu.memory_space<vmem>>, vector<1x32x128xbf16>
    %279 = vector.shape_cast %278 : vector<1x32x128xbf16> to vector<32x128xbf16>
    %cst_127 = arith.constant dense<0.000000e+00> : vector<16x128xf32>
    %280 = tpu.matmul %277, %279, %cst_127 {dimension_numbers = #tpu.dot_dimension_numbers<[1], [0], [0], [1], [0, 0, 1, 1], [], []>} : vector<16x32xbf16>, vector<32x128xbf16>, vector<16x128xf32> -> vector<16x128xf32>
    %c2_128 = arith.constant 2 : index
    %c0_129 = arith.constant 0 : index
    %c0_130 = arith.constant 0 : index
    %281 = vector.load %arg6[%c2_128, %c0_129, %c0_130] : memref<6x1x128xf32, #tpu.memory_space<vmem>>, vector<1x1x128xf32>
    %282 = vector.shape_cast %281 : vector<1x1x128xf32> to vector<1x128xf32>
    %283 = vector.broadcast %282 : vector<1x128xf32> to vector<16x128xf32>
    %284 = arith.addf %280, %283 : vector<16x128xf32>
    %cst_131 = arith.constant 5.000000e-01 : f32
    %285 = vector.broadcast %cst_131 : f32 to vector<16x128xf32>
    %286 = arith.mulf %285, %284 : vector<16x128xf32>
    %cst_132 = arith.constant 4.471500e-02 : f32
    %287 = vector.broadcast %cst_132 : f32 to vector<16x128xf32>
    %288 = arith.mulf %287, %284 : vector<16x128xf32>
    %289 = arith.mulf %288, %284 : vector<16x128xf32>
    %290 = arith.mulf %289, %284 : vector<16x128xf32>
    %291 = arith.addf %284, %290 : vector<16x128xf32>
    %cst_133 = arith.constant 0.797884583 : f32
    %292 = vector.broadcast %cst_133 : f32 to vector<16x128xf32>
    %293 = arith.mulf %292, %291 : vector<16x128xf32>
    %294 = math.tanh %293 : vector<16x128xf32>
    %cst_134 = arith.constant 1.000000e+00 : f32
    %295 = vector.broadcast %cst_134 : f32 to vector<16x128xf32>
    %296 = arith.addf %295, %294 : vector<16x128xf32>
    %297 = arith.mulf %286, %296 : vector<16x128xf32>
    %298 = arith.truncf %297 : vector<16x128xf32> to vector<16x128xbf16>
    %c2_135 = arith.constant 2 : index
    %c0_136 = arith.constant 0 : index
    %c0_137 = arith.constant 0 : index
    %299 = vector.load %arg7[%c2_135, %c0_136, %c0_137] : memref<6x128x32xbf16, #tpu.memory_space<vmem>>, vector<1x128x32xbf16>
    %300 = vector.shape_cast %299 : vector<1x128x32xbf16> to vector<128x32xbf16>
    %cst_138 = arith.constant dense<0.000000e+00> : vector<16x32xf32>
    %301 = tpu.matmul %298, %300, %cst_138 {dimension_numbers = #tpu.dot_dimension_numbers<[1], [0], [0], [1], [0, 0, 1, 1], [], []>} : vector<16x128xbf16>, vector<128x32xbf16>, vector<16x32xf32> -> vector<16x32xf32>
    %c2_139 = arith.constant 2 : index
    %c0_140 = arith.constant 0 : index
    %c0_141 = arith.constant 0 : index
    %302 = vector.load %arg8[%c2_139, %c0_140, %c0_141] : memref<6x1x32xf32, #tpu.memory_space<vmem>>, vector<1x1x32xf32>
    %303 = vector.shape_cast %302 : vector<1x1x32xf32> to vector<1x32xf32>
    %304 = vector.broadcast %303 : vector<1x32xf32> to vector<16x32xf32>
    %305 = arith.addf %301, %304 : vector<16x32xf32>
    %306 = arith.addf %258, %305 : vector<16x32xf32>
    %cst_142 = arith.constant dense<0.000000e+00> : vector<16xf32>
    %307 = vector.multi_reduction <add>, %306, %cst_142 [1] : vector<16x32xf32> to vector<16xf32>
    %308 = vector.shape_cast %307 : vector<16xf32> to vector<16x1xf32>
    %cst_143 = arith.constant 3.200000e+01 : f32
    %309 = vector.broadcast %cst_143 : f32 to vector<16x1xf32>
    %310 = arith.divf %308, %309 : vector<16x1xf32>
    %311 = vector.broadcast %310 : vector<16x1xf32> to vector<16x32xf32>
    %312 = arith.subf %306, %311 : vector<16x32xf32>
    %313 = arith.mulf %312, %312 : vector<16x32xf32>
    %cst_144 = arith.constant dense<0.000000e+00> : vector<16xf32>
    %314 = vector.multi_reduction <add>, %313, %cst_144 [1] : vector<16x32xf32> to vector<16xf32>
    %315 = vector.shape_cast %314 : vector<16xf32> to vector<16x1xf32>
    %cst_145 = arith.constant 3.200000e+01 : f32
    %316 = vector.broadcast %cst_145 : f32 to vector<16x1xf32>
    %317 = arith.divf %315, %316 : vector<16x1xf32>
    %318 = vector.broadcast %310 : vector<16x1xf32> to vector<16x32xf32>
    %319 = arith.subf %306, %318 : vector<16x32xf32>
    %cst_146 = arith.constant 9.99999974E-6 : f32
    %320 = vector.broadcast %cst_146 : f32 to vector<16x1xf32>
    %321 = arith.addf %317, %320 : vector<16x1xf32>
    %322 = math.rsqrt %321 : vector<16x1xf32>
    %323 = vector.broadcast %322 : vector<16x1xf32> to vector<16x32xf32>
    %324 = arith.mulf %319, %323 : vector<16x32xf32>
    %325 = arith.truncf %324 : vector<16x32xf32> to vector<16x32xbf16>
    %c3 = arith.constant 3 : index
    %c0_147 = arith.constant 0 : index
    %c0_148 = arith.constant 0 : index
    %326 = vector.load %arg1[%c3, %c0_147, %c0_148] : memref<6x32x96xbf16, #tpu.memory_space<vmem>>, vector<1x32x96xbf16>
    %327 = vector.shape_cast %326 : vector<1x32x96xbf16> to vector<32x96xbf16>
    %cst_149 = arith.constant dense<0.000000e+00> : vector<16x96xf32>
    %328 = tpu.matmul %325, %327, %cst_149 {dimension_numbers = #tpu.dot_dimension_numbers<[1], [0], [0], [1], [0, 0, 1, 1], [], []>} : vector<16x32xbf16>, vector<32x96xbf16>, vector<16x96xf32> -> vector<16x96xf32>
    %c3_150 = arith.constant 3 : index
    %c0_151 = arith.constant 0 : index
    %c0_152 = arith.constant 0 : index
    %329 = vector.load %arg2[%c3_150, %c0_151, %c0_152] : memref<6x1x96xf32, #tpu.memory_space<vmem>>, vector<1x1x96xf32>
    %330 = vector.shape_cast %329 : vector<1x1x96xf32> to vector<1x96xf32>
    %331 = vector.broadcast %330 : vector<1x96xf32> to vector<16x96xf32>
    %332 = arith.addf %328, %331 : vector<16x96xf32>
    %333 = vector.extract_strided_slice %332 {offsets = [0, 0], sizes = [16, 32], strides = [1, 1]} : vector<16x96xf32> to vector<16x32xf32>
    %334 = vector.extract_strided_slice %332 {offsets = [0, 32], sizes = [16, 32], strides = [1, 1]} : vector<16x96xf32> to vector<16x32xf32>
    %335 = vector.extract_strided_slice %332 {offsets = [0, 64], sizes = [16, 32], strides = [1, 1]} : vector<16x96xf32> to vector<16x32xf32>
    %336 = tpu.concatenate %334, %334, %334, %334 in 0 : vector<16x32xf32>, vector<16x32xf32>, vector<16x32xf32>, vector<16x32xf32> -> vector<64x32xf32>
    %337 = arith.mulf %336, %1 : vector<64x32xf32>
    %338 = tpu.concatenate %335, %335, %335, %335 in 0 : vector<16x32xf32>, vector<16x32xf32>, vector<16x32xf32>, vector<16x32xf32> -> vector<64x32xf32>
    %339 = arith.mulf %338, %1 : vector<64x32xf32>
    "tpu.trace_start"() <{level = 10 : i32, message = "qd,kd->qk"}> : () -> ()
    %cst_153 = arith.constant dense<0.000000e+00> : vector<16x64xf32>
    %340 = tpu.matmul %333, %337, %cst_153 {dimension_numbers = #tpu.dot_dimension_numbers<[1], [1], [0], [0], [0, 0, 1, 0], [], []>} : vector<16x32xf32>, vector<64x32xf32>, vector<16x64xf32> -> vector<16x64xf32>
    "tpu.trace_stop"() : () -> ()
    %341 = arith.addf %340, %2 : vector<16x64xf32>
    %cst_154 = arith.constant dense<0xFF800000> : vector<16xf32>
    %342 = vector.multi_reduction <maximumf>, %341, %cst_154 [1] : vector<16x64xf32> to vector<16xf32>
    %343 = vector.shape_cast %342 : vector<16xf32> to vector<16x1xf32>
    %344 = vector.broadcast %343 : vector<16x1xf32> to vector<16x64xf32>
    %345 = arith.subf %341, %344 : vector<16x64xf32>
    %346 = math.exp %345 : vector<16x64xf32>
    %cst_155 = arith.constant dense<0.000000e+00> : vector<16x64xf32>
    %347 = tpu.matmul %346, %3, %cst_155 {dimension_numbers = #tpu.dot_dimension_numbers<[1], [0], [0], [1], [0, 0, 1, 1], [], []>} : vector<16x64xf32>, vector<64x64xf32>, vector<16x64xf32> -> vector<16x64xf32>
    %348 = tpu.reciprocal %347 {approx = true} : vector<16x64xf32> -> vector<16x64xf32>
    %349 = arith.mulf %346, %348 : vector<16x64xf32>
    %cst_156 = arith.constant dense<0.000000e+00> : vector<16x32xf32>
    %350 = tpu.matmul %349, %339, %cst_156 {dimension_numbers = #tpu.dot_dimension_numbers<[1], [0], [0], [1], [0, 0, 1, 1], [], []>} : vector<16x64xf32>, vector<64x32xf32>, vector<16x32xf32> -> vector<16x32xf32>
    %351 = arith.truncf %350 : vector<16x32xf32> to vector<16x32xbf16>
    %c3_157 = arith.constant 3 : index
    %c0_158 = arith.constant 0 : index
    %c0_159 = arith.constant 0 : index
    %352 = vector.load %arg3[%c3_157, %c0_158, %c0_159] : memref<6x32x32xbf16, #tpu.memory_space<vmem>>, vector<1x32x32xbf16>
    %353 = vector.shape_cast %352 : vector<1x32x32xbf16> to vector<32x32xbf16>
    %cst_160 = arith.constant dense<0.000000e+00> : vector<16x32xf32>
    %354 = tpu.matmul %351, %353, %cst_160 {dimension_numbers = #tpu.dot_dimension_numbers<[1], [0], [0], [1], [0, 0, 1, 1], [], []>} : vector<16x32xbf16>, vector<32x32xbf16>, vector<16x32xf32> -> vector<16x32xf32>
    %c3_161 = arith.constant 3 : index
    %c0_162 = arith.constant 0 : index
    %c0_163 = arith.constant 0 : index
    %355 = vector.load %arg4[%c3_161, %c0_162, %c0_163] : memref<6x1x32xf32, #tpu.memory_space<vmem>>, vector<1x1x32xf32>
    %356 = vector.shape_cast %355 : vector<1x1x32xf32> to vector<1x32xf32>
    %357 = vector.broadcast %356 : vector<1x32xf32> to vector<16x32xf32>
    %358 = arith.addf %354, %357 : vector<16x32xf32>
    %359 = arith.addf %306, %358 : vector<16x32xf32>
    %cst_164 = arith.constant dense<0.000000e+00> : vector<16xf32>
    %360 = vector.multi_reduction <add>, %359, %cst_164 [1] : vector<16x32xf32> to vector<16xf32>
    %361 = vector.shape_cast %360 : vector<16xf32> to vector<16x1xf32>
    %cst_165 = arith.constant 3.200000e+01 : f32
    %362 = vector.broadcast %cst_165 : f32 to vector<16x1xf32>
    %363 = arith.divf %361, %362 : vector<16x1xf32>
    %364 = vector.broadcast %363 : vector<16x1xf32> to vector<16x32xf32>
    %365 = arith.subf %359, %364 : vector<16x32xf32>
    %366 = arith.mulf %365, %365 : vector<16x32xf32>
    %cst_166 = arith.constant dense<0.000000e+00> : vector<16xf32>
    %367 = vector.multi_reduction <add>, %366, %cst_166 [1] : vector<16x32xf32> to vector<16xf32>
    %368 = vector.shape_cast %367 : vector<16xf32> to vector<16x1xf32>
    %cst_167 = arith.constant 3.200000e+01 : f32
    %369 = vector.broadcast %cst_167 : f32 to vector<16x1xf32>
    %370 = arith.divf %368, %369 : vector<16x1xf32>
    %371 = vector.broadcast %363 : vector<16x1xf32> to vector<16x32xf32>
    %372 = arith.subf %359, %371 : vector<16x32xf32>
    %cst_168 = arith.constant 9.99999974E-6 : f32
    %373 = vector.broadcast %cst_168 : f32 to vector<16x1xf32>
    %374 = arith.addf %370, %373 : vector<16x1xf32>
    %375 = math.rsqrt %374 : vector<16x1xf32>
    %376 = vector.broadcast %375 : vector<16x1xf32> to vector<16x32xf32>
    %377 = arith.mulf %372, %376 : vector<16x32xf32>
    %378 = arith.truncf %377 : vector<16x32xf32> to vector<16x32xbf16>
    %c3_169 = arith.constant 3 : index
    %c0_170 = arith.constant 0 : index
    %c0_171 = arith.constant 0 : index
    %379 = vector.load %arg5[%c3_169, %c0_170, %c0_171] : memref<6x32x128xbf16, #tpu.memory_space<vmem>>, vector<1x32x128xbf16>
    %380 = vector.shape_cast %379 : vector<1x32x128xbf16> to vector<32x128xbf16>
    %cst_172 = arith.constant dense<0.000000e+00> : vector<16x128xf32>
    %381 = tpu.matmul %378, %380, %cst_172 {dimension_numbers = #tpu.dot_dimension_numbers<[1], [0], [0], [1], [0, 0, 1, 1], [], []>} : vector<16x32xbf16>, vector<32x128xbf16>, vector<16x128xf32> -> vector<16x128xf32>
    %c3_173 = arith.constant 3 : index
    %c0_174 = arith.constant 0 : index
    %c0_175 = arith.constant 0 : index
    %382 = vector.load %arg6[%c3_173, %c0_174, %c0_175] : memref<6x1x128xf32, #tpu.memory_space<vmem>>, vector<1x1x128xf32>
    %383 = vector.shape_cast %382 : vector<1x1x128xf32> to vector<1x128xf32>
    %384 = vector.broadcast %383 : vector<1x128xf32> to vector<16x128xf32>
    %385 = arith.addf %381, %384 : vector<16x128xf32>
    %cst_176 = arith.constant 5.000000e-01 : f32
    %386 = vector.broadcast %cst_176 : f32 to vector<16x128xf32>
    %387 = arith.mulf %386, %385 : vector<16x128xf32>
    %cst_177 = arith.constant 4.471500e-02 : f32
    %388 = vector.broadcast %cst_177 : f32 to vector<16x128xf32>
    %389 = arith.mulf %388, %385 : vector<16x128xf32>
    %390 = arith.mulf %389, %385 : vector<16x128xf32>
    %391 = arith.mulf %390, %385 : vector<16x128xf32>
    %392 = arith.addf %385, %391 : vector<16x128xf32>
    %cst_178 = arith.constant 0.797884583 : f32
    %393 = vector.broadcast %cst_178 : f32 to vector<16x128xf32>
    %394 = arith.mulf %393, %392 : vector<16x128xf32>
    %395 = math.tanh %394 : vector<16x128xf32>
    %cst_179 = arith.constant 1.000000e+00 : f32
    %396 = vector.broadcast %cst_179 : f32 to vector<16x128xf32>
    %397 = arith.addf %396, %395 : vector<16x128xf32>
    %398 = arith.mulf %387, %397 : vector<16x128xf32>
    %399 = arith.truncf %398 : vector<16x128xf32> to vector<16x128xbf16>
    %c3_180 = arith.constant 3 : index
    %c0_181 = arith.constant 0 : index
    %c0_182 = arith.constant 0 : index
    %400 = vector.load %arg7[%c3_180, %c0_181, %c0_182] : memref<6x128x32xbf16, #tpu.memory_space<vmem>>, vector<1x128x32xbf16>
    %401 = vector.shape_cast %400 : vector<1x128x32xbf16> to vector<128x32xbf16>
    %cst_183 = arith.constant dense<0.000000e+00> : vector<16x32xf32>
    %402 = tpu.matmul %399, %401, %cst_183 {dimension_numbers = #tpu.dot_dimension_numbers<[1], [0], [0], [1], [0, 0, 1, 1], [], []>} : vector<16x128xbf16>, vector<128x32xbf16>, vector<16x32xf32> -> vector<16x32xf32>
    %c3_184 = arith.constant 3 : index
    %c0_185 = arith.constant 0 : index
    %c0_186 = arith.constant 0 : index
    %403 = vector.load %arg8[%c3_184, %c0_185, %c0_186] : memref<6x1x32xf32, #tpu.memory_space<vmem>>, vector<1x1x32xf32>
    %404 = vector.shape_cast %403 : vector<1x1x32xf32> to vector<1x32xf32>
    %405 = vector.broadcast %404 : vector<1x32xf32> to vector<16x32xf32>
    %406 = arith.addf %402, %405 : vector<16x32xf32>
    %407 = arith.addf %359, %406 : vector<16x32xf32>
    %cst_187 = arith.constant dense<0.000000e+00> : vector<16xf32>
    %408 = vector.multi_reduction <add>, %407, %cst_187 [1] : vector<16x32xf32> to vector<16xf32>
    %409 = vector.shape_cast %408 : vector<16xf32> to vector<16x1xf32>
    %cst_188 = arith.constant 3.200000e+01 : f32
    %410 = vector.broadcast %cst_188 : f32 to vector<16x1xf32>
    %411 = arith.divf %409, %410 : vector<16x1xf32>
    %412 = vector.broadcast %411 : vector<16x1xf32> to vector<16x32xf32>
    %413 = arith.subf %407, %412 : vector<16x32xf32>
    %414 = arith.mulf %413, %413 : vector<16x32xf32>
    %cst_189 = arith.constant dense<0.000000e+00> : vector<16xf32>
    %415 = vector.multi_reduction <add>, %414, %cst_189 [1] : vector<16x32xf32> to vector<16xf32>
    %416 = vector.shape_cast %415 : vector<16xf32> to vector<16x1xf32>
    %cst_190 = arith.constant 3.200000e+01 : f32
    %417 = vector.broadcast %cst_190 : f32 to vector<16x1xf32>
    %418 = arith.divf %416, %417 : vector<16x1xf32>
    %419 = vector.broadcast %411 : vector<16x1xf32> to vector<16x32xf32>
    %420 = arith.subf %407, %419 : vector<16x32xf32>
    %cst_191 = arith.constant 9.99999974E-6 : f32
    %421 = vector.broadcast %cst_191 : f32 to vector<16x1xf32>
    %422 = arith.addf %418, %421 : vector<16x1xf32>
    %423 = math.rsqrt %422 : vector<16x1xf32>
    %424 = vector.broadcast %423 : vector<16x1xf32> to vector<16x32xf32>
    %425 = arith.mulf %420, %424 : vector<16x32xf32>
    %426 = arith.truncf %425 : vector<16x32xf32> to vector<16x32xbf16>
    %c4 = arith.constant 4 : index
    %c0_192 = arith.constant 0 : index
    %c0_193 = arith.constant 0 : index
    %427 = vector.load %arg1[%c4, %c0_192, %c0_193] : memref<6x32x96xbf16, #tpu.memory_space<vmem>>, vector<1x32x96xbf16>
    %428 = vector.shape_cast %427 : vector<1x32x96xbf16> to vector<32x96xbf16>
    %cst_194 = arith.constant dense<0.000000e+00> : vector<16x96xf32>
    %429 = tpu.matmul %426, %428, %cst_194 {dimension_numbers = #tpu.dot_dimension_numbers<[1], [0], [0], [1], [0, 0, 1, 1], [], []>} : vector<16x32xbf16>, vector<32x96xbf16>, vector<16x96xf32> -> vector<16x96xf32>
    %c4_195 = arith.constant 4 : index
    %c0_196 = arith.constant 0 : index
    %c0_197 = arith.constant 0 : index
    %430 = vector.load %arg2[%c4_195, %c0_196, %c0_197] : memref<6x1x96xf32, #tpu.memory_space<vmem>>, vector<1x1x96xf32>
    %431 = vector.shape_cast %430 : vector<1x1x96xf32> to vector<1x96xf32>
    %432 = vector.broadcast %431 : vector<1x96xf32> to vector<16x96xf32>
    %433 = arith.addf %429, %432 : vector<16x96xf32>
    %434 = vector.extract_strided_slice %433 {offsets = [0, 0], sizes = [16, 32], strides = [1, 1]} : vector<16x96xf32> to vector<16x32xf32>
    %435 = vector.extract_strided_slice %433 {offsets = [0, 32], sizes = [16, 32], strides = [1, 1]} : vector<16x96xf32> to vector<16x32xf32>
    %436 = vector.extract_strided_slice %433 {offsets = [0, 64], sizes = [16, 32], strides = [1, 1]} : vector<16x96xf32> to vector<16x32xf32>
    %437 = tpu.concatenate %435, %435, %435, %435 in 0 : vector<16x32xf32>, vector<16x32xf32>, vector<16x32xf32>, vector<16x32xf32> -> vector<64x32xf32>
    %438 = arith.mulf %437, %1 : vector<64x32xf32>
    %439 = tpu.concatenate %436, %436, %436, %436 in 0 : vector<16x32xf32>, vector<16x32xf32>, vector<16x32xf32>, vector<16x32xf32> -> vector<64x32xf32>
    %440 = arith.mulf %439, %1 : vector<64x32xf32>
    "tpu.trace_start"() <{level = 10 : i32, message = "qd,kd->qk"}> : () -> ()
    %cst_198 = arith.constant dense<0.000000e+00> : vector<16x64xf32>
    %441 = tpu.matmul %434, %438, %cst_198 {dimension_numbers = #tpu.dot_dimension_numbers<[1], [1], [0], [0], [0, 0, 1, 0], [], []>} : vector<16x32xf32>, vector<64x32xf32>, vector<16x64xf32> -> vector<16x64xf32>
    "tpu.trace_stop"() : () -> ()
    %442 = arith.addf %441, %2 : vector<16x64xf32>
    %cst_199 = arith.constant dense<0xFF800000> : vector<16xf32>
    %443 = vector.multi_reduction <maximumf>, %442, %cst_199 [1] : vector<16x64xf32> to vector<16xf32>
    %444 = vector.shape_cast %443 : vector<16xf32> to vector<16x1xf32>
    %445 = vector.broadcast %444 : vector<16x1xf32> to vector<16x64xf32>
    %446 = arith.subf %442, %445 : vector<16x64xf32>
    %447 = math.exp %446 : vector<16x64xf32>
    %cst_200 = arith.constant dense<0.000000e+00> : vector<16x64xf32>
    %448 = tpu.matmul %447, %3, %cst_200 {dimension_numbers = #tpu.dot_dimension_numbers<[1], [0], [0], [1], [0, 0, 1, 1], [], []>} : vector<16x64xf32>, vector<64x64xf32>, vector<16x64xf32> -> vector<16x64xf32>
    %449 = tpu.reciprocal %448 {approx = true} : vector<16x64xf32> -> vector<16x64xf32>
    %450 = arith.mulf %447, %449 : vector<16x64xf32>
    %cst_201 = arith.constant dense<0.000000e+00> : vector<16x32xf32>
    %451 = tpu.matmul %450, %440, %cst_201 {dimension_numbers = #tpu.dot_dimension_numbers<[1], [0], [0], [1], [0, 0, 1, 1], [], []>} : vector<16x64xf32>, vector<64x32xf32>, vector<16x32xf32> -> vector<16x32xf32>
    %452 = arith.truncf %451 : vector<16x32xf32> to vector<16x32xbf16>
    %c4_202 = arith.constant 4 : index
    %c0_203 = arith.constant 0 : index
    %c0_204 = arith.constant 0 : index
    %453 = vector.load %arg3[%c4_202, %c0_203, %c0_204] : memref<6x32x32xbf16, #tpu.memory_space<vmem>>, vector<1x32x32xbf16>
    %454 = vector.shape_cast %453 : vector<1x32x32xbf16> to vector<32x32xbf16>
    %cst_205 = arith.constant dense<0.000000e+00> : vector<16x32xf32>
    %455 = tpu.matmul %452, %454, %cst_205 {dimension_numbers = #tpu.dot_dimension_numbers<[1], [0], [0], [1], [0, 0, 1, 1], [], []>} : vector<16x32xbf16>, vector<32x32xbf16>, vector<16x32xf32> -> vector<16x32xf32>
    %c4_206 = arith.constant 4 : index
    %c0_207 = arith.constant 0 : index
    %c0_208 = arith.constant 0 : index
    %456 = vector.load %arg4[%c4_206, %c0_207, %c0_208] : memref<6x1x32xf32, #tpu.memory_space<vmem>>, vector<1x1x32xf32>
    %457 = vector.shape_cast %456 : vector<1x1x32xf32> to vector<1x32xf32>
    %458 = vector.broadcast %457 : vector<1x32xf32> to vector<16x32xf32>
    %459 = arith.addf %455, %458 : vector<16x32xf32>
    %460 = arith.addf %407, %459 : vector<16x32xf32>
    %cst_209 = arith.constant dense<0.000000e+00> : vector<16xf32>
    %461 = vector.multi_reduction <add>, %460, %cst_209 [1] : vector<16x32xf32> to vector<16xf32>
    %462 = vector.shape_cast %461 : vector<16xf32> to vector<16x1xf32>
    %cst_210 = arith.constant 3.200000e+01 : f32
    %463 = vector.broadcast %cst_210 : f32 to vector<16x1xf32>
    %464 = arith.divf %462, %463 : vector<16x1xf32>
    %465 = vector.broadcast %464 : vector<16x1xf32> to vector<16x32xf32>
    %466 = arith.subf %460, %465 : vector<16x32xf32>
    %467 = arith.mulf %466, %466 : vector<16x32xf32>
    %cst_211 = arith.constant dense<0.000000e+00> : vector<16xf32>
    %468 = vector.multi_reduction <add>, %467, %cst_211 [1] : vector<16x32xf32> to vector<16xf32>
    %469 = vector.shape_cast %468 : vector<16xf32> to vector<16x1xf32>
    %cst_212 = arith.constant 3.200000e+01 : f32
    %470 = vector.broadcast %cst_212 : f32 to vector<16x1xf32>
    %471 = arith.divf %469, %470 : vector<16x1xf32>
    %472 = vector.broadcast %464 : vector<16x1xf32> to vector<16x32xf32>
    %473 = arith.subf %460, %472 : vector<16x32xf32>
    %cst_213 = arith.constant 9.99999974E-6 : f32
    %474 = vector.broadcast %cst_213 : f32 to vector<16x1xf32>
    %475 = arith.addf %471, %474 : vector<16x1xf32>
    %476 = math.rsqrt %475 : vector<16x1xf32>
    %477 = vector.broadcast %476 : vector<16x1xf32> to vector<16x32xf32>
    %478 = arith.mulf %473, %477 : vector<16x32xf32>
    %479 = arith.truncf %478 : vector<16x32xf32> to vector<16x32xbf16>
    %c4_214 = arith.constant 4 : index
    %c0_215 = arith.constant 0 : index
    %c0_216 = arith.constant 0 : index
    %480 = vector.load %arg5[%c4_214, %c0_215, %c0_216] : memref<6x32x128xbf16, #tpu.memory_space<vmem>>, vector<1x32x128xbf16>
    %481 = vector.shape_cast %480 : vector<1x32x128xbf16> to vector<32x128xbf16>
    %cst_217 = arith.constant dense<0.000000e+00> : vector<16x128xf32>
    %482 = tpu.matmul %479, %481, %cst_217 {dimension_numbers = #tpu.dot_dimension_numbers<[1], [0], [0], [1], [0, 0, 1, 1], [], []>} : vector<16x32xbf16>, vector<32x128xbf16>, vector<16x128xf32> -> vector<16x128xf32>
    %c4_218 = arith.constant 4 : index
    %c0_219 = arith.constant 0 : index
    %c0_220 = arith.constant 0 : index
    %483 = vector.load %arg6[%c4_218, %c0_219, %c0_220] : memref<6x1x128xf32, #tpu.memory_space<vmem>>, vector<1x1x128xf32>
    %484 = vector.shape_cast %483 : vector<1x1x128xf32> to vector<1x128xf32>
    %485 = vector.broadcast %484 : vector<1x128xf32> to vector<16x128xf32>
    %486 = arith.addf %482, %485 : vector<16x128xf32>
    %cst_221 = arith.constant 5.000000e-01 : f32
    %487 = vector.broadcast %cst_221 : f32 to vector<16x128xf32>
    %488 = arith.mulf %487, %486 : vector<16x128xf32>
    %cst_222 = arith.constant 4.471500e-02 : f32
    %489 = vector.broadcast %cst_222 : f32 to vector<16x128xf32>
    %490 = arith.mulf %489, %486 : vector<16x128xf32>
    %491 = arith.mulf %490, %486 : vector<16x128xf32>
    %492 = arith.mulf %491, %486 : vector<16x128xf32>
    %493 = arith.addf %486, %492 : vector<16x128xf32>
    %cst_223 = arith.constant 0.797884583 : f32
    %494 = vector.broadcast %cst_223 : f32 to vector<16x128xf32>
    %495 = arith.mulf %494, %493 : vector<16x128xf32>
    %496 = math.tanh %495 : vector<16x128xf32>
    %cst_224 = arith.constant 1.000000e+00 : f32
    %497 = vector.broadcast %cst_224 : f32 to vector<16x128xf32>
    %498 = arith.addf %497, %496 : vector<16x128xf32>
    %499 = arith.mulf %488, %498 : vector<16x128xf32>
    %500 = arith.truncf %499 : vector<16x128xf32> to vector<16x128xbf16>
    %c4_225 = arith.constant 4 : index
    %c0_226 = arith.constant 0 : index
    %c0_227 = arith.constant 0 : index
    %501 = vector.load %arg7[%c4_225, %c0_226, %c0_227] : memref<6x128x32xbf16, #tpu.memory_space<vmem>>, vector<1x128x32xbf16>
    %502 = vector.shape_cast %501 : vector<1x128x32xbf16> to vector<128x32xbf16>
    %cst_228 = arith.constant dense<0.000000e+00> : vector<16x32xf32>
    %503 = tpu.matmul %500, %502, %cst_228 {dimension_numbers = #tpu.dot_dimension_numbers<[1], [0], [0], [1], [0, 0, 1, 1], [], []>} : vector<16x128xbf16>, vector<128x32xbf16>, vector<16x32xf32> -> vector<16x32xf32>
    %c4_229 = arith.constant 4 : index
    %c0_230 = arith.constant 0 : index
    %c0_231 = arith.constant 0 : index
    %504 = vector.load %arg8[%c4_229, %c0_230, %c0_231] : memref<6x1x32xf32, #tpu.memory_space<vmem>>, vector<1x1x32xf32>
    %505 = vector.shape_cast %504 : vector<1x1x32xf32> to vector<1x32xf32>
    %506 = vector.broadcast %505 : vector<1x32xf32> to vector<16x32xf32>
    %507 = arith.addf %503, %506 : vector<16x32xf32>
    %508 = arith.addf %460, %507 : vector<16x32xf32>
    %cst_232 = arith.constant dense<0.000000e+00> : vector<16xf32>
    %509 = vector.multi_reduction <add>, %508, %cst_232 [1] : vector<16x32xf32> to vector<16xf32>
    %510 = vector.shape_cast %509 : vector<16xf32> to vector<16x1xf32>
    %cst_233 = arith.constant 3.200000e+01 : f32
    %511 = vector.broadcast %cst_233 : f32 to vector<16x1xf32>
    %512 = arith.divf %510, %511 : vector<16x1xf32>
    %513 = vector.broadcast %512 : vector<16x1xf32> to vector<16x32xf32>
    %514 = arith.subf %508, %513 : vector<16x32xf32>
    %515 = arith.mulf %514, %514 : vector<16x32xf32>
    %cst_234 = arith.constant dense<0.000000e+00> : vector<16xf32>
    %516 = vector.multi_reduction <add>, %515, %cst_234 [1] : vector<16x32xf32> to vector<16xf32>
    %517 = vector.shape_cast %516 : vector<16xf32> to vector<16x1xf32>
    %cst_235 = arith.constant 3.200000e+01 : f32
    %518 = vector.broadcast %cst_235 : f32 to vector<16x1xf32>
    %519 = arith.divf %517, %518 : vector<16x1xf32>
    %520 = vector.broadcast %512 : vector<16x1xf32> to vector<16x32xf32>
    %521 = arith.subf %508, %520 : vector<16x32xf32>
    %cst_236 = arith.constant 9.99999974E-6 : f32
    %522 = vector.broadcast %cst_236 : f32 to vector<16x1xf32>
    %523 = arith.addf %519, %522 : vector<16x1xf32>
    %524 = math.rsqrt %523 : vector<16x1xf32>
    %525 = vector.broadcast %524 : vector<16x1xf32> to vector<16x32xf32>
    %526 = arith.mulf %521, %525 : vector<16x32xf32>
    %527 = arith.truncf %526 : vector<16x32xf32> to vector<16x32xbf16>
    %c5 = arith.constant 5 : index
    %c0_237 = arith.constant 0 : index
    %c0_238 = arith.constant 0 : index
    %528 = vector.load %arg1[%c5, %c0_237, %c0_238] : memref<6x32x96xbf16, #tpu.memory_space<vmem>>, vector<1x32x96xbf16>
    %529 = vector.shape_cast %528 : vector<1x32x96xbf16> to vector<32x96xbf16>
    %cst_239 = arith.constant dense<0.000000e+00> : vector<16x96xf32>
    %530 = tpu.matmul %527, %529, %cst_239 {dimension_numbers = #tpu.dot_dimension_numbers<[1], [0], [0], [1], [0, 0, 1, 1], [], []>} : vector<16x32xbf16>, vector<32x96xbf16>, vector<16x96xf32> -> vector<16x96xf32>
    %c5_240 = arith.constant 5 : index
    %c0_241 = arith.constant 0 : index
    %c0_242 = arith.constant 0 : index
    %531 = vector.load %arg2[%c5_240, %c0_241, %c0_242] : memref<6x1x96xf32, #tpu.memory_space<vmem>>, vector<1x1x96xf32>
    %532 = vector.shape_cast %531 : vector<1x1x96xf32> to vector<1x96xf32>
    %533 = vector.broadcast %532 : vector<1x96xf32> to vector<16x96xf32>
    %534 = arith.addf %530, %533 : vector<16x96xf32>
    %535 = vector.extract_strided_slice %534 {offsets = [0, 0], sizes = [16, 32], strides = [1, 1]} : vector<16x96xf32> to vector<16x32xf32>
    %536 = vector.extract_strided_slice %534 {offsets = [0, 32], sizes = [16, 32], strides = [1, 1]} : vector<16x96xf32> to vector<16x32xf32>
    %537 = vector.extract_strided_slice %534 {offsets = [0, 64], sizes = [16, 32], strides = [1, 1]} : vector<16x96xf32> to vector<16x32xf32>
    %538 = tpu.concatenate %536, %536, %536, %536 in 0 : vector<16x32xf32>, vector<16x32xf32>, vector<16x32xf32>, vector<16x32xf32> -> vector<64x32xf32>
    %539 = arith.mulf %538, %1 : vector<64x32xf32>
    %540 = tpu.concatenate %537, %537, %537, %537 in 0 : vector<16x32xf32>, vector<16x32xf32>, vector<16x32xf32>, vector<16x32xf32> -> vector<64x32xf32>
    %541 = arith.mulf %540, %1 : vector<64x32xf32>
    "tpu.trace_start"() <{level = 10 : i32, message = "qd,kd->qk"}> : () -> ()
    %cst_243 = arith.constant dense<0.000000e+00> : vector<16x64xf32>
    %542 = tpu.matmul %535, %539, %cst_243 {dimension_numbers = #tpu.dot_dimension_numbers<[1], [1], [0], [0], [0, 0, 1, 0], [], []>} : vector<16x32xf32>, vector<64x32xf32>, vector<16x64xf32> -> vector<16x64xf32>
    "tpu.trace_stop"() : () -> ()
    %543 = arith.addf %542, %2 : vector<16x64xf32>
    %cst_244 = arith.constant dense<0xFF800000> : vector<16xf32>
    %544 = vector.multi_reduction <maximumf>, %543, %cst_244 [1] : vector<16x64xf32> to vector<16xf32>
    %545 = vector.shape_cast %544 : vector<16xf32> to vector<16x1xf32>
    %546 = vector.broadcast %545 : vector<16x1xf32> to vector<16x64xf32>
    %547 = arith.subf %543, %546 : vector<16x64xf32>
    %548 = math.exp %547 : vector<16x64xf32>
    %cst_245 = arith.constant dense<0.000000e+00> : vector<16x64xf32>
    %549 = tpu.matmul %548, %3, %cst_245 {dimension_numbers = #tpu.dot_dimension_numbers<[1], [0], [0], [1], [0, 0, 1, 1], [], []>} : vector<16x64xf32>, vector<64x64xf32>, vector<16x64xf32> -> vector<16x64xf32>
    %550 = tpu.reciprocal %549 {approx = true} : vector<16x64xf32> -> vector<16x64xf32>
    %551 = arith.mulf %548, %550 : vector<16x64xf32>
    %cst_246 = arith.constant dense<0.000000e+00> : vector<16x32xf32>
    %552 = tpu.matmul %551, %541, %cst_246 {dimension_numbers = #tpu.dot_dimension_numbers<[1], [0], [0], [1], [0, 0, 1, 1], [], []>} : vector<16x64xf32>, vector<64x32xf32>, vector<16x32xf32> -> vector<16x32xf32>
    %553 = arith.truncf %552 : vector<16x32xf32> to vector<16x32xbf16>
    %c5_247 = arith.constant 5 : index
    %c0_248 = arith.constant 0 : index
    %c0_249 = arith.constant 0 : index
    %554 = vector.load %arg3[%c5_247, %c0_248, %c0_249] : memref<6x32x32xbf16, #tpu.memory_space<vmem>>, vector<1x32x32xbf16>
    %555 = vector.shape_cast %554 : vector<1x32x32xbf16> to vector<32x32xbf16>
    %cst_250 = arith.constant dense<0.000000e+00> : vector<16x32xf32>
    %556 = tpu.matmul %553, %555, %cst_250 {dimension_numbers = #tpu.dot_dimension_numbers<[1], [0], [0], [1], [0, 0, 1, 1], [], []>} : vector<16x32xbf16>, vector<32x32xbf16>, vector<16x32xf32> -> vector<16x32xf32>
    %c5_251 = arith.constant 5 : index
    %c0_252 = arith.constant 0 : index
    %c0_253 = arith.constant 0 : index
    %557 = vector.load %arg4[%c5_251, %c0_252, %c0_253] : memref<6x1x32xf32, #tpu.memory_space<vmem>>, vector<1x1x32xf32>
    %558 = vector.shape_cast %557 : vector<1x1x32xf32> to vector<1x32xf32>
    %559 = vector.broadcast %558 : vector<1x32xf32> to vector<16x32xf32>
    %560 = arith.addf %556, %559 : vector<16x32xf32>
    %561 = arith.addf %508, %560 : vector<16x32xf32>
    %cst_254 = arith.constant dense<0.000000e+00> : vector<16xf32>
    %562 = vector.multi_reduction <add>, %561, %cst_254 [1] : vector<16x32xf32> to vector<16xf32>
    %563 = vector.shape_cast %562 : vector<16xf32> to vector<16x1xf32>
    %cst_255 = arith.constant 3.200000e+01 : f32
    %564 = vector.broadcast %cst_255 : f32 to vector<16x1xf32>
    %565 = arith.divf %563, %564 : vector<16x1xf32>
    %566 = vector.broadcast %565 : vector<16x1xf32> to vector<16x32xf32>
    %567 = arith.subf %561, %566 : vector<16x32xf32>
    %568 = arith.mulf %567, %567 : vector<16x32xf32>
    %cst_256 = arith.constant dense<0.000000e+00> : vector<16xf32>
    %569 = vector.multi_reduction <add>, %568, %cst_256 [1] : vector<16x32xf32> to vector<16xf32>
    %570 = vector.shape_cast %569 : vector<16xf32> to vector<16x1xf32>
    %cst_257 = arith.constant 3.200000e+01 : f32
    %571 = vector.broadcast %cst_257 : f32 to vector<16x1xf32>
    %572 = arith.divf %570, %571 : vector<16x1xf32>
    %573 = vector.broadcast %565 : vector<16x1xf32> to vector<16x32xf32>
    %574 = arith.subf %561, %573 : vector<16x32xf32>
    %cst_258 = arith.constant 9.99999974E-6 : f32
    %575 = vector.broadcast %cst_258 : f32 to vector<16x1xf32>
    %576 = arith.addf %572, %575 : vector<16x1xf32>
    %577 = math.rsqrt %576 : vector<16x1xf32>
    %578 = vector.broadcast %577 : vector<16x1xf32> to vector<16x32xf32>
    %579 = arith.mulf %574, %578 : vector<16x32xf32>
    %580 = arith.truncf %579 : vector<16x32xf32> to vector<16x32xbf16>
    %c5_259 = arith.constant 5 : index
    %c0_260 = arith.constant 0 : index
    %c0_261 = arith.constant 0 : index
    %581 = vector.load %arg5[%c5_259, %c0_260, %c0_261] : memref<6x32x128xbf16, #tpu.memory_space<vmem>>, vector<1x32x128xbf16>
    %582 = vector.shape_cast %581 : vector<1x32x128xbf16> to vector<32x128xbf16>
    %cst_262 = arith.constant dense<0.000000e+00> : vector<16x128xf32>
    %583 = tpu.matmul %580, %582, %cst_262 {dimension_numbers = #tpu.dot_dimension_numbers<[1], [0], [0], [1], [0, 0, 1, 1], [], []>} : vector<16x32xbf16>, vector<32x128xbf16>, vector<16x128xf32> -> vector<16x128xf32>
    %c5_263 = arith.constant 5 : index
    %c0_264 = arith.constant 0 : index
    %c0_265 = arith.constant 0 : index
    %584 = vector.load %arg6[%c5_263, %c0_264, %c0_265] : memref<6x1x128xf32, #tpu.memory_space<vmem>>, vector<1x1x128xf32>
    %585 = vector.shape_cast %584 : vector<1x1x128xf32> to vector<1x128xf32>
    %586 = vector.broadcast %585 : vector<1x128xf32> to vector<16x128xf32>
    %587 = arith.addf %583, %586 : vector<16x128xf32>
    %cst_266 = arith.constant 5.000000e-01 : f32
    %588 = vector.broadcast %cst_266 : f32 to vector<16x128xf32>
    %589 = arith.mulf %588, %587 : vector<16x128xf32>
    %cst_267 = arith.constant 4.471500e-02 : f32
    %590 = vector.broadcast %cst_267 : f32 to vector<16x128xf32>
    %591 = arith.mulf %590, %587 : vector<16x128xf32>
    %592 = arith.mulf %591, %587 : vector<16x128xf32>
    %593 = arith.mulf %592, %587 : vector<16x128xf32>
    %594 = arith.addf %587, %593 : vector<16x128xf32>
    %cst_268 = arith.constant 0.797884583 : f32
    %595 = vector.broadcast %cst_268 : f32 to vector<16x128xf32>
    %596 = arith.mulf %595, %594 : vector<16x128xf32>
    %597 = math.tanh %596 : vector<16x128xf32>
    %cst_269 = arith.constant 1.000000e+00 : f32
    %598 = vector.broadcast %cst_269 : f32 to vector<16x128xf32>
    %599 = arith.addf %598, %597 : vector<16x128xf32>
    %600 = arith.mulf %589, %599 : vector<16x128xf32>
    %601 = arith.truncf %600 : vector<16x128xf32> to vector<16x128xbf16>
    %c5_270 = arith.constant 5 : index
    %c0_271 = arith.constant 0 : index
    %c0_272 = arith.constant 0 : index
    %602 = vector.load %arg7[%c5_270, %c0_271, %c0_272] : memref<6x128x32xbf16, #tpu.memory_space<vmem>>, vector<1x128x32xbf16>
    %603 = vector.shape_cast %602 : vector<1x128x32xbf16> to vector<128x32xbf16>
    %cst_273 = arith.constant dense<0.000000e+00> : vector<16x32xf32>
    %604 = tpu.matmul %601, %603, %cst_273 {dimension_numbers = #tpu.dot_dimension_numbers<[1], [0], [0], [1], [0, 0, 1, 1], [], []>} : vector<16x128xbf16>, vector<128x32xbf16>, vector<16x32xf32> -> vector<16x32xf32>
    %c5_274 = arith.constant 5 : index
    %c0_275 = arith.constant 0 : index
    %c0_276 = arith.constant 0 : index
    %605 = vector.load %arg8[%c5_274, %c0_275, %c0_276] : memref<6x1x32xf32, #tpu.memory_space<vmem>>, vector<1x1x32xf32>
    %606 = vector.shape_cast %605 : vector<1x1x32xf32> to vector<1x32xf32>
    %607 = vector.broadcast %606 : vector<1x32xf32> to vector<16x32xf32>
    %608 = arith.addf %604, %607 : vector<16x32xf32>
    %609 = arith.addf %561, %608 : vector<16x32xf32>
    %c0_277 = arith.constant 0 : index
    %c0_278 = arith.constant 0 : index
    %610 = vector.load %arg12[%c0_277, %c0_278] : memref<16x32xf32, #tpu.memory_space<vmem>>, vector<16x32xf32>
    tpu.vector_store %arg12[%c0_277, %c0_278], %609 {strides = array<i32>} : memref<16x32xf32, #tpu.memory_space<vmem>>, vector<16x32xf32>,
    return
  }
}

</mosaic_0001>

<bundles_post_ra>
// kernel: client_forward.1
= control target key start
LH: loop header
LB: loop body
LE: loop exit
PB: predicated region body
PF: predicated region fallthrough
CT: control target
= control target key end

     0   :  { %vm63_vm0 = vcmask 261120   ;;  %s7642_s0 = inlined_call_operand.vmem [shape: f32[16,32], index: 0, kind: input, shape index: {}]   ;;  %s7643_s1 = inlined_call_operand.vmem [shape: bf16[6,32,96], index: 1, kind: input, shape index: {}]   ;;  %s7644_s2 = inlined_call_operand.vmem [shape: f32[6,1,96], index: 2, kind: input, shape index: {}]   ;;  %s7645_s3 = inlined_call_operand.vmem [shape: bf16[6,32,32], index: 3, kind: input, shape index: {}]   ;;  %s7646_s4 = inlined_call_operand.vmem [shape: f32[6,1,32], index: 4, kind: input, shape index: {}]   ;;  %s7647_s5 = inlined_call_operand.vmem [shape: bf16[6,32,128], index: 5, kind: input, shape index: {}]   ;;  %s7648_s6 = inlined_call_operand.vmem [shape: f32[6,1,128], index: 6, kind: input, shape index: {}]   ;;  %s7649_s7 = inlined_call_operand.vmem [shape: bf16[6,128,32], index: 7, kind: input, shape index: {}]   ;;  %s7650_s8 = inlined_call_operand.vmem [shape: f32[6,1,32], index: 8, kind: input, shape index: {}]   ;;  %s7651_s9 = inlined_call_operand.vmem [shape: f32[64,32], index: 9, kind: input, shape index: {}]   ;;  %s7652_s10 = inlined_call_operand.vmem [shape: f32[16,64], index: 10, kind: input, shape index: {}]   ;;  %s7653_s11 = inlined_call_operand.vmem [shape: f32[64,64], index: 11, kind: input, shape index: {}]   ;;  %s7654_s12 = inlined_call_operand.hbm [shape: f32[16,32], index: 12, kind: output, shape index: {}]  }
   0x1   :  { %v6202_v0 = vld [vmem:[%s7642_s0] sm:$0xff]  ;;  %v6207_v1 = vld [vmem:[%s7642_s0 + $0x8] sm:$0xff] }
   0x2   :  { %v64_v2 = vsel %vm63_vm0, %v6202_v0, 0.0  ;;  %v67_v3 = vsel %vm63_vm0, %v6207_v1, 0.0 }
   0x3   :  { %65 = vadd.xlane.f32.xlu0 %v64_v2 }
   0x7   :  { %68 = vadd.xlane.f32.xlu0 %v67_v3 }
   0x8   :  { %17 = vsyncpa [#allocation3], 0  ;;  %v5880_v14 = vld [vmem:[%s7643_s1 + $0x8] sm:$0xff]   ;;  %v6126_v15 = vmov 0.0   ;;  %vm6127_vm1 = vmmov 0   ;;  %v5881_v16 = vld [vmem:[%s7643_s1] sm:$0xff]  }
   0x9   :  { %5266 = vmatprep.subr.bf16.mxu0 %v6126_v15  ;;  %5270 = vmatprep.mubr.msk.bf16.mxu0 %vm6127_vm1, %v6126_v15  ;;  %v6230_v17 = vld [vmem:[%s7651_s9 + $0x30] sm:$0xff]  ;;  %s6128_s30 = smov 32   ;;  %v6236_v18 = vld [vmem:[%s7651_s9 + $0x38] sm:$0xff]  ;;  %v6241_v19 = vld [vmem:[%s7651_s9 + $0x28] sm:$0xff]  ;;  %s6129_s27 = smov 96   ;;  %vm352_vm2 = vcmask 523264  }
   0xa   :  { %5267 = vmatpush3.bf16.msra.mxu0 %v5880_v14  ;;  %v6247_v20 = vld [vmem:[%s7651_s9 + $0x18] sm:$0xff]  ;;  %v6253_v21 = vld [vmem:[%s7651_s9 + $0x20] sm:$0xff]  ;;  %v6259_v22 = vld [vmem:[%s7651_s9 + $0x8] sm:$0xff]  ;;  %s6130_s18 = smov 64  }
   0xb   :  { %5268 = vmatprep.subr.bf16.mxu0 %v6126_v15  ;;  %v6265_v23 = vld [vmem:[%s7651_s9 + $0x10] sm:$0xff]  ;;  %v6272_v24 = vld [vmem:[%s7651_s9] sm:$0xff] }
   0xc   :  { %v4608_v38 = vld [vmem:[%s7644_s2] ss:$0 sm:$0xff]  ;;  %v6367_v14 = vld [vmem:[%s7653_s11 + $0x30] sm:$0xff] }
   0xe   :  { %5269 = vmatpush3.bf16.msra.mxu0 %v5881_v16  ;;  %v6376_v16 = vld [vmem:[%s7653_s11 + $0x28] sm:$0xff] }
  0x1d   :  { %181 = vrot.lane.b32.xlu0 %v6236_v18, %s6128_s30 }
  0x21   :  { %173 = vrot.lane.b32.xlu0 %v6247_v20, %s6128_s30 }
  0x25   :  { %169 = vrot.lane.b32.xlu0 %v6259_v22, %s6128_s30 }
  0x8c   :  { %v66_v4 = vpop.xlane.xlu0 %65 }
  0x8d   :  { %v71_v5 = vmul.f32 0.03125, %v66_v4 }
  0x8f   :  { %v73_v6 = vsub.f32 %v6202_v0, %v71_v5  ;;  %v6346_v5 = vld [vmem:[%s7652_s10 + $0x8] sm:$0xff] }
  0x90   :  { %v69_v7 = vpop.xlane.xlu0 %68 }
  0x91   :  { %v72_v8 = vmul.f32 0.03125, %v69_v7  ;;  %v75_v9 = vmul.f32 %v73_v6, %v73_v6  ;;  %v6351_v7 = vld [vmem:[%s7652_s10] sm:$0xff] }
  0x93   :  { %v74_v10 = vsub.f32 %v6207_v1, %v72_v8  ;;  %v77_v11 = vsel %vm63_vm0, %v75_v9, 0.0 }
  0x94   :  { %78 = vadd.xlane.f32.xlu1 %v77_v11  ;;  %v6291_v44 = vpop.permute.xlu0 %181 }
  0x95   :  { %v76_v12 = vmul.f32 %v74_v10, %v74_v10 }
  0x97   :  { %v80_v13 = vsel %vm63_vm0, %v76_v12, 0.0 }
  0x98   :  { %81 = vadd.xlane.f32.xlu1 %v80_v13  ;;  %v6304_v51 = vpop.permute.xlu0 %173  ;;  %v6360_v13 = vld [vmem:[%s7653_s11 + $0x38] sm:$0xff] }
  0x9c   :  { %v6318_v57 = vpop.permute.xlu0 %169 }
  0xa9   :  { %179 = vrot.lane.b32.xlu1 %v6230_v17, %s6128_s30 }
  0xad   :  { %177 = vrot.lane.b32.xlu1 %v6241_v19, %s6128_s30 }
  0xb1   :  { %175 = vrot.lane.b32.xlu1 %v6253_v21, %s6128_s30 }
  0xb5   :  { %171 = vrot.lane.b32.xlu1 %v6265_v23, %s6128_s30 }
  0xb9   :  { %167 = vrot.lane.b32.xlu1 %v6272_v24, %s6128_s30 }
 0x11d   :  { %v79_v25 = vpop.xlane.xlu1 %78 }
 0x11e   :  { %v83_v26 = vmul.f32 0.03125, %v79_v25  ;;  %v6383_v25 = vld [vmem:[%s7653_s11 + $0x20] sm:$0xff] }
 0x120   :  { %v85_v27 = vadd.f32 1e-05, %v83_v26  ;;  %v6410_v26 = vld [vmem:[%s7653_s11 + $0x8] sm:$0xff] }
 0x121   :  { %v82_v28 = vpop.xlane.xlu1 %81 }
 0x122   :  { %v84_v29 = vmul.f32 0.03125, %v82_v28  ;;  %5964 = vrsqrt.f32 %v85_v27 }
 0x124   :  { %v86_v30 = vadd.f32 1e-05, %v84_v29 }
 0x125   :  { %v6276_v36 = vpop.permute.xlu1 %179 }
 0x126   :  { %5966 = vrsqrt.f32 %v86_v30 }
 0x129   :  { %v6278_v37 = vpop.permute.xlu1 %177 }
 0x12d   :  { %v6283_v39 = vpop.permute.xlu1 %175 }
 0x12f   :  { %v5965_v31 = vpop.eup %5964 }
 0x130   :  { %v89_v33 = vmul.f32 %v5965_v31, %v73_v6 }
 0x131   :  { %v6296_v47 = vpop.permute.xlu1 %171 }
 0x133   :  { %v5967_v32 = vpop.eup %5966 }
 0x134   :  { %v90_v34 = vmul.f32 %v5967_v32, %v74_v10 }
 0x135   :  { %v6310_v54 = vpop.permute.xlu1 %167 }
 0x136   :  { %v91_v35 = vpack.c.bf16 %v90_v34, %v89_v33 }
 0x138   :  { %5271 = vmatmul.mubr.msk.bf16.vlgmr.msra.gmra.mxu0 %vm63_vm0, %v91_v35 }
 0x1f8   :  { %v152_v40 = vpop.f32.mrf.mxu0 }
 0x1f9   :  { %v6285_v41 = vadd.f32 %v4608_v38, %v152_v40 }
 0x1fa   :  { %v5272_v42 = vpop.f32.mrf.mxu0 }
 0x1fb   :  { %5290 = vmatprep.mubr.msk.f32.mxu1 %vm63_vm0, %v6285_v41  ;;  %v197_v43 = vmul.f32 %v6276_v36, %v6285_v41  ;;  %v195_v49 = vmul.f32 %v6283_v39, %v6285_v41  ;;  %v193_v52 = vmul.f32 %v6296_v47, %v6285_v41  ;;  %v191_v55 = vmul.f32 %v6310_v54, %v6285_v41 }
 0x1fc   :  { %v155_v45 = vpop.f32.mrf.mxu0 }
 0x1fd   :  { %v6293_v46 = vadd.f32 %v4608_v38, %v155_v45  ;;  %251 = vrot.lane.b32.xlu1 %v197_v43, %s6129_s27 }
 0x1fe   :  { %v5273_v48 = vpop.f32.mrf.mxu0 }
 0x1ff   :  { %v198_v50 = vmul.f32 %v6291_v44, %v6293_v46  ;;  %v196_v53 = vmul.f32 %v6278_v37, %v6293_v46  ;;  %v194_v56 = vmul.f32 %v6304_v51, %v6293_v46  ;;  %v192_v58 = vmul.f32 %v6318_v57, %v6293_v46 }
 0x201   :  { %247 = vrot.lane.b32.xlu1 %v195_v49, %s6129_s27  ;;  %253 = vrot.lane.b32.xlu0 %v198_v50, %s6129_s27 }
 0x205   :  { %243 = vrot.lane.b32.xlu1 %v193_v52, %s6129_s27  ;;  %249 = vrot.lane.b32.xlu0 %v196_v53, %s6129_s27 }
 0x209   :  { %239 = vrot.lane.b32.xlu1 %v191_v55, %s6129_s27  ;;  %245 = vrot.lane.b32.xlu0 %v194_v56, %s6129_s27 }
 0x20d   :  { %241 = vrot.lane.b32.xlu0 %v192_v58, %s6129_s27 }
 0x26f   :  { %v252_v60 = vpop.permute.xlu1 %251 }
 0x273   :  { %v254_v59 = vpop.permute.xlu0 %253  ;;  %v248_v62 = vpop.permute.xlu1 %247 }
 0x274   :  { %5274 = vmatprep.subr.msk.mxu1 %vm63_vm0, %v254_v59 }
 0x275   :  { %5275 = vmatpush3.xpose.msk.msra.mxu1 %vm63_vm0, %v254_v59 }
 0x276   :  { %5276 = vmatprep.subr.msk.mxu1 %vm63_vm0, %v252_v60 }
 0x277   :  { %v250_v61 = vpop.permute.xlu0 %249  ;;  %v244_v2 = vpop.permute.xlu1 %243 }
 0x279   :  { %5277 = vmatpush3.xpose.msk.msra.mxu1 %vm63_vm0, %v252_v60 }
 0x27a   :  { %5278 = vmatprep.subr.msk.mxu1 %vm63_vm0, %v250_v61 }
 0x27b   :  { %v246_v63 = vpop.permute.xlu0 %245  ;;  %v240_v4 = vpop.permute.xlu1 %239 }
 0x27d   :  { %5279 = vmatpush3.xpose.msk.msra.mxu1 %vm63_vm0, %v250_v61 }
 0x27e   :  { %5280 = vmatprep.subr.msk.mxu1 %vm63_vm0, %v248_v62 }
 0x27f   :  { %v242_v3 = vpop.permute.xlu0 %241 }
 0x281   :  { %5281 = vmatpush3.xpose.msk.msra.mxu1 %vm63_vm0, %v248_v62 }
 0x282   :  { %5282 = vmatprep.subr.msk.mxu1 %vm63_vm0, %v246_v63 }
 0x285   :  { %5283 = vmatpush3.xpose.msk.msra.mxu1 %vm63_vm0, %v246_v63 }
 0x286   :  { %5284 = vmatprep.subr.msk.mxu1 %vm63_vm0, %v244_v2 }
 0x289   :  { %5285 = vmatpush3.xpose.msk.msra.mxu1 %vm63_vm0, %v244_v2 }
 0x28a   :  { %5286 = vmatprep.subr.msk.mxu1 %vm63_vm0, %v242_v3 }
 0x28d   :  { %5287 = vmatpush3.xpose.msk.msra.mxu1 %vm63_vm0, %v242_v3 }
 0x28e   :  { %5288 = vmatprep.subr.msk.mxu1 %vm63_vm0, %v240_v4 }
 0x291   :  { %5289 = vmatpush3.xpose.msk.msra.mxu1 %vm63_vm0, %v240_v4 }
 0x292   :  { %5293 = vmatprep.subr.mxu1 %v6360_v13 }
 0x294   :  { %5291 = vmatmul.mubr.msk.f32.vlgmr.msra.gmra.mxu1 %vm63_vm0, %v6293_v46 }
 0x295   :  { %5294 = vmatpush3.msra.mxu1 %v6360_v13 }
 0x296   :  { %5295 = vmatprep.subr.mxu1 %v6367_v14 }
 0x297   :  { %5296 = vmatpush3.msra.mxu1 %v6367_v14 }
 0x298   :  { %5297 = vmatprep.subr.mxu1 %v6376_v16 }
 0x299   :  { %5298 = vmatpush3.msra.mxu1 %v6376_v16 }
 0x29a   :  { %5299 = vmatprep.subr.mxu1 %v6383_v25 }
 0x29b   :  { %5300 = vmatpush3.msra.mxu1 %v6383_v25 }
 0x354   :  { %v5292_v6 = vpop.f32.mrf.mxu1 }
 0x355   :  { %v349_v8 = vadd.f32 %v5292_v6, %v6346_v5 }
 0x356   :  { %v343_v9 = vpop.f32.mrf.mxu1 }
 0x357   :  { %v344_v10 = vadd.f32 %v343_v9, %v6351_v7  ;;  %v356_v11 = vsel %vm352_vm2, %v349_v8, -inf  ;;  %v5883_v9 = vld [vmem:[%s7645_s3] sm:$0xff]  }
 0x358   :  { %357 = vmax.xlane.f32.xlu1 %v356_v11 }
 0x359   :  { %v353_v12 = vsel %vm352_vm2, %v344_v10, -inf }
 0x35a   :  { %354 = vmax.xlane.f32.xlu0 %v353_v12 }
 0x369   :  { %211 = vrot.lane.b32.xlu1 %v6230_v17, %s6130_s18  ;;  %v6392_v17 = vld [vmem:[%s7653_s11 + $0x18] sm:$0xff] }
 0x36a   :  { %5301 = vmatprep.subr.mxu1 %v6392_v17 }
 0x36b   :  { %5302 = vmatpush3.msra.mxu1 %v6392_v17 }
 0x36d   :  { %207 = vrot.lane.b32.xlu1 %v6253_v21, %s6130_s18  ;;  %v6401_v21 = vld [vmem:[%s7653_s11 + $0x10] sm:$0xff] }
 0x36e   :  { %5303 = vmatprep.subr.mxu1 %v6401_v21 }
 0x36f   :  { %5304 = vmatpush3.msra.mxu1 %v6401_v21 }
 0x370   :  { %213 = vrot.lane.b32.xlu0 %v6236_v18, %s6130_s18  ;;  %5305 = vmatprep.subr.mxu1 %v6410_v26  ;;  %v6419_v18 = vld [vmem:[%s7653_s11] sm:$0xff] }
 0x371   :  { %203 = vrot.lane.b32.xlu1 %v6265_v23, %s6130_s18  ;;  %5306 = vmatpush3.msra.mxu1 %v6410_v26 }
 0x372   :  { %5307 = vmatprep.subr.mxu1 %v6419_v18 }
 0x373   :  { %5308 = vmatpush3.msra.mxu1 %v6419_v18 }
 0x374   :  { %209 = vrot.lane.b32.xlu0 %v6241_v19, %s6130_s18  ;;  %5331 = vmatprep.subr.bf16.mxu1 %v6126_v15 }
 0x375   :  { %199 = vrot.lane.b32.xlu1 %v6272_v24, %s6130_s18 }
 0x378   :  { %205 = vrot.lane.b32.xlu0 %v6247_v20, %s6130_s18 }
 0x37c   :  { %201 = vrot.lane.b32.xlu0 %v6259_v22, %s6130_s18 }
 0x3e1   :  { %v358_v19 = vpop.xlane.xlu1 %357 }
 0x3e2   :  { %v360_v23 = vsub.f32 %v349_v8, %v358_v19  ;;  %v4626_v19 = vld [vmem:[%s7646_s4] ss:$0 sm:$0xff] }
 0x3e3   :  { %v355_v27 = vpop.xlane.xlu0 %354 }
 0x3e4   :  { %v359_v28 = vsub.f32 %v344_v10, %v355_v27  ;;  %v363_v29 = vmul.f32 1.442695, %v360_v23 }
 0x3e5   :  { %v6430_v30 = vpop.permute.xlu1 %211 }
 0x3e6   :  { %v361_v24 = vmul.f32 1.442695, %v359_v28  ;;  %v229_v31 = vmul.f32 %v6430_v30, %v6285_v41 }
 0x3e7   :  { %v6434_v32 = vpop.permute.xlu0 %213 }
 0x3e8   :  { %5968 = vpow2.f32 %v361_v24  ;;  %470 = vrot.lane.b32.xlu1 %v229_v31, %s6130_s18  ;;  %v230_v20 = vmul.f32 %v6434_v32, %v6293_v46 }
 0x3e9   :  { %5970 = vpow2.f32 %v363_v29  ;;  %v6439_v22 = vpop.permute.xlu1 %207 }
 0x3ea   :  { %472 = vrot.lane.b32.xlu0 %v230_v20, %s6130_s18  ;;  %v227_v33 = vmul.f32 %v6439_v22, %v6285_v41 }
 0x3eb   :  { %v6444_v34 = vpop.permute.xlu0 %209 }
 0x3ec   :  { %466 = vrot.lane.b32.xlu1 %v227_v33, %s6130_s18  ;;  %v228_v35 = vmul.f32 %v6444_v34, %v6293_v46 }
 0x3ed   :  { %v6449_v38 = vpop.permute.xlu1 %203 }
 0x3ee   :  { %468 = vrot.lane.b32.xlu0 %v228_v35, %s6130_s18  ;;  %v225_v40 = vmul.f32 %v6449_v38, %v6285_v41 }
 0x3ef   :  { %v6454_v42 = vpop.permute.xlu0 %205 }
 0x3f0   :  { %462 = vrot.lane.b32.xlu1 %v225_v40, %s6130_s18  ;;  %v226_v43 = vmul.f32 %v6454_v42, %v6293_v46 }
 0x3f1   :  { %v6459_v45 = vpop.permute.xlu1 %199 }
 0x3f2   :  { %464 = vrot.lane.b32.xlu0 %v226_v43, %s6130_s18  ;;  %v223_v48 = vmul.f32 %v6459_v45, %v6285_v41  ;;  %v5882_v41 = vld [vmem:[%s7645_s3 + $0x8] sm:$0xff]  }
 0x3f3   :  { %v6464_v49 = vpop.permute.xlu0 %201 }
 0x3f4   :  { %458 = vrot.lane.b32.xlu1 %v223_v48, %s6130_s18  ;;  %v224_v50 = vmul.f32 %v6464_v49, %v6293_v46 }
 0x3f5   :  { %v5969_v52 = vpop.eup %5968 }
 0x3f6   :  { %v5971_v53 = vpop.eup %5970  ;;  %5309 = vmatprep.mubr.msk.f32.mxu1 %vm352_vm2, %v5969_v52  ;;  %460 = vrot.lane.b32.xlu0 %v224_v50, %s6130_s18 }
 0x3f7   :  { %5310 = vmatmul.mubr.msk.f32.vlgmr.msra.gmra.mxu1 %vm352_vm2, %v5971_v53 }
 0x3f8   :  { %5335 = vmatprep.mubr.msk.bf16.mxu1 %vm6127_vm1, %v6126_v15  ;;  %5332 = vmatpush3.bf16.msra.mxu1 %v5882_v41 }
 0x3f9   :  { %5333 = vmatprep.subr.bf16.mxu1 %v6126_v15 }
 0x3fc   :  { %5334 = vmatpush3.bf16.msra.mxu1 %v5883_v9 }
 0x3fd   :  { %5347 = vmatprep.subr.bf16.mxu1 %v6126_v15 }
 0x45a   :  { %v471_v55 = vpop.permute.xlu1 %470 }
 0x45c   :  { %v473_v46 = vpop.permute.xlu0 %472 }
 0x45d   :  { %5312 = vmatprep.subr.mxu0 %v473_v46 }
 0x45e   :  { %v467_v56 = vpop.permute.xlu1 %466  ;;  %5313 = vmatpush3.msra.mxu0 %v473_v46 }
 0x45f   :  { %5314 = vmatprep.subr.mxu0 %v471_v55 }
 0x460   :  { %5315 = vmatpush3.msra.mxu0 %v471_v55  ;;  %v469_v58 = vpop.permute.xlu0 %468 }
 0x461   :  { %5316 = vmatprep.subr.mxu0 %v469_v58 }
 0x462   :  { %5317 = vmatpush3.msra.mxu0 %v469_v58  ;;  %v463_v59 = vpop.permute.xlu1 %462  ;;  %v5885_v58 = vld [vmem:[%s7647_s5] sm:$0xff]  }
 0x463   :  { %5318 = vmatprep.subr.mxu0 %v467_v56 }
 0x464   :  { %5319 = vmatpush3.msra.mxu0 %v467_v56  ;;  %v465_v60 = vpop.permute.xlu0 %464  ;;  %v5884_v56 = vld [vmem:[%s7647_s5 + $0x8] sm:$0xff]  }
 0x465   :  { %5320 = vmatprep.subr.mxu0 %v465_v60 }
 0x466   :  { %5321 = vmatpush3.msra.mxu0 %v465_v60  ;;  %v459_v62 = vpop.permute.xlu1 %458 }
 0x467   :  { %5322 = vmatprep.subr.mxu0 %v463_v59 }
 0x468   :  { %5323 = vmatpush3.msra.mxu0 %v463_v59  ;;  %v461_v61 = vpop.permute.xlu0 %460 }
 0x469   :  { %5324 = vmatprep.subr.mxu0 %v461_v61 }
 0x46a   :  { %5325 = vmatpush3.msra.mxu0 %v461_v61 }
 0x46b   :  { %5326 = vmatprep.subr.mxu0 %v459_v62 }
 0x46c   :  { %5327 = vmatpush3.msra.mxu0 %v459_v62 }
 0x46d   :  { %5339 = vmatprep.subr.bf16.mxu0 %v6126_v15 }
 0x4b7   :  { %v5311_v63 = vpop.f32.mrf.mxu1 }
 0x4b8   :  { %5972 = vrcp.f32 %v5311_v63 }
 0x4b9   :  { %v437_v2 = vpop.f32.mrf.mxu1 }
 0x4ba   :  { %5974 = vrcp.f32 %v437_v2 }
 0x4c5   :  { %v5973_v3 = vpop.eup %5972 }
 0x4c6   :  { %v449_v8 = vmul.f32 %v5973_v3, %v5971_v53 }
 0x4c7   :  { %v5975_v4 = vpop.eup %5974 }
 0x4c8   :  { %v448_v6 = vmul.f32 %v5975_v4, %v5969_v52 }
 0x4ca   :  { %5328 = vmatprep.mubr.msk.f32.mxu0 %vm352_vm2, %v448_v6 }
 0x4cb   :  { %5329 = vmatmul.mubr.msk.f32.vlgmr.msra.gmra.mxu0 %vm352_vm2, %v449_v8 }
 0x4cc   :  { %5343 = vmatprep.mubr.msk.bf16.mxu0 %vm6127_vm1, %v6126_v15  ;;  %5340 = vmatpush3.bf16.msra.mxu0 %v5884_v56 }
 0x4cd   :  { %5341 = vmatprep.subr.bf16.mxu0 %v6126_v15 }
 0x4d0   :  { %5342 = vmatpush3.bf16.msra.mxu0 %v5885_v58 }
 0x4d1   :  { %5367 = vmatprep.subr.bf16.mxu0 %v6126_v15 }
 0x58b   :  { %v5330_v10 = vpop.f32.mrf.mxu0 }
 0x58d   :  { %v554_v11 = vpop.f32.mrf.mxu0 }
 0x58e   :  { %v563_v12 = vpack.c.bf16 %v5330_v10, %v554_v11  ;;  %v5886_v10 = vld [vmem:[%s7649_s7 + $0x38] sm:$0xff]   ;;  %v5887_v11 = vld [vmem:[%s7649_s7 + $0x30] sm:$0xff]  }
 0x590   :  { %5336 = vmatmul.mubr.msk.bf16.vlgmr.msra.gmra.mxu1 %vm63_vm0, %v563_v12  ;;  %v5888_v12 = vld [vmem:[%s7649_s7 + $0x28] sm:$0xff]  }
 0x591   :  { %5363 = vmatprep.mubr.msk.bf16.mxu1 %vm6127_vm1, %v6126_v15  ;;  %5348 = vmatpush3.bf16.msra.mxu1 %v5886_v10 }
 0x592   :  { %5349 = vmatprep.subr.bf16.mxu1 %v6126_v15 }
 0x595   :  { %5350 = vmatpush3.bf16.msra.mxu1 %v5887_v11 }
 0x596   :  { %5351 = vmatprep.subr.bf16.mxu1 %v6126_v15 }
 0x599   :  { %5352 = vmatpush3.bf16.msra.mxu1 %v5888_v12 }
 0x59a   :  { %5353 = vmatprep.subr.bf16.mxu1 %v6126_v15 }
 0x650   :  { %v624_v23 = vpop.f32.mrf.mxu1 }
 0x651   :  { %v625_v27 = vadd.f32 %v4626_v19, %v624_v23  ;;  %v5890_v23 = vld [vmem:[%s7649_s7 + $0x18] sm:$0xff]  }
 0x652   :  { %v5337_v28 = vpop.f32.mrf.mxu1 }
 0x653   :  { %v6494_v29 = vadd.f32 %v625_v27, %v6202_v0  ;;  %v5891_v27 = vld [vmem:[%s7649_s7 + $0x10] sm:$0xff]   ;;  %v5892_v28 = vld [vmem:[%s7649_s7 + $0x8] sm:$0xff]  }
 0x654   :  { %v627_v24 = vpop.f32.mrf.mxu1 }
 0x655   :  { %v628_v31 = vadd.f32 %v4626_v19, %v627_v24  ;;  %v633_v20 = vsel %vm63_vm0, %v6494_v29, 0.0  ;;  %v5889_v19 = vld [vmem:[%s7649_s7 + $0x20] sm:$0xff]  }
 0x656   :  { %634 = vadd.xlane.f32.xlu0 %v633_v20  ;;  %v5338_v33 = vpop.f32.mrf.mxu1  ;;  %5354 = vmatpush3.bf16.msra.mxu1 %v5889_v19  ;;  %v5893_v24 = vld [vmem:[%s7649_s7] sm:$0xff]  }
 0x657   :  { %v6499_v35 = vadd.f32 %v628_v31, %v6207_v1  ;;  %5355 = vmatprep.subr.bf16.mxu1 %v6126_v15  ;;  %v4630_v31 = vld [vmem:[%s7648_s6] ss:$0 sm:$0xff] }
 0x659   :  { %v636_v40 = vsel %vm63_vm0, %v6499_v35, 0.0 }
 0x65a   :  { %637 = vadd.xlane.f32.xlu1 %v636_v40  ;;  %5356 = vmatpush3.bf16.msra.mxu1 %v5890_v23 }
 0x65b   :  { %5357 = vmatprep.subr.bf16.mxu1 %v6126_v15 }
 0x65e   :  { %5358 = vmatpush3.bf16.msra.mxu1 %v5891_v27 }
 0x65f   :  { %5359 = vmatprep.subr.bf16.mxu1 %v6126_v15 }
 0x662   :  { %5360 = vmatpush3.bf16.msra.mxu1 %v5892_v28 }
 0x663   :  { %5361 = vmatprep.subr.bf16.mxu1 %v6126_v15 }
 0x666   :  { %5362 = vmatpush3.bf16.msra.mxu1 %v5893_v24 }
 0x667   :  { %5394 = vmatprep.subr.mxu1 %v6360_v13 }
 0x6df   :  { %v635_v43 = vpop.xlane.xlu0 %634 }
 0x6e0   :  { %v639_v48 = vmul.f32 0.03125, %v635_v43 }
 0x6e2   :  { %v641_v50 = vsub.f32 %v6494_v29, %v639_v48 }
 0x6e3   :  { %v638_v0 = vpop.xlane.xlu1 %637 }
 0x6e4   :  { %v640_v52 = vmul.f32 0.03125, %v638_v0  ;;  %v643_v53 = vmul.f32 %v641_v50, %v641_v50 }
 0x6e6   :  { %v642_v41 = vsub.f32 %v6499_v35, %v640_v52  ;;  %v645_v55 = vsel %vm63_vm0, %v643_v53, 0.0 }
 0x6e7   :  { %646 = vadd.xlane.f32.xlu0 %v645_v55 }
 0x6e8   :  { %v644_v46 = vmul.f32 %v642_v41, %v642_v41 }
 0x6ea   :  { %v648_v1 = vsel %vm63_vm0, %v644_v46, 0.0 }
 0x6eb   :  { %649 = vadd.xlane.f32.xlu0 %v648_v1 }
 0x770   :  { %v647_v59 = vpop.xlane.xlu0 %646 }
 0x771   :  { %v651_v60 = vmul.f32 0.03125, %v647_v59 }
 0x773   :  { %v653_v61 = vadd.f32 1e-05, %v651_v60 }
 0x774   :  { %v650_v62 = vpop.xlane.xlu0 %649 }
 0x775   :  { %v652_v63 = vmul.f32 0.03125, %v650_v62  ;;  %5976 = vrsqrt.f32 %v653_v61 }
 0x777   :  { %v654_v2 = vadd.f32 1e-05, %v652_v63 }
 0x779   :  { %5978 = vrsqrt.f32 %v654_v2 }
 0x782   :  { %v5977_v3 = vpop.eup %5976 }
 0x783   :  { %v657_v6 = vmul.f32 %v5977_v3, %v641_v50 }
 0x786   :  { %v5979_v4 = vpop.eup %5978 }
 0x787   :  { %v658_v8 = vmul.f32 %v5979_v4, %v642_v41 }
 0x789   :  { %v659_v9 = vpack.c.bf16 %v658_v8, %v657_v6 }
 0x78b   :  { %5344 = vmatmul.mubr.msk.bf16.vlgmr.msra.gmra.mxu0 %vm63_vm0, %v659_v9  ;;  %v4634_v9 = vld [vmem:[%s7650_s8] ss:$0 sm:$0xff] }
 0x78c   :  { %5371 = vmatprep.mubr.msk.bf16.mxu0 %vm6127_vm1, %v6126_v15 }
 0x84b   :  { %v720_v20 = vpop.f32.mrf.mxu0 }
 0x84c   :  { %v721_v33 = vadd.f32 %v4630_v31, %v720_v20 }
 0x84d   :  { %v5345_v40 = vpop.f32.mrf.mxu0 }
 0x84e   :  { %v729_v43 = vmul.f32 0.044715, %v721_v33  ;;  %v727_v63 = vmul.f32 0.5, %v721_v33 }
 0x84f   :  { %v723_v48 = vpop.f32.mrf.mxu0 }
 0x850   :  { %v731_v50 = vmul.f32 %v729_v43, %v721_v33  ;;  %v724_v0 = vadd.f32 %v4630_v31, %v723_v48 }
 0x851   :  { %v5346_v52 = vpop.f32.mrf.mxu0 }
 0x852   :  { %v733_v53 = vmul.f32 %v731_v50, %v721_v33  ;;  %v730_v41 = vmul.f32 0.044715, %v724_v0  ;;  %v728_v2 = vmul.f32 0.5, %v724_v0 }
 0x854   :  { %v735_v55 = vadd.f32 %v733_v53, %v721_v33  ;;  %v732_v46 = vmul.f32 %v730_v41, %v724_v0  ;;  %v5894_v41 = vld [vmem:[%s7643_s1 + $0x18] sm:$0xff]  }
 0x855   :  { %5368 = vmatpush3.bf16.msra.mxu0 %v5894_v41 }
 0x856   :  { %v737_v1 = vmul.f32 0.7978846, %v735_v55  ;;  %v734_v56 = vmul.f32 %v732_v46, %v724_v0  ;;  %v5895_v55 = vld [vmem:[%s7643_s1 + $0x10] sm:$0xff]   ;;  %5369 = vmatprep.subr.bf16.mxu0 %v6126_v15 }
 0x858   :  { %5980 = vtanh.f32 %v737_v1  ;;  %v736_v58 = vadd.f32 %v734_v56, %v724_v0 }
 0x859   :  { %5370 = vmatpush3.bf16.msra.mxu0 %v5895_v55 }
 0x85a   :  { %v738_v59 = vmul.f32 0.7978846, %v736_v58 }
 0x85c   :  { %5982 = vtanh.f32 %v738_v59 }
 0x865   :  { %v5981_v60 = vpop.eup %5980 }
 0x866   :  { %v741_v61 = vadd.f32 1.0, %v5981_v60 }
 0x868   :  { %v743_v4 = vmul.f32 %v741_v61, %v727_v63 }
 0x869   :  { %v5983_v62 = vpop.eup %5982 }
 0x86a   :  { %v742_v3 = vadd.f32 1.0, %v5983_v62 }
 0x86c   :  { %v744_v6 = vmul.f32 %v742_v3, %v728_v2 }
 0x86e   :  { %v745_v8 = vpack.c.bf16 %v744_v6, %v743_v4  ;;  %v4648_v4 = vld [vmem:[%s7644_s2 + $0x1] ss:$0 sm:$0xff] }
 0x870   :  { %5364 = vmatmul.mubr.bf16.vlgmr.msra.gmra.mxu1 %v745_v8 }
 0x871   :  { %5395 = vmatpush3.msra.mxu1 %v6360_v13 }
 0x872   :  { %5396 = vmatprep.subr.mxu1 %v6367_v14 }
 0x873   :  { %5397 = vmatpush3.msra.mxu1 %v6367_v14 }
 0x874   :  { %5398 = vmatprep.subr.mxu1 %v6376_v16 }
 0x875   :  { %5399 = vmatpush3.msra.mxu1 %v6376_v16 }
 0x876   :  { %5400 = vmatprep.subr.mxu1 %v6383_v25 }
 0x877   :  { %5401 = vmatpush3.msra.mxu1 %v6383_v25 }
 0x878   :  { %5402 = vmatprep.subr.mxu1 %v6392_v17 }
 0x879   :  { %5403 = vmatpush3.msra.mxu1 %v6392_v17 }
 0x87a   :  { %5404 = vmatprep.subr.mxu1 %v6401_v21 }
 0x87b   :  { %5405 = vmatpush3.msra.mxu1 %v6401_v21 }
 0x87c   :  { %5406 = vmatprep.subr.mxu1 %v6410_v26 }
 0x87d   :  { %5407 = vmatpush3.msra.mxu1 %v6410_v26 }
 0x87e   :  { %5408 = vmatprep.subr.mxu1 %v6419_v18 }
 0x87f   :  { %5409 = vmatpush3.msra.mxu1 %v6419_v18 }
 0x880   :  { %5432 = vmatprep.subr.bf16.mxu1 %v6126_v15 }
 0x930   :  { %v851_v10 = vpop.f32.mrf.mxu1 }
 0x931   :  { %v852_v11 = vadd.f32 %v4634_v9, %v851_v10 }
 0x932   :  { %v5365_v12 = vpop.f32.mrf.mxu1 }
 0x933   :  { %v6573_v19 = vadd.f32 %v852_v11, %v6494_v29 }
 0x934   :  { %v854_v23 = vpop.f32.mrf.mxu1 }
 0x935   :  { %v855_v27 = vadd.f32 %v4634_v9, %v854_v23  ;;  %v860_v28 = vsel %vm63_vm0, %v6573_v19, 0.0 }
 0x936   :  { %861 = vadd.xlane.f32.xlu0 %v860_v28  ;;  %v5366_v24 = vpop.f32.mrf.mxu1 }
 0x937   :  { %v6578_v31 = vadd.f32 %v855_v27, %v6499_v35 }
 0x939   :  { %v863_v20 = vsel %vm63_vm0, %v6578_v31, 0.0 }
 0x93a   :  { %864 = vadd.xlane.f32.xlu1 %v863_v20 }
 0x9bf   :  { %v862_v33 = vpop.xlane.xlu0 %861 }
 0x9c0   :  { %v866_v40 = vmul.f32 0.03125, %v862_v33 }
 0x9c2   :  { %v868_v43 = vsub.f32 %v6573_v19, %v866_v40 }
 0x9c3   :  { %v865_v29 = vpop.xlane.xlu1 %864 }
 0x9c4   :  { %v867_v48 = vmul.f32 0.03125, %v865_v29  ;;  %v870_v50 = vmul.f32 %v868_v43, %v868_v43 }
 0x9c6   :  { %v869_v0 = vsub.f32 %v6578_v31, %v867_v48  ;;  %v872_v52 = vsel %vm63_vm0, %v870_v50, 0.0 }
 0x9c7   :  { %873 = vadd.xlane.f32.xlu0 %v872_v52 }
 0x9c8   :  { %v871_v53 = vmul.f32 %v869_v0, %v869_v0 }
 0x9ca   :  { %v875_v35 = vsel %vm63_vm0, %v871_v53, 0.0 }
 0x9cb   :  { %876 = vadd.xlane.f32.xlu1 %v875_v35 }
 0xa50   :  { %v874_v46 = vpop.xlane.xlu0 %873 }
 0xa51   :  { %v878_v1 = vmul.f32 0.03125, %v874_v46 }
 0xa53   :  { %v880_v56 = vadd.f32 1e-05, %v878_v1 }
 0xa54   :  { %v877_v58 = vpop.xlane.xlu1 %876 }
 0xa55   :  { %v879_v59 = vmul.f32 0.03125, %v877_v58  ;;  %5984 = vrsqrt.f32 %v880_v56 }
 0xa57   :  { %v881_v60 = vadd.f32 1e-05, %v879_v59 }
 0xa59   :  { %5986 = vrsqrt.f32 %v881_v60 }
 0xa62   :  { %v5985_v61 = vpop.eup %5984 }
 0xa63   :  { %v884_v63 = vmul.f32 %v5985_v61, %v868_v43 }
 0xa66   :  { %v5987_v62 = vpop.eup %5986 }
 0xa67   :  { %v885_v2 = vmul.f32 %v5987_v62, %v869_v0 }
 0xa69   :  { %v886_v3 = vpack.c.bf16 %v885_v2, %v884_v63 }
 0xa6b   :  { %5372 = vmatmul.mubr.msk.bf16.vlgmr.msra.gmra.mxu0 %vm63_vm0, %v886_v3 }
 0xb2b   :  { %v949_v6 = vpop.f32.mrf.mxu0 }
 0xb2c   :  { %v6597_v8 = vadd.f32 %v4648_v4, %v949_v6 }
 0xb2d   :  { %v5373_v9 = vpop.f32.mrf.mxu0 }
 0xb2e   :  { %5391 = vmatprep.mubr.msk.f32.mxu0 %vm63_vm0, %v6597_v8  ;;  %v962_v10 = vmul.f32 %v6597_v8, %v6276_v36  ;;  %v960_v24 = vmul.f32 %v6597_v8, %v6283_v39  ;;  %v958_v33 = vmul.f32 %v6597_v8, %v6296_v47  ;;  %v956_v43 = vmul.f32 %v6597_v8, %v6310_v54 }
 0xb2f   :  { %v952_v11 = vpop.f32.mrf.mxu0  ;;  %v970_v60 = vmul.f32 %v6597_v8, %v6430_v30  ;;  %v968_v61 = vmul.f32 %v6597_v8, %v6439_v22  ;;  %v964_v63 = vmul.f32 %v6597_v8, %v6459_v45 }
 0xb30   :  { %v6603_v12 = vadd.f32 %v4648_v4, %v952_v11  ;;  %992 = vrot.lane.b32.xlu1 %v962_v10, %s6129_s27 }
 0xb31   :  { %v5374_v23 = vpop.f32.mrf.mxu0 }
 0xb32   :  { %v963_v27 = vmul.f32 %v6603_v12, %v6291_v44  ;;  %v961_v28 = vmul.f32 %v6603_v12, %v6278_v37  ;;  %v959_v20 = vmul.f32 %v6603_v12, %v6304_v51  ;;  %v957_v40 = vmul.f32 %v6603_v12, %v6318_v57 }
 0xb33   :  { %v969_v62 = vmul.f32 %v6603_v12, %v6444_v34  ;;  %v967_v2 = vmul.f32 %v6603_v12, %v6454_v42  ;;  %v965_v3 = vmul.f32 %v6603_v12, %v6464_v49 }
 0xb34   :  { %994 = vrot.lane.b32.xlu0 %v963_v27, %s6129_s27  ;;  %990 = vrot.lane.b32.xlu1 %v961_v28, %s6129_s27 }
 0xb38   :  { %988 = vrot.lane.b32.xlu1 %v960_v24, %s6129_s27  ;;  %986 = vrot.lane.b32.xlu0 %v959_v20, %s6129_s27 }
 0xb3c   :  { %984 = vrot.lane.b32.xlu1 %v958_v33, %s6129_s27  ;;  %982 = vrot.lane.b32.xlu0 %v957_v40, %s6129_s27 }
 0xb40   :  { %980 = vrot.lane.b32.xlu1 %v956_v43, %s6129_s27 }
 0xba2   :  { %v993_v29 = vpop.permute.xlu1 %992 }
 0xba6   :  { %v995_v48 = vpop.permute.xlu0 %994  ;;  %v991_v50 = vpop.permute.xlu1 %990 }
 0xba7   :  { %5375 = vmatprep.subr.msk.mxu0 %vm63_vm0, %v995_v48 }
 0xba8   :  { %5376 = vmatpush3.xpose.msk.msra.mxu0 %vm63_vm0, %v995_v48  ;;  %v5896_v48 = vld [vmem:[%s7645_s3 + $0x18] sm:$0xff]  }
 0xba9   :  { %5377 = vmatprep.subr.msk.mxu0 %vm63_vm0, %v993_v29 }
 0xbaa   :  { %v989_v0 = vpop.permute.xlu1 %988  ;;  %v987_v52 = vpop.permute.xlu0 %986 }
 0xbac   :  { %5378 = vmatpush3.xpose.msk.msra.mxu0 %vm63_vm0, %v993_v29 }
 0xbad   :  { %5379 = vmatprep.subr.msk.mxu0 %vm63_vm0, %v991_v50 }
 0xbae   :  { %v985_v53 = vpop.permute.xlu1 %984  ;;  %v983_v35 = vpop.permute.xlu0 %982 }
 0xbb0   :  { %5380 = vmatpush3.xpose.msk.msra.mxu0 %vm63_vm0, %v991_v50 }
 0xbb1   :  { %5381 = vmatprep.subr.msk.mxu0 %vm63_vm0, %v989_v0 }
 0xbb2   :  { %v981_v41 = vpop.permute.xlu1 %980 }
 0xbb4   :  { %5382 = vmatpush3.xpose.msk.msra.mxu0 %vm63_vm0, %v989_v0 }
 0xbb5   :  { %5383 = vmatprep.subr.msk.mxu0 %vm63_vm0, %v987_v52 }
 0xbb8   :  { %5384 = vmatpush3.xpose.msk.msra.mxu0 %vm63_vm0, %v987_v52 }
 0xbb9   :  { %5385 = vmatprep.subr.msk.mxu0 %vm63_vm0, %v985_v53 }
 0xbbc   :  { %5386 = vmatpush3.xpose.msk.msra.mxu0 %vm63_vm0, %v985_v53 }
 0xbbd   :  { %5387 = vmatprep.subr.msk.mxu0 %vm63_vm0, %v983_v35 }
 0xbc0   :  { %5388 = vmatpush3.xpose.msk.msra.mxu0 %vm63_vm0, %v983_v35 }
 0xbc1   :  { %5389 = vmatprep.subr.msk.mxu0 %vm63_vm0, %v981_v41 }
 0xbc4   :  { %5390 = vmatpush3.xpose.msk.msra.mxu0 %vm63_vm0, %v981_v41 }
 0xbc7   :  { %5392 = vmatmul.mubr.msk.f32.vlgmr.msra.gmra.mxu0 %vm63_vm0, %v6603_v12 }
 0xc87   :  { %v5393_v55 = vpop.f32.mrf.mxu0 }
 0xc88   :  { %v1090_v46 = vadd.f32 %v5393_v55, %v6346_v5  ;;  %v971_v5 = vmul.f32 %v6603_v12, %v6434_v32  ;;  %v5897_v55 = vld [vmem:[%s7645_s3 + $0x10] sm:$0xff]  }
 0xc89   :  { %v1084_v1 = vpop.f32.mrf.mxu0 }
 0xc8a   :  { %v1085_v56 = vadd.f32 %v1084_v1, %v6351_v7  ;;  %v1096_v58 = vsel %vm352_vm2, %v1090_v46, -inf  ;;  %v966_v7 = vmul.f32 %v6597_v8, %v6449_v38 }
 0xc8b   :  { %1097 = vmax.xlane.f32.xlu1 %v1096_v58  ;;  %v4671_v58 = vld [vmem:[%s7646_s4 + $0x1] ss:$0 sm:$0xff] }
 0xc8c   :  { %v1093_v59 = vsel %vm352_vm2, %v1085_v56, -inf }
 0xc8d   :  { %1094 = vmax.xlane.f32.xlu0 %v1093_v59 }
 0xc9c   :  { %1210 = vrot.lane.b32.xlu1 %v970_v60, %s6130_s18 }
 0xca0   :  { %1206 = vrot.lane.b32.xlu1 %v968_v61, %s6130_s18 }
 0xca3   :  { %1212 = vrot.lane.b32.xlu0 %v971_v5, %s6130_s18 }
 0xca4   :  { %1202 = vrot.lane.b32.xlu1 %v966_v7, %s6130_s18 }
 0xca7   :  { %1208 = vrot.lane.b32.xlu0 %v969_v62, %s6130_s18 }
 0xca8   :  { %1198 = vrot.lane.b32.xlu1 %v964_v63, %s6130_s18 }
 0xcab   :  { %1204 = vrot.lane.b32.xlu0 %v967_v2, %s6130_s18 }
 0xcaf   :  { %1200 = vrot.lane.b32.xlu0 %v965_v3, %s6130_s18 }
 0xd14   :  { %v1098_v4 = vpop.xlane.xlu1 %1097 }
 0xd15   :  { %v1100_v6 = vsub.f32 %v1090_v46, %v1098_v4 }
 0xd16   :  { %v1095_v9 = vpop.xlane.xlu0 %1094 }
 0xd17   :  { %v1099_v10 = vsub.f32 %v1085_v56, %v1095_v9  ;;  %v1103_v11 = vmul.f32 1.442695, %v1100_v6 }
 0xd18   :  { %v1211_v8 = vpop.permute.xlu1 %1210 }
 0xd19   :  { %v1101_v23 = vmul.f32 1.442695, %v1099_v10 }
 0xd1a   :  { %v1213_v27 = vpop.permute.xlu0 %1212 }
 0xd1b   :  { %5988 = vpow2.f32 %v1101_v23  ;;  %5413 = vmatprep.subr.mxu0 %v1213_v27 }
 0xd1c   :  { %5990 = vpow2.f32 %v1103_v11  ;;  %v1207_v28 = vpop.permute.xlu1 %1206  ;;  %5414 = vmatpush3.msra.mxu0 %v1213_v27 }
 0xd1d   :  { %5415 = vmatprep.subr.mxu0 %v1211_v8 }
 0xd1e   :  { %5416 = vmatpush3.msra.mxu0 %v1211_v8  ;;  %v1209_v24 = vpop.permute.xlu0 %1208 }
 0xd1f   :  { %5417 = vmatprep.subr.mxu0 %v1209_v24 }
 0xd20   :  { %5418 = vmatpush3.msra.mxu0 %v1209_v24  ;;  %v1203_v12 = vpop.permute.xlu1 %1202  ;;  %v5898_v24 = vld [vmem:[%s7647_s5 + $0x18] sm:$0xff]  }
 0xd21   :  { %5419 = vmatprep.subr.mxu0 %v1207_v28 }
 0xd22   :  { %5420 = vmatpush3.msra.mxu0 %v1207_v28  ;;  %v1205_v20 = vpop.permute.xlu0 %1204 }
 0xd23   :  { %5421 = vmatprep.subr.mxu0 %v1205_v20 }
 0xd24   :  { %5422 = vmatpush3.msra.mxu0 %v1205_v20  ;;  %v1199_v43 = vpop.permute.xlu1 %1198 }
 0xd25   :  { %5423 = vmatprep.subr.mxu0 %v1203_v12 }
 0xd26   :  { %5424 = vmatpush3.msra.mxu0 %v1203_v12  ;;  %v1201_v33 = vpop.permute.xlu0 %1200  ;;  %v5899_v12 = vld [vmem:[%s7647_s5 + $0x10] sm:$0xff]  }
 0xd27   :  { %5425 = vmatprep.subr.mxu0 %v1201_v33 }
 0xd28   :  { %v5989_v40 = vpop.eup %5988  ;;  %5426 = vmatpush3.msra.mxu0 %v1201_v33 }
 0xd29   :  { %v5991_v29 = vpop.eup %5990  ;;  %5410 = vmatprep.mubr.msk.f32.mxu1 %vm352_vm2, %v5989_v40  ;;  %5427 = vmatprep.subr.mxu0 %v1199_v43 }
 0xd2a   :  { %5411 = vmatmul.mubr.msk.f32.vlgmr.msra.gmra.mxu1 %vm352_vm2, %v5991_v29  ;;  %5428 = vmatpush3.msra.mxu0 %v1199_v43 }
 0xd2b   :  { %5436 = vmatprep.mubr.msk.bf16.mxu1 %vm6127_vm1, %v6126_v15  ;;  %5448 = vmatprep.subr.bf16.mxu0 %v6126_v15 }
 0xd2c   :  { %5433 = vmatpush3.bf16.msra.mxu1 %v5896_v48 }
 0xd2d   :  { %5434 = vmatprep.subr.bf16.mxu1 %v6126_v15 }
 0xd30   :  { %5435 = vmatpush3.bf16.msra.mxu1 %v5897_v55  ;;  %v5901_v55 = vld [vmem:[%s7649_s7 + $0x70] sm:$0xff]  }
 0xd31   :  { %5440 = vmatprep.subr.bf16.mxu1 %v6126_v15 }
 0xdea   :  { %v5412_v50 = vpop.f32.mrf.mxu1 }
 0xdeb   :  { %5992 = vrcp.f32 %v5412_v50 }
 0xdec   :  { %v1177_v0 = vpop.f32.mrf.mxu1 }
 0xded   :  { %5994 = vrcp.f32 %v1177_v0 }
 0xdf8   :  { %v5993_v52 = vpop.eup %5992 }
 0xdf9   :  { %v1189_v41 = vmul.f32 %v5993_v52, %v5991_v29 }
 0xdfa   :  { %v5995_v53 = vpop.eup %5994 }
 0xdfb   :  { %v1188_v35 = vmul.f32 %v5995_v53, %v5989_v40 }
 0xdfd   :  { %5429 = vmatprep.mubr.msk.f32.mxu0 %vm352_vm2, %v1188_v35 }
 0xdfe   :  { %5430 = vmatmul.mubr.msk.f32.vlgmr.msra.gmra.mxu0 %vm352_vm2, %v1189_v41  ;;  %v5900_v41 = vld [vmem:[%s7649_s7 + $0x78] sm:$0xff]  }
 0xdff   :  { %5464 = vmatprep.mubr.msk.bf16.mxu0 %vm6127_vm1, %v6126_v15  ;;  %5449 = vmatpush3.bf16.msra.mxu0 %v5900_v41 }
 0xe00   :  { %5450 = vmatprep.subr.bf16.mxu0 %v6126_v15 }
 0xe03   :  { %5451 = vmatpush3.bf16.msra.mxu0 %v5901_v55 }
 0xe04   :  { %5452 = vmatprep.subr.bf16.mxu0 %v6126_v15 }
 0xebe   :  { %v5431_v46 = vpop.f32.mrf.mxu0 }
 0xec0   :  { %v1294_v1 = vpop.f32.mrf.mxu0 }
 0xec1   :  { %v1303_v56 = vpack.c.bf16 %v5431_v46, %v1294_v1  ;;  %v5902_v46 = vld [vmem:[%s7649_s7 + $0x68] sm:$0xff]   ;;  %v5903_v1 = vld [vmem:[%s7649_s7 + $0x60] sm:$0xff]  }
 0xec2   :  { %5453 = vmatpush3.bf16.msra.mxu0 %v5902_v46 }
 0xec3   :  { %5437 = vmatmul.mubr.msk.bf16.vlgmr.msra.gmra.mxu1 %vm63_vm0, %v1303_v56  ;;  %5454 = vmatprep.subr.bf16.mxu0 %v6126_v15  ;;  %v5904_v56 = vld [vmem:[%s7649_s7 + $0x58] sm:$0xff]  }
 0xec4   :  { %5444 = vmatprep.mubr.msk.bf16.mxu1 %vm6127_vm1, %v6126_v15  ;;  %5441 = vmatpush3.bf16.msra.mxu1 %v5898_v24 }
 0xec5   :  { %5442 = vmatprep.subr.bf16.mxu1 %v6126_v15 }
 0xec6   :  { %5455 = vmatpush3.bf16.msra.mxu0 %v5903_v1 }
 0xec7   :  { %5456 = vmatprep.subr.bf16.mxu0 %v6126_v15 }
 0xec8   :  { %5443 = vmatpush3.bf16.msra.mxu1 %v5899_v12 }
 0xec9   :  { %5468 = vmatprep.subr.bf16.mxu1 %v6126_v15 }
 0xeca   :  { %5457 = vmatpush3.bf16.msra.mxu0 %v5904_v56 }
 0xecb   :  { %5458 = vmatprep.subr.bf16.mxu0 %v6126_v15 }
 0xf83   :  { %v1366_v59 = vpop.f32.mrf.mxu1 }
 0xf84   :  { %v1367_v60 = vadd.f32 %v4671_v58, %v1366_v59  ;;  %v5906_v59 = vld [vmem:[%s7649_s7 + $0x48] sm:$0xff]  }
 0xf85   :  { %v5438_v61 = vpop.f32.mrf.mxu1 }
 0xf86   :  { %v6697_v5 = vadd.f32 %v1367_v60, %v6573_v19  ;;  %v5907_v60 = vld [vmem:[%s7649_s7 + $0x40] sm:$0xff]  }
 0xf87   :  { %v1369_v7 = vpop.f32.mrf.mxu1  ;;  %v4680_v61 = vld [vmem:[%s7648_s6 + $0x1] ss:$0 sm:$0xff] }
 0xf88   :  { %v1370_v62 = vadd.f32 %v4671_v58, %v1369_v7  ;;  %v1375_v63 = vsel %vm63_vm0, %v6697_v5, 0.0  ;;  %v5905_v58 = vld [vmem:[%s7649_s7 + $0x50] sm:$0xff]  }
 0xf89   :  { %1376 = vadd.xlane.f32.xlu0 %v1375_v63  ;;  %v5439_v2 = vpop.f32.mrf.mxu1  ;;  %5459 = vmatpush3.bf16.msra.mxu0 %v5905_v58 }
 0xf8a   :  { %v6702_v3 = vadd.f32 %v1370_v62, %v6578_v31  ;;  %5460 = vmatprep.subr.bf16.mxu0 %v6126_v15 }
 0xf8c   :  { %v1378_v4 = vsel %vm63_vm0, %v6702_v3, 0.0 }
 0xf8d   :  { %1379 = vadd.xlane.f32.xlu1 %v1378_v4  ;;  %5461 = vmatpush3.bf16.msra.mxu0 %v5906_v59 }
 0xf8e   :  { %5462 = vmatprep.subr.bf16.mxu0 %v6126_v15 }
 0xf91   :  { %5463 = vmatpush3.bf16.msra.mxu0 %v5907_v60 }
 0xf92   :  { %5495 = vmatprep.subr.mxu0 %v6360_v13 }
0x1012   :  { %v1377_v6 = vpop.xlane.xlu0 %1376 }
0x1013   :  { %v1381_v9 = vmul.f32 0.03125, %v1377_v6 }
0x1015   :  { %v1383_v10 = vsub.f32 %v6697_v5, %v1381_v9 }
0x1016   :  { %v1380_v19 = vpop.xlane.xlu1 %1379 }
0x1017   :  { %v1382_v11 = vmul.f32 0.03125, %v1380_v19  ;;  %v1385_v8 = vmul.f32 %v1383_v10, %v1383_v10 }
0x1019   :  { %v1384_v23 = vsub.f32 %v6702_v3, %v1382_v11  ;;  %v1387_v27 = vsel %vm63_vm0, %v1385_v8, 0.0 }
0x101a   :  { %1388 = vadd.xlane.f32.xlu0 %v1387_v27 }
0x101b   :  { %v1386_v28 = vmul.f32 %v1384_v23, %v1384_v23 }
0x101d   :  { %v1390_v31 = vsel %vm63_vm0, %v1386_v28, 0.0 }
0x101e   :  { %1391 = vadd.xlane.f32.xlu0 %v1390_v31 }
0x10a3   :  { %v1389_v20 = vpop.xlane.xlu0 %1388 }
0x10a4   :  { %v1393_v33 = vmul.f32 0.03125, %v1389_v20 }
0x10a6   :  { %v1395_v40 = vadd.f32 1e-05, %v1393_v33 }
0x10a7   :  { %v1392_v43 = vpop.xlane.xlu0 %1391 }
0x10a8   :  { %v1394_v29 = vmul.f32 0.03125, %v1392_v43  ;;  %5996 = vrsqrt.f32 %v1395_v40 }
0x10aa   :  { %v1396_v48 = vadd.f32 1e-05, %v1394_v29 }
0x10ac   :  { %5998 = vrsqrt.f32 %v1396_v48 }
0x10b5   :  { %v5997_v50 = vpop.eup %5996 }
0x10b6   :  { %v1399_v52 = vmul.f32 %v5997_v50, %v1383_v10 }
0x10b9   :  { %v5999_v0 = vpop.eup %5998 }
0x10ba   :  { %v1400_v53 = vmul.f32 %v5999_v0, %v1384_v23 }
0x10bc   :  { %v1401_v35 = vpack.c.bf16 %v1400_v53, %v1399_v52 }
0x10be   :  { %5445 = vmatmul.mubr.msk.bf16.vlgmr.msra.gmra.mxu1 %vm63_vm0, %v1401_v35 }
0x10bf   :  { %5472 = vmatprep.mubr.msk.bf16.mxu1 %vm6127_vm1, %v6126_v15 }
0x117e   :  { %v1464_v7 = vpop.f32.mrf.mxu1 }
0x117f   :  { %v1465_v62 = vadd.f32 %v4680_v61, %v1464_v7  ;;  %v5909_v7 = vld [vmem:[%s7643_s1 + $0x20] sm:$0xff]  }
0x1180   :  { %v5446_v63 = vpop.f32.mrf.mxu1 }
0x1181   :  { %v1473_v2 = vmul.f32 0.044715, %v1465_v62  ;;  %v1471_v40 = vmul.f32 0.5, %v1465_v62 }
0x1182   :  { %v1467_v4 = vpop.f32.mrf.mxu1 }
0x1183   :  { %v1475_v6 = vmul.f32 %v1473_v2, %v1465_v62  ;;  %v1468_v9 = vadd.f32 %v4680_v61, %v1467_v4  ;;  %v5908_v61 = vld [vmem:[%s7643_s1 + $0x28] sm:$0xff]  }
0x1184   :  { %v5447_v10 = vpop.f32.mrf.mxu1  ;;  %5469 = vmatpush3.bf16.msra.mxu1 %v5908_v61 }
0x1185   :  { %v1477_v19 = vmul.f32 %v1475_v6, %v1465_v62  ;;  %v1474_v11 = vmul.f32 0.044715, %v1468_v9  ;;  %v1472_v43 = vmul.f32 0.5, %v1468_v9  ;;  %5470 = vmatprep.subr.bf16.mxu1 %v6126_v15 }
0x1187   :  { %v1479_v8 = vadd.f32 %v1477_v19, %v1465_v62  ;;  %v1476_v23 = vmul.f32 %v1474_v11, %v1468_v9 }
0x1188   :  { %5471 = vmatpush3.bf16.msra.mxu1 %v5909_v7 }
0x1189   :  { %v1481_v27 = vmul.f32 0.7978846, %v1479_v8  ;;  %v1478_v28 = vmul.f32 %v1476_v23, %v1468_v9 }
0x118b   :  { %6000 = vtanh.f32 %v1481_v27  ;;  %v1480_v31 = vadd.f32 %v1478_v28, %v1468_v9  ;;  %v4715_v27 = vld [vmem:[%s7644_s2 + $0x2] ss:$0 sm:$0xff] }
0x118d   :  { %v1482_v24 = vmul.f32 0.7978846, %v1480_v31 }
0x118f   :  { %6002 = vtanh.f32 %v1482_v24 }
0x1198   :  { %v6001_v12 = vpop.eup %6000 }
0x1199   :  { %v1485_v20 = vadd.f32 1.0, %v6001_v12 }
0x119b   :  { %v1487_v48 = vmul.f32 %v1485_v20, %v1471_v40 }
0x119c   :  { %v6003_v33 = vpop.eup %6002 }
0x119d   :  { %v1486_v29 = vadd.f32 1.0, %v6003_v33 }
0x119f   :  { %v1488_v50 = vmul.f32 %v1486_v29, %v1472_v43 }
0x11a1   :  { %v1489_v0 = vpack.c.bf16 %v1488_v50, %v1487_v48 }
0x11a3   :  { %5465 = vmatmul.mubr.bf16.vlgmr.msra.gmra.mxu0 %v1489_v0 }
0x11a4   :  { %5496 = vmatpush3.msra.mxu0 %v6360_v13  ;;  %v4701_v13 = vld [vmem:[%s7650_s8 + $0x1] ss:$0 sm:$0xff] }
0x11a5   :  { %5497 = vmatprep.subr.mxu0 %v6367_v14 }
0x11a6   :  { %5498 = vmatpush3.msra.mxu0 %v6367_v14 }
0x11a7   :  { %5499 = vmatprep.subr.mxu0 %v6376_v16 }
0x11a8   :  { %5500 = vmatpush3.msra.mxu0 %v6376_v16 }
0x11a9   :  { %5501 = vmatprep.subr.mxu0 %v6383_v25 }
0x11aa   :  { %5502 = vmatpush3.msra.mxu0 %v6383_v25 }
0x11ab   :  { %5503 = vmatprep.subr.mxu0 %v6392_v17 }
0x11ac   :  { %5504 = vmatpush3.msra.mxu0 %v6392_v17 }
0x11ad   :  { %5505 = vmatprep.subr.mxu0 %v6401_v21 }
0x11ae   :  { %5506 = vmatpush3.msra.mxu0 %v6401_v21 }
0x11af   :  { %5507 = vmatprep.subr.mxu0 %v6410_v26 }
0x11b0   :  { %5508 = vmatpush3.msra.mxu0 %v6410_v26 }
0x11b1   :  { %5509 = vmatprep.subr.mxu0 %v6419_v18 }
0x11b2   :  { %5510 = vmatpush3.msra.mxu0 %v6419_v18 }
0x11b3   :  { %5533 = vmatprep.subr.bf16.mxu0 %v6126_v15 }
0x1263   :  { %v1597_v14 = vpop.f32.mrf.mxu0 }
0x1264   :  { %v1598_v16 = vadd.f32 %v4701_v13, %v1597_v14 }
0x1265   :  { %v5466_v25 = vpop.f32.mrf.mxu0 }
0x1266   :  { %v6776_v17 = vadd.f32 %v1598_v16, %v6697_v5 }
0x1267   :  { %v1600_v21 = vpop.f32.mrf.mxu0 }
0x1268   :  { %v1601_v52 = vadd.f32 %v4701_v13, %v1600_v21  ;;  %v1606_v26 = vsel %vm63_vm0, %v6776_v17, 0.0 }
0x1269   :  { %1607 = vadd.xlane.f32.xlu0 %v1606_v26  ;;  %v5467_v53 = vpop.f32.mrf.mxu0 }
0x126a   :  { %v6781_v18 = vadd.f32 %v1601_v52, %v6702_v3 }
0x126c   :  { %v1609_v35 = vsel %vm63_vm0, %v6781_v18, 0.0 }
0x126d   :  { %1610 = vadd.xlane.f32.xlu1 %v1609_v35 }
0x12f2   :  { %v1608_v41 = vpop.xlane.xlu0 %1607 }
0x12f3   :  { %v1612_v55 = vmul.f32 0.03125, %v1608_v41 }
0x12f5   :  { %v1614_v46 = vsub.f32 %v6776_v17, %v1612_v55 }
0x12f6   :  { %v1611_v5 = vpop.xlane.xlu1 %1610 }
0x12f7   :  { %v1613_v1 = vmul.f32 0.03125, %v1611_v5  ;;  %v1616_v56 = vmul.f32 %v1614_v46, %v1614_v46 }
0x12f9   :  { %v1615_v58 = vsub.f32 %v6781_v18, %v1613_v1  ;;  %v1618_v59 = vsel %vm63_vm0, %v1616_v56, 0.0  ;;  %v6857_v56 = vld [vmem:[%s7652_s10] sm:$0xff] }
0x12fa   :  { %1619 = vadd.xlane.f32.xlu0 %v1618_v59 }
0x12fb   :  { %v1617_v60 = vmul.f32 %v1615_v58, %v1615_v58 }
0x12fd   :  { %v1621_v3 = vsel %vm63_vm0, %v1617_v60, 0.0 }
0x12fe   :  { %1622 = vadd.xlane.f32.xlu1 %v1621_v3 }
0x1383   :  { %v1620_v62 = vpop.xlane.xlu0 %1619 }
0x1384   :  { %v1624_v63 = vmul.f32 0.03125, %v1620_v62 }
0x1386   :  { %v1626_v2 = vadd.f32 1e-05, %v1624_v63 }
0x1387   :  { %v1623_v4 = vpop.xlane.xlu1 %1622 }
0x1388   :  { %v1625_v6 = vmul.f32 0.03125, %v1623_v4  ;;  %6004 = vrsqrt.f32 %v1626_v2 }
0x138a   :  { %v1627_v9 = vadd.f32 1e-05, %v1625_v6 }
0x138c   :  { %6006 = vrsqrt.f32 %v1627_v9 }
0x1395   :  { %v6005_v10 = vpop.eup %6004 }
0x1396   :  { %v1630_v11 = vmul.f32 %v6005_v10, %v1614_v46  ;;  %v6851_v46 = vld [vmem:[%s7652_s10 + $0x8] sm:$0xff] }
0x1399   :  { %v6007_v19 = vpop.eup %6006 }
0x139a   :  { %v1631_v8 = vmul.f32 %v6007_v19, %v1615_v58 }
0x139c   :  { %v1632_v23 = vpack.c.bf16 %v1631_v8, %v1630_v11 }
0x139e   :  { %5473 = vmatmul.mubr.msk.bf16.vlgmr.msra.gmra.mxu1 %vm63_vm0, %v1632_v23 }
0x145e   :  { %v1695_v28 = vpop.f32.mrf.mxu1 }
0x145f   :  { %v6800_v31 = vadd.f32 %v4715_v27, %v1695_v28 }
0x1460   :  { %v5474_v24 = vpop.f32.mrf.mxu1 }
0x1461   :  { %5492 = vmatprep.mubr.msk.f32.mxu1 %vm63_vm0, %v6800_v31  ;;  %v1708_v12 = vmul.f32 %v6800_v31, %v6276_v36  ;;  %v1706_v48 = vmul.f32 %v6800_v31, %v6283_v39  ;;  %v1704_v0 = vmul.f32 %v6800_v31, %v6296_v47  ;;  %v1702_v14 = vmul.f32 %v6800_v31, %v6310_v54 }
0x1462   :  { %v1698_v20 = vpop.f32.mrf.mxu1  ;;  %v1716_v3 = vmul.f32 %v6800_v31, %v6430_v30  ;;  %v1714_v61 = vmul.f32 %v6800_v31, %v6439_v22  ;;  %v1712_v62 = vmul.f32 %v6800_v31, %v6449_v38  ;;  %v1710_v2 = vmul.f32 %v6800_v31, %v6459_v45 }
0x1463   :  { %v6806_v33 = vadd.f32 %v4715_v27, %v1698_v20  ;;  %1738 = vrot.lane.b32.xlu1 %v1708_v12, %s6129_s27 }
0x1464   :  { %v5475_v40 = vpop.f32.mrf.mxu1 }
0x1465   :  { %v1709_v43 = vmul.f32 %v6806_v33, %v6291_v44  ;;  %v1707_v29 = vmul.f32 %v6806_v33, %v6278_v37  ;;  %v1705_v50 = vmul.f32 %v6806_v33, %v6304_v51  ;;  %v1703_v13 = vmul.f32 %v6806_v33, %v6318_v57 }
0x1466   :  { %v1717_v7 = vmul.f32 %v6806_v33, %v6434_v32  ;;  %v1715_v63 = vmul.f32 %v6806_v33, %v6444_v34  ;;  %v1713_v4 = vmul.f32 %v6806_v33, %v6454_v42  ;;  %v1711_v6 = vmul.f32 %v6806_v33, %v6464_v49 }
0x1467   :  { %1740 = vrot.lane.b32.xlu0 %v1709_v43, %s6129_s27  ;;  %1736 = vrot.lane.b32.xlu1 %v1707_v29, %s6129_s27 }
0x146b   :  { %1734 = vrot.lane.b32.xlu1 %v1706_v48, %s6129_s27  ;;  %1732 = vrot.lane.b32.xlu0 %v1705_v50, %s6129_s27  ;;  %v5910_v48 = vld [vmem:[%s7645_s3 + $0x28] sm:$0xff]  }
0x146f   :  { %1730 = vrot.lane.b32.xlu1 %v1704_v0, %s6129_s27  ;;  %1728 = vrot.lane.b32.xlu0 %v1703_v13, %s6129_s27 }
0x1473   :  { %1726 = vrot.lane.b32.xlu1 %v1702_v14, %s6129_s27 }
0x14d5   :  { %v1739_v16 = vpop.permute.xlu1 %1738 }
0x14d9   :  { %v1741_v25 = vpop.permute.xlu0 %1740  ;;  %v1737_v21 = vpop.permute.xlu1 %1736 }
0x14da   :  { %5476 = vmatprep.subr.msk.mxu1 %vm63_vm0, %v1741_v25 }
0x14db   :  { %5477 = vmatpush3.xpose.msk.msra.mxu1 %vm63_vm0, %v1741_v25 }
0x14dc   :  { %5478 = vmatprep.subr.msk.mxu1 %vm63_vm0, %v1739_v16 }
0x14dd   :  { %v1735_v52 = vpop.permute.xlu1 %1734  ;;  %v1733_v26 = vpop.permute.xlu0 %1732 }
0x14df   :  { %5479 = vmatpush3.xpose.msk.msra.mxu1 %vm63_vm0, %v1739_v16 }
0x14e0   :  { %5480 = vmatprep.subr.msk.mxu1 %vm63_vm0, %v1737_v21 }
0x14e1   :  { %v1731_v53 = vpop.permute.xlu1 %1730  ;;  %v1729_v35 = vpop.permute.xlu0 %1728 }
0x14e3   :  { %5481 = vmatpush3.xpose.msk.msra.mxu1 %vm63_vm0, %v1737_v21  ;;  %v5911_v21 = vld [vmem:[%s7645_s3 + $0x20] sm:$0xff]  }
0x14e4   :  { %5482 = vmatprep.subr.msk.mxu1 %vm63_vm0, %v1735_v52 }
0x14e5   :  { %v1727_v41 = vpop.permute.xlu1 %1726 }
0x14e7   :  { %5483 = vmatpush3.xpose.msk.msra.mxu1 %vm63_vm0, %v1735_v52 }
0x14e8   :  { %5484 = vmatprep.subr.msk.mxu1 %vm63_vm0, %v1733_v26 }
0x14eb   :  { %5485 = vmatpush3.xpose.msk.msra.mxu1 %vm63_vm0, %v1733_v26 }
0x14ec   :  { %5486 = vmatprep.subr.msk.mxu1 %vm63_vm0, %v1731_v53 }
0x14ef   :  { %5487 = vmatpush3.xpose.msk.msra.mxu1 %vm63_vm0, %v1731_v53 }
0x14f0   :  { %5488 = vmatprep.subr.msk.mxu1 %vm63_vm0, %v1729_v35 }
0x14f3   :  { %5489 = vmatpush3.xpose.msk.msra.mxu1 %vm63_vm0, %v1729_v35  ;;  %v4738_v35 = vld [vmem:[%s7646_s4 + $0x2] ss:$0 sm:$0xff] }
0x14f4   :  { %5490 = vmatprep.subr.msk.mxu1 %vm63_vm0, %v1727_v41 }
0x14f7   :  { %5491 = vmatpush3.xpose.msk.msra.mxu1 %vm63_vm0, %v1727_v41 }
0x14fa   :  { %5493 = vmatmul.mubr.msk.f32.vlgmr.msra.gmra.mxu1 %vm63_vm0, %v6806_v33 }
0x15ba   :  { %v5494_v55 = vpop.f32.mrf.mxu1 }
0x15bb   :  { %v1836_v5 = vadd.f32 %v6851_v46, %v5494_v55 }
0x15bc   :  { %v1830_v1 = vpop.f32.mrf.mxu1 }
0x15bd   :  { %v1831_v58 = vadd.f32 %v6857_v56, %v1830_v1  ;;  %v1842_v59 = vsel %vm352_vm2, %v1836_v5, -inf }
0x15be   :  { %1843 = vmax.xlane.f32.xlu1 %v1842_v59 }
0x15bf   :  { %v1839_v60 = vsel %vm352_vm2, %v1831_v58, -inf }
0x15c0   :  { %1840 = vmax.xlane.f32.xlu0 %v1839_v60 }
0x15cf   :  { %1956 = vrot.lane.b32.xlu1 %v1716_v3, %s6130_s18 }
0x15d3   :  { %1952 = vrot.lane.b32.xlu1 %v1714_v61, %s6130_s18 }
0x15d6   :  { %1958 = vrot.lane.b32.xlu0 %v1717_v7, %s6130_s18 }
0x15d7   :  { %1948 = vrot.lane.b32.xlu1 %v1712_v62, %s6130_s18 }
0x15da   :  { %1954 = vrot.lane.b32.xlu0 %v1715_v63, %s6130_s18 }
0x15db   :  { %1944 = vrot.lane.b32.xlu1 %v1710_v2, %s6130_s18 }
0x15de   :  { %1950 = vrot.lane.b32.xlu0 %v1713_v4, %s6130_s18 }
0x15e2   :  { %1946 = vrot.lane.b32.xlu0 %v1711_v6, %s6130_s18 }
0x1647   :  { %v1844_v9 = vpop.xlane.xlu1 %1843 }
0x1648   :  { %v1846_v10 = vsub.f32 %v1836_v5, %v1844_v9 }
0x1649   :  { %v1841_v19 = vpop.xlane.xlu0 %1840 }
0x164a   :  { %v1845_v11 = vsub.f32 %v1831_v58, %v1841_v19  ;;  %v1849_v8 = vmul.f32 1.442695, %v1846_v10 }
0x164b   :  { %v1957_v23 = vpop.permute.xlu1 %1956 }
0x164c   :  { %v1847_v27 = vmul.f32 1.442695, %v1845_v11  ;;  %v5912_v11 = vld [vmem:[%s7647_s5 + $0x28] sm:$0xff]  }
0x164d   :  { %v1959_v28 = vpop.permute.xlu0 %1958 }
0x164e   :  { %6008 = vpow2.f32 %v1847_v27  ;;  %5514 = vmatprep.subr.mxu1 %v1959_v28 }
0x164f   :  { %6010 = vpow2.f32 %v1849_v8  ;;  %v1953_v31 = vpop.permute.xlu1 %1952  ;;  %5515 = vmatpush3.msra.mxu1 %v1959_v28  ;;  %v5913_v8 = vld [vmem:[%s7647_s5 + $0x20] sm:$0xff]  }
0x1650   :  { %5516 = vmatprep.subr.mxu1 %v1957_v23 }
0x1651   :  { %5517 = vmatpush3.msra.mxu1 %v1957_v23  ;;  %v1955_v24 = vpop.permute.xlu0 %1954 }
0x1652   :  { %5518 = vmatprep.subr.mxu1 %v1955_v24 }
0x1653   :  { %5519 = vmatpush3.msra.mxu1 %v1955_v24  ;;  %v1949_v12 = vpop.permute.xlu1 %1948 }
0x1654   :  { %5520 = vmatprep.subr.mxu1 %v1953_v31 }
0x1655   :  { %5521 = vmatpush3.msra.mxu1 %v1953_v31  ;;  %v1951_v20 = vpop.permute.xlu0 %1950 }
0x1656   :  { %5522 = vmatprep.subr.mxu1 %v1951_v20 }
0x1657   :  { %5523 = vmatpush3.msra.mxu1 %v1951_v20  ;;  %v1945_v43 = vpop.permute.xlu1 %1944 }
0x1658   :  { %5524 = vmatprep.subr.mxu1 %v1949_v12 }
0x1659   :  { %5525 = vmatpush3.msra.mxu1 %v1949_v12  ;;  %v1947_v33 = vpop.permute.xlu0 %1946 }
0x165a   :  { %5526 = vmatprep.subr.mxu1 %v1947_v33 }
0x165b   :  { %v6009_v40 = vpop.eup %6008  ;;  %5527 = vmatpush3.msra.mxu1 %v1947_v33 }
0x165c   :  { %v6011_v29 = vpop.eup %6010  ;;  %5511 = vmatprep.mubr.msk.f32.mxu0 %vm352_vm2, %v6009_v40  ;;  %5528 = vmatprep.subr.mxu1 %v1945_v43 }
0x165d   :  { %5512 = vmatmul.mubr.msk.f32.vlgmr.msra.gmra.mxu0 %vm352_vm2, %v6011_v29  ;;  %5529 = vmatpush3.msra.mxu1 %v1945_v43 }
0x165e   :  { %5537 = vmatprep.mubr.msk.bf16.mxu0 %vm6127_vm1, %v6126_v15  ;;  %5549 = vmatprep.subr.bf16.mxu1 %v6126_v15 }
0x165f   :  { %5534 = vmatpush3.bf16.msra.mxu0 %v5910_v48  ;;  %v5914_v48 = vld [vmem:[%s7649_s7 + $0xb8] sm:$0xff]  }
0x1660   :  { %5535 = vmatprep.subr.bf16.mxu0 %v6126_v15 }
0x1663   :  { %5536 = vmatpush3.bf16.msra.mxu0 %v5911_v21  ;;  %v5921_v21 = vld [vmem:[%s7649_s7 + $0x80] sm:$0xff]  }
0x1664   :  { %5541 = vmatprep.subr.bf16.mxu0 %v6126_v15 }
0x171d   :  { %v5513_v50 = vpop.f32.mrf.mxu0 }
0x171e   :  { %6012 = vrcp.f32 %v5513_v50  ;;  %v5915_v50 = vld [vmem:[%s7649_s7 + $0xb0] sm:$0xff]  }
0x171f   :  { %v1923_v0 = vpop.f32.mrf.mxu0 }
0x1720   :  { %6014 = vrcp.f32 %v1923_v0  ;;  %v5916_v0 = vld [vmem:[%s7649_s7 + $0xa8] sm:$0xff]  }
0x172b   :  { %v6013_v13 = vpop.eup %6012 }
0x172c   :  { %v1935_v25 = vmul.f32 %v6013_v13, %v6011_v29  ;;  %v5917_v13 = vld [vmem:[%s7649_s7 + $0xa0] sm:$0xff]  }
0x172d   :  { %v6015_v14 = vpop.eup %6014 }
0x172e   :  { %v1934_v16 = vmul.f32 %v6015_v14, %v6009_v40  ;;  %v5918_v14 = vld [vmem:[%s7649_s7 + $0x98] sm:$0xff]  }
0x1730   :  { %5530 = vmatprep.mubr.msk.f32.mxu1 %vm352_vm2, %v1934_v16  ;;  %v5919_v16 = vld [vmem:[%s7649_s7 + $0x90] sm:$0xff]  }
0x1731   :  { %5531 = vmatmul.mubr.msk.f32.vlgmr.msra.gmra.mxu1 %vm352_vm2, %v1935_v25  ;;  %v5920_v25 = vld [vmem:[%s7649_s7 + $0x88] sm:$0xff]  }
0x1732   :  { %5565 = vmatprep.mubr.msk.bf16.mxu1 %vm6127_vm1, %v6126_v15  ;;  %5550 = vmatpush3.bf16.msra.mxu1 %v5914_v48 }
0x1733   :  { %5551 = vmatprep.subr.bf16.mxu1 %v6126_v15 }
0x1736   :  { %5552 = vmatpush3.bf16.msra.mxu1 %v5915_v50 }
0x1737   :  { %5553 = vmatprep.subr.bf16.mxu1 %v6126_v15 }
0x173a   :  { %5554 = vmatpush3.bf16.msra.mxu1 %v5916_v0 }
0x173b   :  { %5555 = vmatprep.subr.bf16.mxu1 %v6126_v15 }
0x173e   :  { %5556 = vmatpush3.bf16.msra.mxu1 %v5917_v13 }
0x173f   :  { %5557 = vmatprep.subr.bf16.mxu1 %v6126_v15 }
0x1742   :  { %5558 = vmatpush3.bf16.msra.mxu1 %v5918_v14 }
0x1743   :  { %5559 = vmatprep.subr.bf16.mxu1 %v6126_v15 }
0x1746   :  { %5560 = vmatpush3.bf16.msra.mxu1 %v5919_v16 }
0x1747   :  { %5561 = vmatprep.subr.bf16.mxu1 %v6126_v15 }
0x174a   :  { %5562 = vmatpush3.bf16.msra.mxu1 %v5920_v25 }
0x174b   :  { %5563 = vmatprep.subr.bf16.mxu1 %v6126_v15 }
0x174e   :  { %5564 = vmatpush3.bf16.msra.mxu1 %v5921_v21 }
0x17f1   :  { %v5532_v52 = vpop.f32.mrf.mxu1 }
0x17f3   :  { %v2040_v26 = vpop.f32.mrf.mxu1 }
0x17f4   :  { %v2049_v53 = vpack.c.bf16 %v5532_v52, %v2040_v26  ;;  %v6968_v52 = vld [vmem:[%s7653_s11 + $0x38] sm:$0xff]  ;;  %v4747_v26 = vld [vmem:[%s7648_s6 + $0x2] ss:$0 sm:$0xff] }
0x17f5   :  { %5596 = vmatprep.subr.mxu1 %v6968_v52 }
0x17f6   :  { %5538 = vmatmul.mubr.msk.bf16.vlgmr.msra.gmra.mxu0 %vm63_vm0, %v2049_v53 }
0x17f7   :  { %5545 = vmatprep.mubr.msk.bf16.mxu0 %vm6127_vm1, %v6126_v15  ;;  %5542 = vmatpush3.bf16.msra.mxu0 %v5912_v11 }
0x17f8   :  { %5543 = vmatprep.subr.bf16.mxu0 %v6126_v15 }
0x17fb   :  { %5544 = vmatpush3.bf16.msra.mxu0 %v5913_v8 }
0x17fc   :  { %5569 = vmatprep.subr.bf16.mxu0 %v6126_v15 }
0x18b6   :  { %v2112_v41 = vpop.f32.mrf.mxu0 }
0x18b7   :  { %v2113_v55 = vadd.f32 %v4738_v35, %v2112_v41 }
0x18b8   :  { %v5539_v5 = vpop.f32.mrf.mxu0 }
0x18b9   :  { %v6910_v1 = vadd.f32 %v2113_v55, %v6776_v17 }
0x18ba   :  { %v2115_v58 = vpop.f32.mrf.mxu0 }
0x18bb   :  { %v2116_v59 = vadd.f32 %v4738_v35, %v2115_v58  ;;  %v2121_v60 = vsel %vm63_vm0, %v6910_v1, 0.0 }
0x18bc   :  { %2122 = vadd.xlane.f32.xlu0 %v2121_v60  ;;  %v5540_v3 = vpop.f32.mrf.mxu0 }
0x18bd   :  { %v6915_v61 = vadd.f32 %v2116_v59, %v6781_v18 }
0x18bf   :  { %v2124_v7 = vsel %vm63_vm0, %v6915_v61, 0.0 }
0x18c0   :  { %2125 = vadd.xlane.f32.xlu1 %v2124_v7 }
0x1945   :  { %v2123_v62 = vpop.xlane.xlu0 %2122 }
0x1946   :  { %v2127_v63 = vmul.f32 0.03125, %v2123_v62 }
0x1948   :  { %v2129_v2 = vsub.f32 %v6910_v1, %v2127_v63 }
0x1949   :  { %v2126_v17 = vpop.xlane.xlu1 %2125 }
0x194a   :  { %v2128_v4 = vmul.f32 0.03125, %v2126_v17  ;;  %v2131_v6 = vmul.f32 %v2129_v2, %v2129_v2 }
0x194c   :  { %v2130_v9 = vsub.f32 %v6915_v61, %v2128_v4  ;;  %v2133_v10 = vsel %vm63_vm0, %v2131_v6, 0.0 }
0x194d   :  { %2134 = vadd.xlane.f32.xlu0 %v2133_v10 }
0x194e   :  { %v2132_v19 = vmul.f32 %v2130_v9, %v2130_v9 }
0x1950   :  { %v2136_v18 = vsel %vm63_vm0, %v2132_v19, 0.0 }
0x1951   :  { %2137 = vadd.xlane.f32.xlu0 %v2136_v18 }
0x19d6   :  { %v2135_v23 = vpop.xlane.xlu0 %2134 }
0x19d7   :  { %v2139_v27 = vmul.f32 0.03125, %v2135_v23 }
0x19d9   :  { %v2141_v28 = vadd.f32 1e-05, %v2139_v27 }
0x19da   :  { %v2138_v31 = vpop.xlane.xlu0 %2137 }
0x19db   :  { %v2140_v24 = vmul.f32 0.03125, %v2138_v31  ;;  %6016 = vrsqrt.f32 %v2141_v28  ;;  %v6978_v31 = vld [vmem:[%s7653_s11 + $0x30] sm:$0xff] }
0x19dd   :  { %v2142_v12 = vadd.f32 1e-05, %v2140_v24  ;;  %v6985_v24 = vld [vmem:[%s7653_s11 + $0x28] sm:$0xff] }
0x19df   :  { %6018 = vrsqrt.f32 %v2142_v12  ;;  %v6992_v12 = vld [vmem:[%s7653_s11 + $0x20] sm:$0xff] }
0x19e8   :  { %v6017_v20 = vpop.eup %6016 }
0x19e9   :  { %v2145_v40 = vmul.f32 %v6017_v20, %v2129_v2  ;;  %v6999_v20 = vld [vmem:[%s7653_s11 + $0x18] sm:$0xff] }
0x19ec   :  { %v6019_v33 = vpop.eup %6018 }
0x19ed   :  { %v2146_v43 = vmul.f32 %v6019_v33, %v2130_v9  ;;  %v7006_v33 = vld [vmem:[%s7653_s11 + $0x10] sm:$0xff] }
0x19ef   :  { %v2147_v29 = vpack.c.bf16 %v2146_v43, %v2145_v40  ;;  %v7013_v40 = vld [vmem:[%s7653_s11 + $0x8] sm:$0xff]  ;;  %v7020_v43 = vld [vmem:[%s7653_s11] sm:$0xff] }
0x19f1   :  { %5546 = vmatmul.mubr.msk.bf16.vlgmr.msra.gmra.mxu0 %vm63_vm0, %v2147_v29  ;;  %v4768_v29 = vld [vmem:[%s7650_s8 + $0x2] ss:$0 sm:$0xff] }
0x19f2   :  { %5573 = vmatprep.mubr.msk.bf16.mxu0 %vm6127_vm1, %v6126_v15 }
0x1ab1   :  { %v2210_v53 = vpop.f32.mrf.mxu0 }
0x1ab2   :  { %v2211_v35 = vadd.f32 %v4747_v26, %v2210_v53 }
0x1ab3   :  { %v5547_v41 = vpop.f32.mrf.mxu0 }
0x1ab4   :  { %v2219_v55 = vmul.f32 0.044715, %v2211_v35  ;;  %v2217_v18 = vmul.f32 0.5, %v2211_v35 }
0x1ab5   :  { %v2213_v5 = vpop.f32.mrf.mxu0 }
0x1ab6   :  { %v2221_v58 = vmul.f32 %v2219_v55, %v2211_v35  ;;  %v2214_v59 = vadd.f32 %v4747_v26, %v2213_v5 }
0x1ab7   :  { %v5548_v60 = vpop.f32.mrf.mxu0 }
0x1ab8   :  { %v2223_v3 = vmul.f32 %v2221_v58, %v2211_v35  ;;  %v2220_v7 = vmul.f32 0.044715, %v2214_v59  ;;  %v2218_v11 = vmul.f32 0.5, %v2214_v59 }
0x1aba   :  { %v2225_v62 = vadd.f32 %v2223_v3, %v2211_v35  ;;  %v2222_v63 = vmul.f32 %v2220_v7, %v2214_v59  ;;  %v5922_v7 = vld [vmem:[%s7643_s1 + $0x38] sm:$0xff]  }
0x1abb   :  { %5570 = vmatpush3.bf16.msra.mxu0 %v5922_v7 }
0x1abc   :  { %v2227_v2 = vmul.f32 0.7978846, %v2225_v62  ;;  %v2224_v17 = vmul.f32 %v2222_v63, %v2214_v59  ;;  %v5923_v62 = vld [vmem:[%s7643_s1 + $0x30] sm:$0xff]   ;;  %5571 = vmatprep.subr.bf16.mxu0 %v6126_v15 }
0x1abe   :  { %6020 = vtanh.f32 %v2227_v2  ;;  %v2226_v4 = vadd.f32 %v2224_v17, %v2214_v59 }
0x1abf   :  { %5572 = vmatpush3.bf16.msra.mxu0 %v5923_v62 }
0x1ac0   :  { %v2228_v6 = vmul.f32 0.7978846, %v2226_v4 }
0x1ac2   :  { %6022 = vtanh.f32 %v2228_v6 }
0x1acb   :  { %v6021_v9 = vpop.eup %6020 }
0x1acc   :  { %v2231_v10 = vadd.f32 1.0, %v6021_v9 }
0x1ace   :  { %v2233_v23 = vmul.f32 %v2231_v10, %v2217_v18 }
0x1acf   :  { %v6023_v19 = vpop.eup %6022 }
0x1ad0   :  { %v2232_v8 = vadd.f32 1.0, %v6023_v19 }
0x1ad2   :  { %v2234_v27 = vmul.f32 %v2232_v8, %v2218_v11 }
0x1ad4   :  { %v2235_v28 = vpack.c.bf16 %v2234_v27, %v2233_v23  ;;  %v4782_v23 = vld [vmem:[%s7644_s2 + $0x3] ss:$0 sm:$0xff] }
0x1ad6   :  { %5566 = vmatmul.mubr.bf16.vlgmr.msra.gmra.mxu1 %v2235_v28 }
0x1ad7   :  { %5597 = vmatpush3.msra.mxu1 %v6968_v52 }
0x1ad8   :  { %5598 = vmatprep.subr.mxu1 %v6978_v31 }
0x1ad9   :  { %5599 = vmatpush3.msra.mxu1 %v6978_v31 }
0x1ada   :  { %5600 = vmatprep.subr.mxu1 %v6985_v24 }
0x1adb   :  { %5601 = vmatpush3.msra.mxu1 %v6985_v24 }
0x1adc   :  { %5602 = vmatprep.subr.mxu1 %v6992_v12 }
0x1add   :  { %5603 = vmatpush3.msra.mxu1 %v6992_v12 }
0x1ade   :  { %5604 = vmatprep.subr.mxu1 %v6999_v20 }
0x1adf   :  { %5605 = vmatpush3.msra.mxu1 %v6999_v20 }
0x1ae0   :  { %5606 = vmatprep.subr.mxu1 %v7006_v33 }
0x1ae1   :  { %5607 = vmatpush3.msra.mxu1 %v7006_v33 }
0x1ae2   :  { %5608 = vmatprep.subr.mxu1 %v7013_v40 }
0x1ae3   :  { %5609 = vmatpush3.msra.mxu1 %v7013_v40 }
0x1ae4   :  { %5610 = vmatprep.subr.mxu1 %v7020_v43 }
0x1ae5   :  { %5611 = vmatpush3.msra.mxu1 %v7020_v43 }
0x1ae6   :  { %5634 = vmatprep.subr.bf16.mxu1 %v6126_v15 }
0x1b96   :  { %v2343_v48 = vpop.f32.mrf.mxu1 }
0x1b97   :  { %v2344_v50 = vadd.f32 %v4768_v29, %v2343_v48 }
0x1b98   :  { %v5567_v0 = vpop.f32.mrf.mxu1 }
0x1b99   :  { %v7029_v13 = vadd.f32 %v2344_v50, %v6910_v1 }
0x1b9a   :  { %v2346_v14 = vpop.f32.mrf.mxu1 }
0x1b9b   :  { %v2347_v16 = vadd.f32 %v4768_v29, %v2346_v14  ;;  %v2352_v25 = vsel %vm63_vm0, %v7029_v13, 0.0 }
0x1b9c   :  { %2353 = vadd.xlane.f32.xlu0 %v2352_v25  ;;  %v5568_v21 = vpop.f32.mrf.mxu1 }
0x1b9d   :  { %v7034_v26 = vadd.f32 %v2347_v16, %v6915_v61 }
0x1b9f   :  { %v2355_v53 = vsel %vm63_vm0, %v7034_v26, 0.0 }
0x1ba0   :  { %2356 = vadd.xlane.f32.xlu1 %v2355_v53 }
0x1c25   :  { %v2354_v35 = vpop.xlane.xlu0 %2353 }
0x1c26   :  { %v2358_v41 = vmul.f32 0.03125, %v2354_v35 }
0x1c28   :  { %v2360_v55 = vsub.f32 %v7029_v13, %v2358_v41 }
0x1c29   :  { %v2357_v1 = vpop.xlane.xlu1 %2356 }
0x1c2a   :  { %v2359_v5 = vmul.f32 0.03125, %v2357_v1  ;;  %v2362_v58 = vmul.f32 %v2360_v55, %v2360_v55 }
0x1c2c   :  { %v2361_v59 = vsub.f32 %v7034_v26, %v2359_v5  ;;  %v2364_v60 = vsel %vm63_vm0, %v2362_v58, 0.0 }
0x1c2d   :  { %2365 = vadd.xlane.f32.xlu0 %v2364_v60 }
0x1c2e   :  { %v2363_v3 = vmul.f32 %v2361_v59, %v2361_v59 }
0x1c30   :  { %v2367_v61 = vsel %vm63_vm0, %v2363_v3, 0.0 }
0x1c31   :  { %2368 = vadd.xlane.f32.xlu1 %v2367_v61 }
0x1cb6   :  { %v2366_v63 = vpop.xlane.xlu0 %2365 }
0x1cb7   :  { %v2370_v2 = vmul.f32 0.03125, %v2366_v63 }
0x1cb9   :  { %v2372_v17 = vadd.f32 1e-05, %v2370_v2 }
0x1cba   :  { %v2369_v4 = vpop.xlane.xlu1 %2368 }
0x1cbb   :  { %v2371_v6 = vmul.f32 0.03125, %v2369_v4  ;;  %6024 = vrsqrt.f32 %v2372_v17 }
0x1cbd   :  { %v2373_v9 = vadd.f32 1e-05, %v2371_v6 }
0x1cbf   :  { %6026 = vrsqrt.f32 %v2373_v9 }
0x1cc8   :  { %v6025_v10 = vpop.eup %6024 }
0x1cc9   :  { %v2376_v18 = vmul.f32 %v6025_v10, %v2360_v55 }
0x1ccc   :  { %v6027_v19 = vpop.eup %6026 }
0x1ccd   :  { %v2377_v11 = vmul.f32 %v6027_v19, %v2361_v59 }
0x1ccf   :  { %v2378_v8 = vpack.c.bf16 %v2377_v11, %v2376_v18 }
0x1cd1   :  { %5574 = vmatmul.mubr.msk.bf16.vlgmr.msra.gmra.mxu0 %vm63_vm0, %v2378_v8 }
0x1d91   :  { %v2441_v27 = vpop.f32.mrf.mxu0 }
0x1d92   :  { %v7053_v28 = vadd.f32 %v4782_v23, %v2441_v27 }
0x1d93   :  { %v5575_v29 = vpop.f32.mrf.mxu0 }
0x1d94   :  { %5593 = vmatprep.mubr.msk.f32.mxu0 %vm63_vm0, %v7053_v28  ;;  %v2454_v48 = vmul.f32 %v7053_v28, %v6276_v36  ;;  %v2452_v21 = vmul.f32 %v7053_v28, %v6283_v39  ;;  %v2450_v35 = vmul.f32 %v7053_v28, %v6296_v47  ;;  %v2448_v55 = vmul.f32 %v7053_v28, %v6310_v54 }
0x1d95   :  { %v2444_v50 = vpop.f32.mrf.mxu0  ;;  %v2462_v9 = vmul.f32 %v7053_v28, %v6430_v30  ;;  %v2460_v10 = vmul.f32 %v7053_v28, %v6439_v22  ;;  %v2456_v18 = vmul.f32 %v7053_v28, %v6459_v45 }
0x1d96   :  { %v7059_v0 = vadd.f32 %v4782_v23, %v2444_v50  ;;  %2484 = vrot.lane.b32.xlu1 %v2454_v48, %s6129_s27 }
0x1d97   :  { %v5576_v14 = vpop.f32.mrf.mxu0 }
0x1d98   :  { %v2455_v16 = vmul.f32 %v7059_v0, %v6291_v44  ;;  %v2453_v25 = vmul.f32 %v7059_v0, %v6278_v37  ;;  %v2451_v53 = vmul.f32 %v7059_v0, %v6304_v51  ;;  %v2449_v41 = vmul.f32 %v7059_v0, %v6318_v57 }
0x1d99   :  { %v2461_v19 = vmul.f32 %v7059_v0, %v6444_v34  ;;  %v2459_v11 = vmul.f32 %v7059_v0, %v6454_v42  ;;  %v2457_v8 = vmul.f32 %v7059_v0, %v6464_v49 }
0x1d9a   :  { %2486 = vrot.lane.b32.xlu0 %v2455_v16, %s6129_s27  ;;  %2482 = vrot.lane.b32.xlu1 %v2453_v25, %s6129_s27 }
0x1d9e   :  { %2480 = vrot.lane.b32.xlu1 %v2452_v21, %s6129_s27  ;;  %2478 = vrot.lane.b32.xlu0 %v2451_v53, %s6129_s27 }
0x1da2   :  { %2476 = vrot.lane.b32.xlu1 %v2450_v35, %s6129_s27  ;;  %2474 = vrot.lane.b32.xlu0 %v2449_v41, %s6129_s27 }
0x1da6   :  { %2472 = vrot.lane.b32.xlu1 %v2448_v55, %s6129_s27 }
0x1e08   :  { %v2485_v1 = vpop.permute.xlu1 %2484 }
0x1e0c   :  { %v2487_v5 = vpop.permute.xlu0 %2486  ;;  %v2483_v58 = vpop.permute.xlu1 %2482 }
0x1e0d   :  { %5577 = vmatprep.subr.msk.mxu0 %vm63_vm0, %v2487_v5 }
0x1e0e   :  { %5578 = vmatpush3.xpose.msk.msra.mxu0 %vm63_vm0, %v2487_v5  ;;  %v5924_v5 = vld [vmem:[%s7645_s3 + $0x38] sm:$0xff]  }
0x1e0f   :  { %5579 = vmatprep.subr.msk.mxu0 %vm63_vm0, %v2485_v1 }
0x1e10   :  { %v2481_v59 = vpop.permute.xlu1 %2480  ;;  %v2479_v60 = vpop.permute.xlu0 %2478 }
0x1e12   :  { %5580 = vmatpush3.xpose.msk.msra.mxu0 %vm63_vm0, %v2485_v1 }
0x1e13   :  { %5581 = vmatprep.subr.msk.mxu0 %vm63_vm0, %v2483_v58 }
0x1e14   :  { %v2477_v3 = vpop.permute.xlu1 %2476  ;;  %v2475_v61 = vpop.permute.xlu0 %2474 }
0x1e16   :  { %5582 = vmatpush3.xpose.msk.msra.mxu0 %vm63_vm0, %v2483_v58 }
0x1e17   :  { %5583 = vmatprep.subr.msk.mxu0 %vm63_vm0, %v2481_v59 }
0x1e18   :  { %v2473_v7 = vpop.permute.xlu1 %2472 }
0x1e1a   :  { %5584 = vmatpush3.xpose.msk.msra.mxu0 %vm63_vm0, %v2481_v59 }
0x1e1b   :  { %5585 = vmatprep.subr.msk.mxu0 %vm63_vm0, %v2479_v60 }
0x1e1e   :  { %5586 = vmatpush3.xpose.msk.msra.mxu0 %vm63_vm0, %v2479_v60 }
0x1e1f   :  { %5587 = vmatprep.subr.msk.mxu0 %vm63_vm0, %v2477_v3 }
0x1e22   :  { %5588 = vmatpush3.xpose.msk.msra.mxu0 %vm63_vm0, %v2477_v3 }
0x1e23   :  { %5589 = vmatprep.subr.msk.mxu0 %vm63_vm0, %v2475_v61 }
0x1e26   :  { %5590 = vmatpush3.xpose.msk.msra.mxu0 %vm63_vm0, %v2475_v61 }
0x1e27   :  { %5591 = vmatprep.subr.msk.mxu0 %vm63_vm0, %v2473_v7 }
0x1e2a   :  { %5592 = vmatpush3.xpose.msk.msra.mxu0 %vm63_vm0, %v2473_v7 }
0x1e2d   :  { %5594 = vmatmul.mubr.msk.f32.vlgmr.msra.gmra.mxu0 %vm63_vm0, %v7059_v0 }
0x1eed   :  { %v5595_v62 = vpop.f32.mrf.mxu0 }
0x1eee   :  { %v2582_v63 = vadd.f32 %v6851_v46, %v5595_v62  ;;  %v2463_v46 = vmul.f32 %v7059_v0, %v6434_v32  ;;  %v5925_v62 = vld [vmem:[%s7645_s3 + $0x30] sm:$0xff]  }
0x1eef   :  { %v2576_v2 = vpop.f32.mrf.mxu0 }
0x1ef0   :  { %v2577_v17 = vadd.f32 %v6857_v56, %v2576_v2  ;;  %v2588_v4 = vsel %vm352_vm2, %v2582_v63, -inf  ;;  %v2458_v56 = vmul.f32 %v7053_v28, %v6449_v38 }
0x1ef1   :  { %2589 = vmax.xlane.f32.xlu1 %v2588_v4  ;;  %v4805_v4 = vld [vmem:[%s7646_s4 + $0x3] ss:$0 sm:$0xff] }
0x1ef2   :  { %v2585_v6 = vsel %vm352_vm2, %v2577_v17, -inf }
0x1ef3   :  { %2586 = vmax.xlane.f32.xlu0 %v2585_v6 }
0x1f02   :  { %2702 = vrot.lane.b32.xlu1 %v2462_v9, %s6130_s18 }
0x1f06   :  { %2698 = vrot.lane.b32.xlu1 %v2460_v10, %s6130_s18 }
0x1f09   :  { %2704 = vrot.lane.b32.xlu0 %v2463_v46, %s6130_s18 }
0x1f0a   :  { %2694 = vrot.lane.b32.xlu1 %v2458_v56, %s6130_s18 }
0x1f0d   :  { %2700 = vrot.lane.b32.xlu0 %v2461_v19, %s6130_s18 }
0x1f0e   :  { %2690 = vrot.lane.b32.xlu1 %v2456_v18, %s6130_s18 }
0x1f11   :  { %2696 = vrot.lane.b32.xlu0 %v2459_v11, %s6130_s18 }
0x1f15   :  { %2692 = vrot.lane.b32.xlu0 %v2457_v8, %s6130_s18 }
0x1f7a   :  { %v2590_v23 = vpop.xlane.xlu1 %2589 }
0x1f7b   :  { %v2592_v27 = vsub.f32 %v2582_v63, %v2590_v23 }
0x1f7c   :  { %v2587_v29 = vpop.xlane.xlu0 %2586 }
0x1f7d   :  { %v2591_v48 = vsub.f32 %v2577_v17, %v2587_v29  ;;  %v2595_v50 = vmul.f32 1.442695, %v2592_v27 }
0x1f7e   :  { %v2703_v28 = vpop.permute.xlu1 %2702 }
0x1f7f   :  { %v2593_v14 = vmul.f32 1.442695, %v2591_v48 }
0x1f80   :  { %v2705_v16 = vpop.permute.xlu0 %2704 }
0x1f81   :  { %6028 = vpow2.f32 %v2593_v14  ;;  %5615 = vmatprep.subr.mxu0 %v2705_v16 }
0x1f82   :  { %6030 = vpow2.f32 %v2595_v50  ;;  %v2699_v25 = vpop.permute.xlu1 %2698  ;;  %5616 = vmatpush3.msra.mxu0 %v2705_v16 }
0x1f83   :  { %5617 = vmatprep.subr.mxu0 %v2703_v28 }
0x1f84   :  { %5618 = vmatpush3.msra.mxu0 %v2703_v28  ;;  %v2701_v21 = vpop.permute.xlu0 %2700 }
0x1f85   :  { %5619 = vmatprep.subr.mxu0 %v2701_v21 }
0x1f86   :  { %5620 = vmatpush3.msra.mxu0 %v2701_v21  ;;  %v2695_v0 = vpop.permute.xlu1 %2694  ;;  %v5926_v21 = vld [vmem:[%s7647_s5 + $0x38] sm:$0xff]  }
0x1f87   :  { %5621 = vmatprep.subr.mxu0 %v2699_v25 }
0x1f88   :  { %5622 = vmatpush3.msra.mxu0 %v2699_v25  ;;  %v2697_v53 = vpop.permute.xlu0 %2696 }
0x1f89   :  { %5623 = vmatprep.subr.mxu0 %v2697_v53 }
0x1f8a   :  { %5624 = vmatpush3.msra.mxu0 %v2697_v53  ;;  %v2691_v55 = vpop.permute.xlu1 %2690 }
0x1f8b   :  { %5625 = vmatprep.subr.mxu0 %v2695_v0 }
0x1f8c   :  { %5626 = vmatpush3.msra.mxu0 %v2695_v0  ;;  %v2693_v35 = vpop.permute.xlu0 %2692  ;;  %v5927_v0 = vld [vmem:[%s7647_s5 + $0x30] sm:$0xff]  }
0x1f8d   :  { %5627 = vmatprep.subr.mxu0 %v2693_v35 }
0x1f8e   :  { %v6029_v41 = vpop.eup %6028  ;;  %5628 = vmatpush3.msra.mxu0 %v2693_v35 }
0x1f8f   :  { %v6031_v1 = vpop.eup %6030  ;;  %5612 = vmatprep.mubr.msk.f32.mxu1 %vm352_vm2, %v6029_v41  ;;  %5629 = vmatprep.subr.mxu0 %v2691_v55 }
0x1f90   :  { %5613 = vmatmul.mubr.msk.f32.vlgmr.msra.gmra.mxu1 %vm352_vm2, %v6031_v1  ;;  %5630 = vmatpush3.msra.mxu0 %v2691_v55 }
0x1f91   :  { %5638 = vmatprep.mubr.msk.bf16.mxu1 %vm6127_vm1, %v6126_v15  ;;  %5650 = vmatprep.subr.bf16.mxu0 %v6126_v15 }
0x1f92   :  { %5635 = vmatpush3.bf16.msra.mxu1 %v5924_v5 }
0x1f93   :  { %5636 = vmatprep.subr.bf16.mxu1 %v6126_v15 }
0x1f96   :  { %5637 = vmatpush3.bf16.msra.mxu1 %v5925_v62  ;;  %v5929_v62 = vld [vmem:[%s7649_s7 + $0xf0] sm:$0xff]  }
0x1f97   :  { %5642 = vmatprep.subr.bf16.mxu1 %v6126_v15 }
0x2050   :  { %v5614_v58 = vpop.f32.mrf.mxu1 }
0x2051   :  { %6032 = vrcp.f32 %v5614_v58 }
0x2052   :  { %v2669_v59 = vpop.f32.mrf.mxu1 }
0x2053   :  { %6034 = vrcp.f32 %v2669_v59 }
0x205e   :  { %v6033_v60 = vpop.eup %6032 }
0x205f   :  { %v2681_v7 = vmul.f32 %v6033_v60, %v6031_v1 }
0x2060   :  { %v6035_v3 = vpop.eup %6034 }
0x2061   :  { %v2680_v61 = vmul.f32 %v6035_v3, %v6029_v41 }
0x2063   :  { %5631 = vmatprep.mubr.msk.f32.mxu0 %vm352_vm2, %v2680_v61 }
0x2064   :  { %5632 = vmatmul.mubr.msk.f32.vlgmr.msra.gmra.mxu0 %vm352_vm2, %v2681_v7  ;;  %v5928_v7 = vld [vmem:[%s7649_s7 + $0xf8] sm:$0xff]  }
0x2065   :  { %5666 = vmatprep.mubr.msk.bf16.mxu0 %vm6127_vm1, %v6126_v15  ;;  %5651 = vmatpush3.bf16.msra.mxu0 %v5928_v7 }
0x2066   :  { %5652 = vmatprep.subr.bf16.mxu0 %v6126_v15 }
0x2069   :  { %5653 = vmatpush3.bf16.msra.mxu0 %v5929_v62 }
0x206a   :  { %5654 = vmatprep.subr.bf16.mxu0 %v6126_v15 }
0x2124   :  { %v5633_v63 = vpop.f32.mrf.mxu0 }
0x2126   :  { %v2786_v2 = vpop.f32.mrf.mxu0 }
0x2127   :  { %v2795_v17 = vpack.c.bf16 %v5633_v63, %v2786_v2  ;;  %v5930_v63 = vld [vmem:[%s7649_s7 + $0xe8] sm:$0xff]   ;;  %v5931_v2 = vld [vmem:[%s7649_s7 + $0xe0] sm:$0xff]  }
0x2128   :  { %5655 = vmatpush3.bf16.msra.mxu0 %v5930_v63 }
0x2129   :  { %5639 = vmatmul.mubr.msk.bf16.vlgmr.msra.gmra.mxu1 %vm63_vm0, %v2795_v17  ;;  %5656 = vmatprep.subr.bf16.mxu0 %v6126_v15  ;;  %v5932_v17 = vld [vmem:[%s7649_s7 + $0xd8] sm:$0xff]  }
0x212a   :  { %5646 = vmatprep.mubr.msk.bf16.mxu1 %vm6127_vm1, %v6126_v15  ;;  %5643 = vmatpush3.bf16.msra.mxu1 %v5926_v21 }
0x212b   :  { %5644 = vmatprep.subr.bf16.mxu1 %v6126_v15 }
0x212c   :  { %5657 = vmatpush3.bf16.msra.mxu0 %v5931_v2 }
0x212d   :  { %5658 = vmatprep.subr.bf16.mxu0 %v6126_v15 }
0x212e   :  { %5645 = vmatpush3.bf16.msra.mxu1 %v5927_v0 }
0x212f   :  { %5670 = vmatprep.subr.bf16.mxu1 %v6126_v15 }
0x2130   :  { %5659 = vmatpush3.bf16.msra.mxu0 %v5932_v17 }
0x2131   :  { %5660 = vmatprep.subr.bf16.mxu0 %v6126_v15 }
0x21e9   :  { %v2858_v6 = vpop.f32.mrf.mxu1 }
0x21ea   :  { %v2859_v9 = vadd.f32 %v4805_v4, %v2858_v6  ;;  %v5934_v6 = vld [vmem:[%s7649_s7 + $0xc8] sm:$0xff]  }
0x21eb   :  { %v5640_v10 = vpop.f32.mrf.mxu1 }
0x21ec   :  { %v7153_v46 = vadd.f32 %v2859_v9, %v7029_v13  ;;  %v5935_v9 = vld [vmem:[%s7649_s7 + $0xc0] sm:$0xff]  }
0x21ed   :  { %v2861_v56 = vpop.f32.mrf.mxu1  ;;  %v4814_v10 = vld [vmem:[%s7648_s6 + $0x3] ss:$0 sm:$0xff] }
0x21ee   :  { %v2862_v19 = vadd.f32 %v4805_v4, %v2861_v56  ;;  %v2867_v18 = vsel %vm63_vm0, %v7153_v46, 0.0  ;;  %v5933_v4 = vld [vmem:[%s7649_s7 + $0xd0] sm:$0xff]  }
0x21ef   :  { %2868 = vadd.xlane.f32.xlu0 %v2867_v18  ;;  %v5641_v11 = vpop.f32.mrf.mxu1  ;;  %5661 = vmatpush3.bf16.msra.mxu0 %v5933_v4 }
0x21f0   :  { %v7158_v8 = vadd.f32 %v2862_v19, %v7034_v26  ;;  %5662 = vmatprep.subr.bf16.mxu0 %v6126_v15 }
0x21f2   :  { %v2870_v23 = vsel %vm63_vm0, %v7158_v8, 0.0 }
0x21f3   :  { %2871 = vadd.xlane.f32.xlu1 %v2870_v23  ;;  %5663 = vmatpush3.bf16.msra.mxu0 %v5934_v6 }
0x21f4   :  { %5664 = vmatprep.subr.bf16.mxu0 %v6126_v15 }
0x21f7   :  { %5665 = vmatpush3.bf16.msra.mxu0 %v5935_v9 }
0x21f8   :  { %5697 = vmatprep.subr.mxu0 %v6968_v52 }
0x2278   :  { %v2869_v27 = vpop.xlane.xlu0 %2868 }
0x2279   :  { %v2873_v29 = vmul.f32 0.03125, %v2869_v27 }
0x227b   :  { %v2875_v48 = vsub.f32 %v7153_v46, %v2873_v29 }
0x227c   :  { %v2872_v13 = vpop.xlane.xlu1 %2871 }
0x227d   :  { %v2874_v50 = vmul.f32 0.03125, %v2872_v13  ;;  %v2877_v28 = vmul.f32 %v2875_v48, %v2875_v48 }
0x227f   :  { %v2876_v14 = vsub.f32 %v7158_v8, %v2874_v50  ;;  %v2879_v16 = vsel %vm63_vm0, %v2877_v28, 0.0 }
0x2280   :  { %2880 = vadd.xlane.f32.xlu0 %v2879_v16 }
0x2281   :  { %v2878_v25 = vmul.f32 %v2876_v14, %v2876_v14 }
0x2283   :  { %v2882_v26 = vsel %vm63_vm0, %v2878_v25, 0.0 }
0x2284   :  { %2883 = vadd.xlane.f32.xlu0 %v2882_v26 }
0x2309   :  { %v2881_v53 = vpop.xlane.xlu0 %2880 }
0x230a   :  { %v2885_v35 = vmul.f32 0.03125, %v2881_v53 }
0x230c   :  { %v2887_v41 = vadd.f32 1e-05, %v2885_v35 }
0x230d   :  { %v2884_v55 = vpop.xlane.xlu0 %2883 }
0x230e   :  { %v2886_v1 = vmul.f32 0.03125, %v2884_v55  ;;  %6036 = vrsqrt.f32 %v2887_v41 }
0x2310   :  { %v2888_v5 = vadd.f32 1e-05, %v2886_v1 }
0x2312   :  { %6038 = vrsqrt.f32 %v2888_v5 }
0x231b   :  { %v6037_v58 = vpop.eup %6036 }
0x231c   :  { %v2891_v60 = vmul.f32 %v6037_v58, %v2875_v48 }
0x231f   :  { %v6039_v59 = vpop.eup %6038 }
0x2320   :  { %v2892_v3 = vmul.f32 %v6039_v59, %v2876_v14 }
0x2322   :  { %v2893_v61 = vpack.c.bf16 %v2892_v3, %v2891_v60 }
0x2324   :  { %5647 = vmatmul.mubr.msk.bf16.vlgmr.msra.gmra.mxu1 %vm63_vm0, %v2893_v61 }
0x2325   :  { %5674 = vmatprep.mubr.msk.bf16.mxu1 %vm6127_vm1, %v6126_v15 }
0x23e4   :  { %v2956_v56 = vpop.f32.mrf.mxu1 }
0x23e5   :  { %v2957_v19 = vadd.f32 %v4814_v10, %v2956_v56  ;;  %v5937_v56 = vld [vmem:[%s7643_s1 + $0x40] sm:$0xff]  }
0x23e6   :  { %v5648_v18 = vpop.f32.mrf.mxu1 }
0x23e7   :  { %v2965_v11 = vmul.f32 0.044715, %v2957_v19  ;;  %v2963_v41 = vmul.f32 0.5, %v2957_v19 }
0x23e8   :  { %v2959_v23 = vpop.f32.mrf.mxu1 }
0x23e9   :  { %v2967_v27 = vmul.f32 %v2965_v11, %v2957_v19  ;;  %v2960_v29 = vadd.f32 %v4814_v10, %v2959_v23  ;;  %v5936_v10 = vld [vmem:[%s7643_s1 + $0x48] sm:$0xff]  }
0x23ea   :  { %v5649_v48 = vpop.f32.mrf.mxu1  ;;  %5671 = vmatpush3.bf16.msra.mxu1 %v5936_v10 }
0x23eb   :  { %v2969_v13 = vmul.f32 %v2967_v27, %v2957_v19  ;;  %v2966_v50 = vmul.f32 0.044715, %v2960_v29  ;;  %v2964_v55 = vmul.f32 0.5, %v2960_v29  ;;  %5672 = vmatprep.subr.bf16.mxu1 %v6126_v15 }
0x23ed   :  { %v2971_v28 = vadd.f32 %v2969_v13, %v2957_v19  ;;  %v2968_v14 = vmul.f32 %v2966_v50, %v2960_v29 }
0x23ee   :  { %5673 = vmatpush3.bf16.msra.mxu1 %v5937_v56 }
0x23ef   :  { %v2973_v16 = vmul.f32 0.7978846, %v2971_v28  ;;  %v2970_v25 = vmul.f32 %v2968_v14, %v2960_v29 }
0x23f1   :  { %6040 = vtanh.f32 %v2973_v16  ;;  %v2972_v26 = vadd.f32 %v2970_v25, %v2960_v29  ;;  %v4849_v16 = vld [vmem:[%s7644_s2 + $0x4] ss:$0 sm:$0xff] }
0x23f3   :  { %v2974_v21 = vmul.f32 0.7978846, %v2972_v26 }
0x23f5   :  { %6042 = vtanh.f32 %v2974_v21 }
0x23fe   :  { %v6041_v0 = vpop.eup %6040 }
0x23ff   :  { %v2977_v53 = vadd.f32 1.0, %v6041_v0 }
0x2401   :  { %v2979_v5 = vmul.f32 %v2977_v53, %v2963_v41 }
0x2402   :  { %v6043_v35 = vpop.eup %6042 }
0x2403   :  { %v2978_v1 = vadd.f32 1.0, %v6043_v35 }
0x2405   :  { %v2980_v58 = vmul.f32 %v2978_v1, %v2964_v55 }
0x2407   :  { %v2981_v59 = vpack.c.bf16 %v2980_v58, %v2979_v5 }
0x2409   :  { %5667 = vmatmul.mubr.bf16.vlgmr.msra.gmra.mxu0 %v2981_v59 }
0x240a   :  { %5698 = vmatpush3.msra.mxu0 %v6968_v52  ;;  %v4835_v52 = vld [vmem:[%s7650_s8 + $0x3] ss:$0 sm:$0xff] }
0x240b   :  { %5699 = vmatprep.subr.mxu0 %v6978_v31 }
0x240c   :  { %5700 = vmatpush3.msra.mxu0 %v6978_v31 }
0x240d   :  { %5701 = vmatprep.subr.mxu0 %v6985_v24 }
0x240e   :  { %5702 = vmatpush3.msra.mxu0 %v6985_v24 }
0x240f   :  { %5703 = vmatprep.subr.mxu0 %v6992_v12 }
0x2410   :  { %5704 = vmatpush3.msra.mxu0 %v6992_v12 }
0x2411   :  { %5705 = vmatprep.subr.mxu0 %v6999_v20 }
0x2412   :  { %5706 = vmatpush3.msra.mxu0 %v6999_v20 }
0x2413   :  { %5707 = vmatprep.subr.mxu0 %v7006_v33 }
0x2414   :  { %5708 = vmatpush3.msra.mxu0 %v7006_v33 }
0x2415   :  { %5709 = vmatprep.subr.mxu0 %v7013_v40 }
0x2416   :  { %5710 = vmatpush3.msra.mxu0 %v7013_v40 }
0x2417   :  { %5711 = vmatprep.subr.mxu0 %v7020_v43 }
0x2418   :  { %5712 = vmatpush3.msra.mxu0 %v7020_v43 }
0x2419   :  { %5735 = vmatprep.subr.bf16.mxu0 %v6126_v15 }
0x24c9   :  { %v3089_v31 = vpop.f32.mrf.mxu0 }
0x24ca   :  { %v3090_v24 = vadd.f32 %v4835_v52, %v3089_v31 }
0x24cb   :  { %v5668_v12 = vpop.f32.mrf.mxu0 }
0x24cc   :  { %v7232_v20 = vadd.f32 %v3090_v24, %v7153_v46 }
0x24cd   :  { %v3092_v33 = vpop.f32.mrf.mxu0 }
0x24ce   :  { %v3093_v60 = vadd.f32 %v4835_v52, %v3092_v33  ;;  %v3098_v40 = vsel %vm63_vm0, %v7232_v20, 0.0 }
0x24cf   :  { %3099 = vadd.xlane.f32.xlu0 %v3098_v40  ;;  %v5669_v3 = vpop.f32.mrf.mxu0 }
0x24d0   :  { %v7237_v43 = vadd.f32 %v3093_v60, %v7158_v8 }
0x24d2   :  { %v3101_v61 = vsel %vm63_vm0, %v7237_v43, 0.0 }
0x24d3   :  { %3102 = vadd.xlane.f32.xlu1 %v3101_v61 }
0x2558   :  { %v3100_v7 = vpop.xlane.xlu0 %3099 }
0x2559   :  { %v3104_v62 = vmul.f32 0.03125, %v3100_v7 }
0x255b   :  { %v3106_v63 = vsub.f32 %v7232_v20, %v3104_v62 }
0x255c   :  { %v3103_v46 = vpop.xlane.xlu1 %3102 }
0x255d   :  { %v3105_v2 = vmul.f32 0.03125, %v3103_v46  ;;  %v3108_v17 = vmul.f32 %v3106_v63, %v3106_v63 }
0x255f   :  { %v3107_v4 = vsub.f32 %v7237_v43, %v3105_v2  ;;  %v3110_v6 = vsel %vm63_vm0, %v3108_v17, 0.0  ;;  %v7313_v17 = vld [vmem:[%s7652_s10] sm:$0xff] }
0x2560   :  { %3111 = vadd.xlane.f32.xlu0 %v3110_v6 }
0x2561   :  { %v3109_v9 = vmul.f32 %v3107_v4, %v3107_v4 }
0x2563   :  { %v3113_v8 = vsel %vm63_vm0, %v3109_v9, 0.0 }
0x2564   :  { %3114 = vadd.xlane.f32.xlu1 %v3113_v8 }
0x25e9   :  { %v3112_v19 = vpop.xlane.xlu0 %3111 }
0x25ea   :  { %v3116_v18 = vmul.f32 0.03125, %v3112_v19 }
0x25ec   :  { %v3118_v11 = vadd.f32 1e-05, %v3116_v18 }
0x25ed   :  { %v3115_v23 = vpop.xlane.xlu1 %3114 }
0x25ee   :  { %v3117_v27 = vmul.f32 0.03125, %v3115_v23  ;;  %6044 = vrsqrt.f32 %v3118_v11 }
0x25f0   :  { %v3119_v29 = vadd.f32 1e-05, %v3117_v27 }
0x25f2   :  { %6046 = vrsqrt.f32 %v3119_v29 }
0x25fb   :  { %v6045_v48 = vpop.eup %6044 }
0x25fc   :  { %v3122_v50 = vmul.f32 %v6045_v48, %v3106_v63  ;;  %v7307_v63 = vld [vmem:[%s7652_s10 + $0x8] sm:$0xff] }
0x25ff   :  { %v6047_v13 = vpop.eup %6046 }
0x2600   :  { %v3123_v28 = vmul.f32 %v6047_v13, %v3107_v4 }
0x2602   :  { %v3124_v14 = vpack.c.bf16 %v3123_v28, %v3122_v50 }
0x2604   :  { %5675 = vmatmul.mubr.msk.bf16.vlgmr.msra.gmra.mxu1 %vm63_vm0, %v3124_v14 }
0x26c4   :  { %v3187_v25 = vpop.f32.mrf.mxu1 }
0x26c5   :  { %v7256_v26 = vadd.f32 %v4849_v16, %v3187_v25 }
0x26c6   :  { %v5676_v21 = vpop.f32.mrf.mxu1 }
0x26c7   :  { %5694 = vmatprep.mubr.msk.f32.mxu1 %vm63_vm0, %v7256_v26  ;;  %v3200_v0 = vmul.f32 %v7256_v26, %v6276_v36  ;;  %v3198_v5 = vmul.f32 %v7256_v26, %v6283_v39  ;;  %v3196_v59 = vmul.f32 %v7256_v26, %v6296_v47  ;;  %v3194_v31 = vmul.f32 %v7256_v26, %v6310_v54 }
0x26c8   :  { %v3190_v53 = vpop.f32.mrf.mxu1  ;;  %v3208_v8 = vmul.f32 %v7256_v26, %v6430_v30  ;;  %v3206_v10 = vmul.f32 %v7256_v26, %v6439_v22  ;;  %v3204_v19 = vmul.f32 %v7256_v26, %v6449_v38  ;;  %v3202_v11 = vmul.f32 %v7256_v26, %v6459_v45 }
0x26c9   :  { %v7262_v35 = vadd.f32 %v4849_v16, %v3190_v53  ;;  %3230 = vrot.lane.b32.xlu1 %v3200_v0, %s6129_s27 }
0x26ca   :  { %v5677_v41 = vpop.f32.mrf.mxu1 }
0x26cb   :  { %v3201_v55 = vmul.f32 %v7262_v35, %v6291_v44  ;;  %v3199_v1 = vmul.f32 %v7262_v35, %v6278_v37  ;;  %v3197_v58 = vmul.f32 %v7262_v35, %v6304_v51  ;;  %v3195_v52 = vmul.f32 %v7262_v35, %v6318_v57 }
0x26cc   :  { %v3209_v56 = vmul.f32 %v7262_v35, %v6434_v32  ;;  %v3207_v18 = vmul.f32 %v7262_v35, %v6444_v34  ;;  %v3205_v23 = vmul.f32 %v7262_v35, %v6454_v42  ;;  %v3203_v27 = vmul.f32 %v7262_v35, %v6464_v49 }
0x26cd   :  { %3232 = vrot.lane.b32.xlu0 %v3201_v55, %s6129_s27  ;;  %3228 = vrot.lane.b32.xlu1 %v3199_v1, %s6129_s27 }
0x26d1   :  { %3226 = vrot.lane.b32.xlu1 %v3198_v5, %s6129_s27  ;;  %3224 = vrot.lane.b32.xlu0 %v3197_v58, %s6129_s27  ;;  %v5938_v5 = vld [vmem:[%s7645_s3 + $0x48] sm:$0xff]  }
0x26d5   :  { %3222 = vrot.lane.b32.xlu1 %v3196_v59, %s6129_s27  ;;  %3220 = vrot.lane.b32.xlu0 %v3195_v52, %s6129_s27 }
0x26d9   :  { %3218 = vrot.lane.b32.xlu1 %v3194_v31, %s6129_s27 }
0x273b   :  { %v3231_v24 = vpop.permute.xlu1 %3230 }
0x273f   :  { %v3233_v12 = vpop.permute.xlu0 %3232  ;;  %v3229_v33 = vpop.permute.xlu1 %3228 }
0x2740   :  { %5678 = vmatprep.subr.msk.mxu1 %vm63_vm0, %v3233_v12 }
0x2741   :  { %5679 = vmatpush3.xpose.msk.msra.mxu1 %vm63_vm0, %v3233_v12 }
0x2742   :  { %5680 = vmatprep.subr.msk.mxu1 %vm63_vm0, %v3231_v24 }
0x2743   :  { %v3227_v60 = vpop.permute.xlu1 %3226  ;;  %v3225_v40 = vpop.permute.xlu0 %3224 }
0x2745   :  { %5681 = vmatpush3.xpose.msk.msra.mxu1 %vm63_vm0, %v3231_v24 }
0x2746   :  { %5682 = vmatprep.subr.msk.mxu1 %vm63_vm0, %v3229_v33 }
0x2747   :  { %v3223_v3 = vpop.permute.xlu1 %3222  ;;  %v3221_v61 = vpop.permute.xlu0 %3220 }
0x2749   :  { %5683 = vmatpush3.xpose.msk.msra.mxu1 %vm63_vm0, %v3229_v33  ;;  %v5939_v33 = vld [vmem:[%s7645_s3 + $0x40] sm:$0xff]  }
0x274a   :  { %5684 = vmatprep.subr.msk.mxu1 %vm63_vm0, %v3227_v60 }
0x274b   :  { %v3219_v7 = vpop.permute.xlu1 %3218 }
0x274d   :  { %5685 = vmatpush3.xpose.msk.msra.mxu1 %vm63_vm0, %v3227_v60 }
0x274e   :  { %5686 = vmatprep.subr.msk.mxu1 %vm63_vm0, %v3225_v40 }
0x2751   :  { %5687 = vmatpush3.xpose.msk.msra.mxu1 %vm63_vm0, %v3225_v40 }
0x2752   :  { %5688 = vmatprep.subr.msk.mxu1 %vm63_vm0, %v3223_v3 }
0x2755   :  { %5689 = vmatpush3.xpose.msk.msra.mxu1 %vm63_vm0, %v3223_v3 }
0x2756   :  { %5690 = vmatprep.subr.msk.mxu1 %vm63_vm0, %v3221_v61 }
0x2759   :  { %5691 = vmatpush3.xpose.msk.msra.mxu1 %vm63_vm0, %v3221_v61  ;;  %v4872_v61 = vld [vmem:[%s7646_s4 + $0x4] ss:$0 sm:$0xff] }
0x275a   :  { %5692 = vmatprep.subr.msk.mxu1 %vm63_vm0, %v3219_v7 }
0x275d   :  { %5693 = vmatpush3.xpose.msk.msra.mxu1 %vm63_vm0, %v3219_v7 }
0x2760   :  { %5695 = vmatmul.mubr.msk.f32.vlgmr.msra.gmra.mxu1 %vm63_vm0, %v7262_v35 }
0x2820   :  { %v5696_v62 = vpop.f32.mrf.mxu1 }
0x2821   :  { %v3328_v46 = vadd.f32 %v7307_v63, %v5696_v62 }
0x2822   :  { %v3322_v2 = vpop.f32.mrf.mxu1 }
0x2823   :  { %v3323_v4 = vadd.f32 %v7313_v17, %v3322_v2  ;;  %v3334_v6 = vsel %vm352_vm2, %v3328_v46, -inf }
0x2824   :  { %3335 = vmax.xlane.f32.xlu1 %v3334_v6 }
0x2825   :  { %v3331_v9 = vsel %vm352_vm2, %v3323_v4, -inf }
0x2826   :  { %3332 = vmax.xlane.f32.xlu0 %v3331_v9 }
0x2835   :  { %3448 = vrot.lane.b32.xlu1 %v3208_v8, %s6130_s18 }
0x2839   :  { %3444 = vrot.lane.b32.xlu1 %v3206_v10, %s6130_s18 }
0x283c   :  { %3450 = vrot.lane.b32.xlu0 %v3209_v56, %s6130_s18 }
0x283d   :  { %3440 = vrot.lane.b32.xlu1 %v3204_v19, %s6130_s18 }
0x2840   :  { %3446 = vrot.lane.b32.xlu0 %v3207_v18, %s6130_s18 }
0x2841   :  { %3436 = vrot.lane.b32.xlu1 %v3202_v11, %s6130_s18 }
0x2844   :  { %3442 = vrot.lane.b32.xlu0 %v3205_v23, %s6130_s18 }
0x2848   :  { %3438 = vrot.lane.b32.xlu0 %v3203_v27, %s6130_s18 }
0x28ad   :  { %v3336_v29 = vpop.xlane.xlu1 %3335 }
0x28ae   :  { %v3338_v48 = vsub.f32 %v3328_v46, %v3336_v29 }
0x28af   :  { %v3333_v13 = vpop.xlane.xlu0 %3332 }
0x28b0   :  { %v3337_v50 = vsub.f32 %v3323_v4, %v3333_v13  ;;  %v3341_v28 = vmul.f32 1.442695, %v3338_v48 }
0x28b1   :  { %v3449_v14 = vpop.permute.xlu1 %3448 }
0x28b2   :  { %v3339_v16 = vmul.f32 1.442695, %v3337_v50  ;;  %v5940_v50 = vld [vmem:[%s7647_s5 + $0x48] sm:$0xff]  }
0x28b3   :  { %v3451_v25 = vpop.permute.xlu0 %3450 }
0x28b4   :  { %6048 = vpow2.f32 %v3339_v16  ;;  %5716 = vmatprep.subr.mxu1 %v3451_v25 }
0x28b5   :  { %6050 = vpow2.f32 %v3341_v28  ;;  %v3445_v26 = vpop.permute.xlu1 %3444  ;;  %5717 = vmatpush3.msra.mxu1 %v3451_v25  ;;  %v5941_v28 = vld [vmem:[%s7647_s5 + $0x40] sm:$0xff]  }
0x28b6   :  { %5718 = vmatprep.subr.mxu1 %v3449_v14 }
0x28b7   :  { %5719 = vmatpush3.msra.mxu1 %v3449_v14  ;;  %v3447_v21 = vpop.permute.xlu0 %3446 }
0x28b8   :  { %5720 = vmatprep.subr.mxu1 %v3447_v21 }
0x28b9   :  { %5721 = vmatpush3.msra.mxu1 %v3447_v21  ;;  %v3441_v0 = vpop.permute.xlu1 %3440 }
0x28ba   :  { %5722 = vmatprep.subr.mxu1 %v3445_v26 }
0x28bb   :  { %5723 = vmatpush3.msra.mxu1 %v3445_v26  ;;  %v3443_v53 = vpop.permute.xlu0 %3442 }
0x28bc   :  { %5724 = vmatprep.subr.mxu1 %v3443_v53 }
0x28bd   :  { %5725 = vmatpush3.msra.mxu1 %v3443_v53  ;;  %v3437_v55 = vpop.permute.xlu1 %3436 }
0x28be   :  { %5726 = vmatprep.subr.mxu1 %v3441_v0 }
0x28bf   :  { %5727 = vmatpush3.msra.mxu1 %v3441_v0  ;;  %v3439_v35 = vpop.permute.xlu0 %3438 }
0x28c0   :  { %5728 = vmatprep.subr.mxu1 %v3439_v35 }
0x28c1   :  { %v6049_v41 = vpop.eup %6048  ;;  %5729 = vmatpush3.msra.mxu1 %v3439_v35 }
0x28c2   :  { %v6051_v1 = vpop.eup %6050  ;;  %5713 = vmatprep.mubr.msk.f32.mxu0 %vm352_vm2, %v6049_v41  ;;  %5730 = vmatprep.subr.mxu1 %v3437_v55 }
0x28c3   :  { %5714 = vmatmul.mubr.msk.f32.vlgmr.msra.gmra.mxu0 %vm352_vm2, %v6051_v1  ;;  %5731 = vmatpush3.msra.mxu1 %v3437_v55 }
0x28c4   :  { %5739 = vmatprep.mubr.msk.bf16.mxu0 %vm6127_vm1, %v6126_v15  ;;  %5751 = vmatprep.subr.bf16.mxu1 %v6126_v15 }
0x28c5   :  { %5736 = vmatpush3.bf16.msra.mxu0 %v5938_v5  ;;  %v5942_v5 = vld [vmem:[%s7649_s7 + $0x138] sm:$0xff]  }
0x28c6   :  { %5737 = vmatprep.subr.bf16.mxu0 %v6126_v15 }
0x28c9   :  { %5738 = vmatpush3.bf16.msra.mxu0 %v5939_v33  ;;  %v5949_v33 = vld [vmem:[%s7649_s7 + $0x100] sm:$0xff]  }
0x28ca   :  { %5743 = vmatprep.subr.bf16.mxu0 %v6126_v15 }
0x2983   :  { %v5715_v58 = vpop.f32.mrf.mxu0 }
0x2984   :  { %6052 = vrcp.f32 %v5715_v58  ;;  %v5943_v58 = vld [vmem:[%s7649_s7 + $0x130] sm:$0xff]  }
0x2985   :  { %v3415_v59 = vpop.f32.mrf.mxu0 }
0x2986   :  { %6054 = vrcp.f32 %v3415_v59  ;;  %v5944_v59 = vld [vmem:[%s7649_s7 + $0x128] sm:$0xff]  }
0x2991   :  { %v6053_v52 = vpop.eup %6052 }
0x2992   :  { %v3427_v12 = vmul.f32 %v6053_v52, %v6051_v1  ;;  %v5945_v52 = vld [vmem:[%s7649_s7 + $0x120] sm:$0xff]  }
0x2993   :  { %v6055_v31 = vpop.eup %6054 }
0x2994   :  { %v3426_v24 = vmul.f32 %v6055_v31, %v6049_v41  ;;  %v5946_v31 = vld [vmem:[%s7649_s7 + $0x118] sm:$0xff]  }
0x2996   :  { %5732 = vmatprep.mubr.msk.f32.mxu1 %vm352_vm2, %v3426_v24  ;;  %v5947_v24 = vld [vmem:[%s7649_s7 + $0x110] sm:$0xff]  }
0x2997   :  { %5733 = vmatmul.mubr.msk.f32.vlgmr.msra.gmra.mxu1 %vm352_vm2, %v3427_v12  ;;  %v5948_v12 = vld [vmem:[%s7649_s7 + $0x108] sm:$0xff]  }
0x2998   :  { %5767 = vmatprep.mubr.msk.bf16.mxu1 %vm6127_vm1, %v6126_v15  ;;  %5752 = vmatpush3.bf16.msra.mxu1 %v5942_v5 }
0x2999   :  { %5753 = vmatprep.subr.bf16.mxu1 %v6126_v15 }
0x299c   :  { %5754 = vmatpush3.bf16.msra.mxu1 %v5943_v58 }
0x299d   :  { %5755 = vmatprep.subr.bf16.mxu1 %v6126_v15 }
0x29a0   :  { %5756 = vmatpush3.bf16.msra.mxu1 %v5944_v59 }
0x29a1   :  { %5757 = vmatprep.subr.bf16.mxu1 %v6126_v15 }
0x29a4   :  { %5758 = vmatpush3.bf16.msra.mxu1 %v5945_v52 }
0x29a5   :  { %5759 = vmatprep.subr.bf16.mxu1 %v6126_v15 }
0x29a8   :  { %5760 = vmatpush3.bf16.msra.mxu1 %v5946_v31 }
0x29a9   :  { %5761 = vmatprep.subr.bf16.mxu1 %v6126_v15 }
0x29ac   :  { %5762 = vmatpush3.bf16.msra.mxu1 %v5947_v24 }
0x29ad   :  { %5763 = vmatprep.subr.bf16.mxu1 %v6126_v15 }
0x29b0   :  { %5764 = vmatpush3.bf16.msra.mxu1 %v5948_v12 }
0x29b1   :  { %5765 = vmatprep.subr.bf16.mxu1 %v6126_v15 }
0x29b4   :  { %5766 = vmatpush3.bf16.msra.mxu1 %v5949_v33 }
0x2a57   :  { %v5734_v60 = vpop.f32.mrf.mxu1 }
0x2a59   :  { %v3532_v40 = vpop.f32.mrf.mxu1 }
0x2a5a   :  { %v3541_v3 = vpack.c.bf16 %v5734_v60, %v3532_v40  ;;  %v6096_v60 = vld [vmem:[%s7653_s11 + $0x38] sm:$0xff]  ;;  %v4881_v40 = vld [vmem:[%s7648_s6 + $0x4] ss:$0 sm:$0xff] }
0x2a5b   :  { %5798 = vmatprep.subr.mxu1 %v6096_v60 }
0x2a5c   :  { %5740 = vmatmul.mubr.msk.bf16.vlgmr.msra.gmra.mxu0 %vm63_vm0, %v3541_v3 }
0x2a5d   :  { %5747 = vmatprep.mubr.msk.bf16.mxu0 %vm6127_vm1, %v6126_v15  ;;  %5744 = vmatpush3.bf16.msra.mxu0 %v5940_v50 }
0x2a5e   :  { %5745 = vmatprep.subr.bf16.mxu0 %v6126_v15 }
0x2a61   :  { %5746 = vmatpush3.bf16.msra.mxu0 %v5941_v28 }
0x2a62   :  { %5771 = vmatprep.subr.bf16.mxu0 %v6126_v15 }
0x2b1c   :  { %v3604_v7 = vpop.f32.mrf.mxu0 }
0x2b1d   :  { %v3605_v62 = vadd.f32 %v4872_v61, %v3604_v7 }
0x2b1e   :  { %v5741_v46 = vpop.f32.mrf.mxu0 }
0x2b1f   :  { %v7366_v2 = vadd.f32 %v3605_v62, %v7232_v20 }
0x2b20   :  { %v3607_v4 = vpop.f32.mrf.mxu0 }
0x2b21   :  { %v3608_v6 = vadd.f32 %v4872_v61, %v3607_v4  ;;  %v3613_v9 = vsel %vm63_vm0, %v7366_v2, 0.0 }
0x2b22   :  { %3614 = vadd.xlane.f32.xlu0 %v3613_v9  ;;  %v5742_v8 = vpop.f32.mrf.mxu0 }
0x2b23   :  { %v7371_v10 = vadd.f32 %v3608_v6, %v7237_v43 }
0x2b25   :  { %v3616_v56 = vsel %vm63_vm0, %v7371_v10, 0.0 }
0x2b26   :  { %3617 = vadd.xlane.f32.xlu1 %v3616_v56 }
0x2bab   :  { %v3615_v19 = vpop.xlane.xlu0 %3614 }
0x2bac   :  { %v3619_v18 = vmul.f32 0.03125, %v3615_v19 }
0x2bae   :  { %v3621_v11 = vsub.f32 %v7366_v2, %v3619_v18 }
0x2baf   :  { %v3618_v20 = vpop.xlane.xlu1 %3617 }
0x2bb0   :  { %v3620_v23 = vmul.f32 0.03125, %v3618_v20  ;;  %v3623_v27 = vmul.f32 %v3621_v11, %v3621_v11 }
0x2bb2   :  { %v3622_v29 = vsub.f32 %v7371_v10, %v3620_v23  ;;  %v3625_v48 = vsel %vm63_vm0, %v3623_v27, 0.0 }
0x2bb3   :  { %3626 = vadd.xlane.f32.xlu0 %v3625_v48 }
0x2bb4   :  { %v3624_v13 = vmul.f32 %v3622_v29, %v3622_v29 }
0x2bb6   :  { %v3628_v43 = vsel %vm63_vm0, %v3624_v13, 0.0 }
0x2bb7   :  { %3629 = vadd.xlane.f32.xlu0 %v3628_v43 }
0x2c3c   :  { %v3627_v14 = vpop.xlane.xlu0 %3626 }
0x2c3d   :  { %v3631_v16 = vmul.f32 0.03125, %v3627_v14 }
0x2c3f   :  { %v3633_v25 = vadd.f32 1e-05, %v3631_v16 }
0x2c40   :  { %v3630_v26 = vpop.xlane.xlu0 %3629 }
0x2c41   :  { %v3632_v21 = vmul.f32 0.03125, %v3630_v26  ;;  %6056 = vrsqrt.f32 %v3633_v25  ;;  %v6097_v26 = vld [vmem:[%s7653_s11 + $0x30] sm:$0xff] }
0x2c43   :  { %v3634_v0 = vadd.f32 1e-05, %v3632_v21  ;;  %v6098_v21 = vld [vmem:[%s7653_s11 + $0x28] sm:$0xff] }
0x2c45   :  { %6058 = vrsqrt.f32 %v3634_v0  ;;  %v6099_v0 = vld [vmem:[%s7653_s11 + $0x20] sm:$0xff] }
0x2c4e   :  { %v6057_v53 = vpop.eup %6056 }
0x2c4f   :  { %v3637_v41 = vmul.f32 %v6057_v53, %v3621_v11  ;;  %v6100_v53 = vld [vmem:[%s7653_s11 + $0x18] sm:$0xff] }
0x2c52   :  { %v6059_v35 = vpop.eup %6058 }
0x2c53   :  { %v3638_v55 = vmul.f32 %v6059_v35, %v3622_v29  ;;  %v6101_v35 = vld [vmem:[%s7653_s11 + $0x10] sm:$0xff] }
0x2c55   :  { %v3639_v1 = vpack.c.bf16 %v3638_v55, %v3637_v41  ;;  %v6102_v41 = vld [vmem:[%s7653_s11 + $0x8] sm:$0xff]  ;;  %v6103_v55 = vld [vmem:[%s7653_s11] sm:$0xff] }
0x2c57   :  { %5748 = vmatmul.mubr.msk.bf16.vlgmr.msra.gmra.mxu0 %vm63_vm0, %v3639_v1  ;;  %v4902_v1 = vld [vmem:[%s7650_s8 + $0x4] ss:$0 sm:$0xff] }
0x2c58   :  { %5775 = vmatprep.mubr.msk.bf16.mxu0 %vm6127_vm1, %v6126_v15 }
0x2d17   :  { %v3702_v3 = vpop.f32.mrf.mxu0 }
0x2d18   :  { %v3703_v61 = vadd.f32 %v4881_v40, %v3702_v3 }
0x2d19   :  { %v5749_v7 = vpop.f32.mrf.mxu0 }
0x2d1a   :  { %v3711_v62 = vmul.f32 0.044715, %v3703_v61  ;;  %v3709_v43 = vmul.f32 0.5, %v3703_v61 }
0x2d1b   :  { %v3705_v46 = vpop.f32.mrf.mxu0 }
0x2d1c   :  { %v3713_v4 = vmul.f32 %v3711_v62, %v3703_v61  ;;  %v3706_v6 = vadd.f32 %v4881_v40, %v3705_v46 }
0x2d1d   :  { %v5750_v9 = vpop.f32.mrf.mxu0 }
0x2d1e   :  { %v3715_v8 = vmul.f32 %v3713_v4, %v3703_v61  ;;  %v3712_v56 = vmul.f32 0.044715, %v3706_v6  ;;  %v3710_v50 = vmul.f32 0.5, %v3706_v6 }
0x2d20   :  { %v3717_v19 = vadd.f32 %v3715_v8, %v3703_v61  ;;  %v3714_v18 = vmul.f32 %v3712_v56, %v3706_v6  ;;  %v5950_v8 = vld [vmem:[%s7643_s1 + $0x58] sm:$0xff]   ;;  %v5951_v56 = vld [vmem:[%s7643_s1 + $0x50] sm:$0xff]  }
0x2d21   :  { %5772 = vmatpush3.bf16.msra.mxu0 %v5950_v8 }
0x2d22   :  { %v3719_v11 = vmul.f32 0.7978846, %v3717_v19  ;;  %v3716_v20 = vmul.f32 %v3714_v18, %v3706_v6  ;;  %5773 = vmatprep.subr.bf16.mxu0 %v6126_v15 }
0x2d24   :  { %6060 = vtanh.f32 %v3719_v11  ;;  %v3718_v23 = vadd.f32 %v3716_v20, %v3706_v6 }
0x2d25   :  { %5774 = vmatpush3.bf16.msra.mxu0 %v5951_v56 }
0x2d26   :  { %v3720_v27 = vmul.f32 0.7978846, %v3718_v23 }
0x2d28   :  { %6062 = vtanh.f32 %v3720_v27 }
0x2d31   :  { %v6061_v29 = vpop.eup %6060 }
0x2d32   :  { %v3723_v48 = vadd.f32 1.0, %v6061_v29 }
0x2d34   :  { %v3725_v14 = vmul.f32 %v3723_v48, %v3709_v43 }
0x2d35   :  { %v6063_v13 = vpop.eup %6062 }
0x2d36   :  { %v3724_v28 = vadd.f32 1.0, %v6063_v13 }
0x2d38   :  { %v3726_v16 = vmul.f32 %v3724_v28, %v3710_v50  ;;  %v4916_v28 = vld [vmem:[%s7644_s2 + $0x5] ss:$0 sm:$0xff] }
0x2d3a   :  { %v3727_v25 = vpack.c.bf16 %v3726_v16, %v3725_v14 }
0x2d3c   :  { %5768 = vmatmul.mubr.bf16.vlgmr.msra.gmra.mxu1 %v3727_v25 }
0x2d3d   :  { %5799 = vmatpush3.msra.mxu1 %v6096_v60 }
0x2d3e   :  { %5800 = vmatprep.subr.mxu1 %v6097_v26 }
0x2d3f   :  { %5801 = vmatpush3.msra.mxu1 %v6097_v26 }
0x2d40   :  { %5802 = vmatprep.subr.mxu1 %v6098_v21 }
0x2d41   :  { %5803 = vmatpush3.msra.mxu1 %v6098_v21 }
0x2d42   :  { %5804 = vmatprep.subr.mxu1 %v6099_v0 }
0x2d43   :  { %5805 = vmatpush3.msra.mxu1 %v6099_v0 }
0x2d44   :  { %5806 = vmatprep.subr.mxu1 %v6100_v53 }
0x2d45   :  { %5807 = vmatpush3.msra.mxu1 %v6100_v53 }
0x2d46   :  { %5808 = vmatprep.subr.mxu1 %v6101_v35 }
0x2d47   :  { %5809 = vmatpush3.msra.mxu1 %v6101_v35 }
0x2d48   :  { %5810 = vmatprep.subr.mxu1 %v6102_v41 }
0x2d49   :  { %5811 = vmatpush3.msra.mxu1 %v6102_v41 }
0x2d4a   :  { %5812 = vmatprep.subr.mxu1 %v6103_v55 }
0x2d4b   :  { %5813 = vmatpush3.msra.mxu1 %v6103_v55 }
0x2d4c   :  { %5836 = vmatprep.subr.bf16.mxu1 %v6126_v15 }
0x2dfc   :  { %v3835_v5 = vpop.f32.mrf.mxu1 }
0x2dfd   :  { %v3836_v58 = vadd.f32 %v4902_v1, %v3835_v5 }
0x2dfe   :  { %v5769_v59 = vpop.f32.mrf.mxu1 }
0x2dff   :  { %v7453_v52 = vadd.f32 %v3836_v58, %v7366_v2 }
0x2e00   :  { %v3838_v31 = vpop.f32.mrf.mxu1 }
0x2e01   :  { %v3839_v24 = vadd.f32 %v4902_v1, %v3838_v31  ;;  %v3844_v12 = vsel %vm63_vm0, %v7453_v52, 0.0 }
0x2e02   :  { %3845 = vadd.xlane.f32.xlu0 %v3844_v12  ;;  %v5770_v33 = vpop.f32.mrf.mxu1 }
0x2e03   :  { %v7458_v60 = vadd.f32 %v3839_v24, %v7371_v10 }
0x2e05   :  { %v3847_v40 = vsel %vm63_vm0, %v7458_v60, 0.0 }
0x2e06   :  { %3848 = vadd.xlane.f32.xlu1 %v3847_v40 }
0x2e8b   :  { %v3846_v3 = vpop.xlane.xlu0 %3845 }
0x2e8c   :  { %v3850_v61 = vmul.f32 0.03125, %v3846_v3 }
0x2e8e   :  { %v3852_v7 = vsub.f32 %v7453_v52, %v3850_v61 }
0x2e8f   :  { %v3849_v2 = vpop.xlane.xlu1 %3848 }
0x2e90   :  { %v3851_v62 = vmul.f32 0.03125, %v3849_v2  ;;  %v3854_v46 = vmul.f32 %v3852_v7, %v3852_v7 }
0x2e92   :  { %v3853_v4 = vsub.f32 %v7458_v60, %v3851_v62  ;;  %v3856_v6 = vsel %vm63_vm0, %v3854_v46, 0.0 }
0x2e93   :  { %3857 = vadd.xlane.f32.xlu0 %v3856_v6 }
0x2e94   :  { %v3855_v9 = vmul.f32 %v3853_v4, %v3853_v4 }
0x2e96   :  { %v3859_v10 = vsel %vm63_vm0, %v3855_v9, 0.0 }
0x2e97   :  { %3860 = vadd.xlane.f32.xlu1 %v3859_v10 }
0x2f1c   :  { %v3858_v19 = vpop.xlane.xlu0 %3857 }
0x2f1d   :  { %v3862_v18 = vmul.f32 0.03125, %v3858_v19 }
0x2f1f   :  { %v3864_v11 = vadd.f32 1e-05, %v3862_v18 }
0x2f20   :  { %v3861_v20 = vpop.xlane.xlu1 %3860 }
0x2f21   :  { %v3863_v23 = vmul.f32 0.03125, %v3861_v20  ;;  %6064 = vrsqrt.f32 %v3864_v11  ;;  %v5952_v20 = vld [vmem:[%s7645_s3 + $0x58] sm:$0xff]  }
0x2f23   :  { %v3865_v27 = vadd.f32 1e-05, %v3863_v23 }
0x2f25   :  { %6066 = vrsqrt.f32 %v3865_v27 }
0x2f2e   :  { %v6065_v29 = vpop.eup %6064 }
0x2f2f   :  { %v3868_v13 = vmul.f32 %v6065_v29, %v3852_v7 }
0x2f32   :  { %v6067_v48 = vpop.eup %6066 }
0x2f33   :  { %v3869_v43 = vmul.f32 %v6067_v48, %v3853_v4 }
0x2f35   :  { %v3870_v50 = vpack.c.bf16 %v3869_v43, %v3868_v13 }
0x2f37   :  { %5776 = vmatmul.mubr.msk.bf16.vlgmr.msra.gmra.mxu0 %vm63_vm0, %v3870_v50  ;;  %v5953_v50 = vld [vmem:[%s7645_s3 + $0x50] sm:$0xff]  }
0x2ff7   :  { %v3933_v14 = vpop.f32.mrf.mxu0 }
0x2ff8   :  { %v7477_v16 = vadd.f32 %v4916_v28, %v3933_v14 }
0x2ff9   :  { %v5777_v25 = vpop.f32.mrf.mxu0 }
0x2ffa   :  { %5795 = vmatprep.mubr.msk.f32.mxu0 %vm63_vm0, %v7477_v16  ;;  %v3946_v26 = vmul.f32 %v7477_v16, %v6276_v36  ;;  %v3944_v55 = vmul.f32 %v7477_v16, %v6283_v39  ;;  %v3940_v39 = vmul.f32 %v7477_v16, %v6310_v54  ;;  %v3954_v61 = vmul.f32 %v7477_v16, %v6430_v30  ;;  %v4939_v25 = vld [vmem:[%s7646_s4 + $0x5] ss:$0 sm:$0xff] }
0x2ffb   :  { %v3936_v21 = vpop.f32.mrf.mxu0  ;;  %v3952_v7 = vmul.f32 %v7477_v16, %v6439_v22  ;;  %v3948_v2 = vmul.f32 %v7477_v16, %v6459_v45 }
0x2ffc   :  { %v7483_v0 = vadd.f32 %v4916_v28, %v3936_v21  ;;  %3976 = vrot.lane.b32.xlu1 %v3946_v26, %s6129_s27 }
0x2ffd   :  { %v5778_v53 = vpop.f32.mrf.mxu0 }
0x2ffe   :  { %v3947_v35 = vmul.f32 %v7483_v0, %v6291_v44  ;;  %v3945_v41 = vmul.f32 %v7483_v0, %v6278_v37  ;;  %v3943_v36 = vmul.f32 %v7483_v0, %v6304_v51  ;;  %v3942_v44 = vmul.f32 %v7477_v16, %v6296_v47 }
0x2fff   :  { %v3941_v37 = vmul.f32 %v7483_v0, %v6318_v57  ;;  %v3953_v30 = vmul.f32 %v7483_v0, %v6444_v34  ;;  %v3949_v22 = vmul.f32 %v7483_v0, %v6464_v49 }
0x3000   :  { %3978 = vrot.lane.b32.xlu0 %v3947_v35, %s6129_s27  ;;  %3974 = vrot.lane.b32.xlu1 %v3945_v41, %s6129_s27 }
0x3004   :  { %3972 = vrot.lane.b32.xlu1 %v3944_v55, %s6129_s27  ;;  %3970 = vrot.lane.b32.xlu0 %v3943_v36, %s6129_s27 }
0x3008   :  { %3968 = vrot.lane.b32.xlu1 %v3942_v44, %s6129_s27  ;;  %3966 = vrot.lane.b32.xlu0 %v3941_v37, %s6129_s27 }
0x300c   :  { %3964 = vrot.lane.b32.xlu1 %v3940_v39, %s6129_s27  ;;  %s6131_s27 = smov [#allocation2]  }
0x306e   :  { %v3977_v51 = vpop.permute.xlu1 %3976 }
0x3072   :  { %v3979_v1 = vpop.permute.xlu0 %3978  ;;  %v3975_v47 = vpop.permute.xlu1 %3974 }
0x3073   :  { %5779 = vmatprep.subr.msk.mxu0 %vm63_vm0, %v3979_v1 }
0x3074   :  { %5780 = vmatpush3.xpose.msk.msra.mxu0 %vm63_vm0, %v3979_v1 }
0x3075   :  { %5781 = vmatprep.subr.msk.mxu0 %vm63_vm0, %v3977_v51 }
0x3076   :  { %v3973_v57 = vpop.permute.xlu1 %3972  ;;  %v3971_v54 = vpop.permute.xlu0 %3970 }
0x3078   :  { %5782 = vmatpush3.xpose.msk.msra.mxu0 %vm63_vm0, %v3977_v51 }
0x3079   :  { %5783 = vmatprep.subr.msk.mxu0 %vm63_vm0, %v3975_v47 }
0x307a   :  { %v3969_v5 = vpop.permute.xlu1 %3968  ;;  %v3967_v58 = vpop.permute.xlu0 %3966 }
0x307c   :  { %5784 = vmatpush3.xpose.msk.msra.mxu0 %vm63_vm0, %v3975_v47 }
0x307d   :  { %5785 = vmatprep.subr.msk.mxu0 %vm63_vm0, %v3973_v57 }
0x307e   :  { %v3965_v59 = vpop.permute.xlu1 %3964 }
0x3080   :  { %5786 = vmatpush3.xpose.msk.msra.mxu0 %vm63_vm0, %v3973_v57 }
0x3081   :  { %5787 = vmatprep.subr.msk.mxu0 %vm63_vm0, %v3971_v54 }
0x3084   :  { %5788 = vmatpush3.xpose.msk.msra.mxu0 %vm63_vm0, %v3971_v54 }
0x3085   :  { %5789 = vmatprep.subr.msk.mxu0 %vm63_vm0, %v3969_v5 }
0x3088   :  { %5790 = vmatpush3.xpose.msk.msra.mxu0 %vm63_vm0, %v3969_v5 }
0x3089   :  { %5791 = vmatprep.subr.msk.mxu0 %vm63_vm0, %v3967_v58 }
0x308c   :  { %5792 = vmatpush3.xpose.msk.msra.mxu0 %vm63_vm0, %v3967_v58 }
0x308d   :  { %5793 = vmatprep.subr.msk.mxu0 %vm63_vm0, %v3965_v59 }
0x3090   :  { %5794 = vmatpush3.xpose.msk.msra.mxu0 %vm63_vm0, %v3965_v59  ;;  %v5954_v59 = vld [vmem:[%s7647_s5 + $0x58] sm:$0xff]  }
0x3093   :  { %5796 = vmatmul.mubr.msk.f32.vlgmr.msra.gmra.mxu0 %vm63_vm0, %v7483_v0 }
0x3153   :  { %v5797_v31 = vpop.f32.mrf.mxu0 }
0x3154   :  { %v4074_v24 = vadd.f32 %v7307_v63, %v5797_v31  ;;  %v3955_v63 = vmul.f32 %v7483_v0, %v6434_v32  ;;  %v3951_v32 = vmul.f32 %v7483_v0, %v6454_v42  ;;  %v5955_v31 = vld [vmem:[%s7647_s5 + $0x50] sm:$0xff]  }
0x3155   :  { %v4068_v12 = vpop.f32.mrf.mxu0 }
0x3156   :  { %v4069_v33 = vadd.f32 %v7313_v17, %v4068_v12  ;;  %v4080_v40 = vsel %vm352_vm2, %v4074_v24, -inf  ;;  %v3950_v17 = vmul.f32 %v7477_v16, %v6449_v38 }
0x3157   :  { %4081 = vmax.xlane.f32.xlu1 %v4080_v40 }
0x3158   :  { %v4077_v3 = vsel %vm352_vm2, %v4069_v33, -inf }
0x3159   :  { %4078 = vmax.xlane.f32.xlu0 %v4077_v3 }
0x3168   :  { %4194 = vrot.lane.b32.xlu1 %v3954_v61, %s6130_s18 }
0x316c   :  { %4190 = vrot.lane.b32.xlu1 %v3952_v7, %s6130_s18 }
0x316f   :  { %4196 = vrot.lane.b32.xlu0 %v3955_v63, %s6130_s18 }
0x3170   :  { %4186 = vrot.lane.b32.xlu1 %v3950_v17, %s6130_s18 }
0x3173   :  { %4192 = vrot.lane.b32.xlu0 %v3953_v30, %s6130_s18 }
0x3174   :  { %4182 = vrot.lane.b32.xlu1 %v3948_v2, %s6130_s18 }
0x3177   :  { %4188 = vrot.lane.b32.xlu0 %v3951_v32, %s6130_s18  ;;  %v5956_v32 = vld [vmem:[%s7649_s7 + $0x178] sm:$0xff]  }
0x317b   :  { %4184 = vrot.lane.b32.xlu0 %v3949_v22, %s6130_s18  ;;  %v5957_v22 = vld [vmem:[%s7649_s7 + $0x170] sm:$0xff]   ;;  %s4597_s18 = sshll.u32 %s6131_s27, 4  ;;  %s4598_s18 = int_to_ptr.vmem [resolvable:$true] %s4597_s18 }
0x317c   :  { %s6104_s29 = scalar_lea.vmem %s4598_s18, 256  ;;  %p6109_p1 = scmp.lt.s32.totalorder %s4598_s18, %s4598_s18 }
0x317d   :  { %p6105_p0 = scmp.ne.s32.totalorder %s4598_s18, %s6104_s29  ;;  %p6110_p2 = scmp.lt.s32.totalorder %s6104_s29, %s6104_s29 }
0x317f   :  { %p6111_p3 = por %p6110_p2, %p6109_p1 }
0x3181   :  { %p6112_p4 = pnand %p6111_p3, %p6105_p0 }
0x31e0   :  { %v4082_v38 = vpop.xlane.xlu1 %4081 }
0x31e1   :  { %v4084_v62 = vsub.f32 %v4074_v24, %v4082_v38  ;;  %v5958_v38 = vld [vmem:[%s7649_s7 + $0x168] sm:$0xff]  }
0x31e2   :  { %v4079_v34 = vpop.xlane.xlu0 %4078 }
0x31e3   :  { %v4083_v46 = vsub.f32 %v4069_v33, %v4079_v34  ;;  %v4087_v4 = vmul.f32 1.442695, %v4084_v62  ;;  %v5959_v62 = vld [vmem:[%s7649_s7 + $0x160] sm:$0xff]   ;;  %v5960_v34 = vld [vmem:[%s7649_s7 + $0x158] sm:$0xff]  }
0x31e4   :  { %v4195_v45 = vpop.permute.xlu1 %4194 }
0x31e5   :  { %v4085_v6 = vmul.f32 1.442695, %v4083_v46  ;;  %v5961_v46 = vld [vmem:[%s7649_s7 + $0x150] sm:$0xff]  }
0x31e6   :  { %v4197_v9 = vpop.permute.xlu0 %4196 }
0x31e7   :  { %6068 = vpow2.f32 %v4085_v6  ;;  %5817 = vmatprep.subr.mxu0 %v4197_v9  ;;  %v4948_v6 = vld [vmem:[%s7648_s6 + $0x5] ss:$0 sm:$0xff] }
0x31e8   :  { %6070 = vpow2.f32 %v4087_v4  ;;  %v4191_v10 = vpop.permute.xlu1 %4190  ;;  %5818 = vmatpush3.msra.mxu0 %v4197_v9  ;;  %v5962_v4 = vld [vmem:[%s7649_s7 + $0x148] sm:$0xff]  }
0x31e9   :  { %5819 = vmatprep.subr.mxu0 %v4195_v45 }
0x31ea   :  { %5820 = vmatpush3.msra.mxu0 %v4195_v45  ;;  %v4193_v42 = vpop.permute.xlu0 %4192  ;;  %v5963_v45 = vld [vmem:[%s7649_s7 + $0x140] sm:$0xff]  }
0x31eb   :  { %5821 = vmatprep.subr.mxu0 %v4193_v42 }
0x31ec   :  { %5822 = vmatpush3.msra.mxu0 %v4193_v42  ;;  %v4187_v49 = vpop.permute.xlu1 %4186 }
0x31ed   :  { %5823 = vmatprep.subr.mxu0 %v4191_v10 }
0x31ee   :  { %5824 = vmatpush3.msra.mxu0 %v4191_v10  ;;  %v4189_v8 = vpop.permute.xlu0 %4188 }
0x31ef   :  { %5825 = vmatprep.subr.mxu0 %v4189_v8 }
0x31f0   :  { %5826 = vmatpush3.msra.mxu0 %v4189_v8  ;;  %v4183_v18 = vpop.permute.xlu1 %4182 }
0x31f1   :  { %5827 = vmatprep.subr.mxu0 %v4187_v49 }
0x31f2   :  { %5828 = vmatpush3.msra.mxu0 %v4187_v49  ;;  %v4185_v56 = vpop.permute.xlu0 %4184 }
0x31f3   :  { %5829 = vmatprep.subr.mxu0 %v4185_v56 }
0x31f4   :  { %v6069_v19 = vpop.eup %6068  ;;  %5830 = vmatpush3.msra.mxu0 %v4185_v56 }
0x31f5   :  { %v6071_v11 = vpop.eup %6070  ;;  %5814 = vmatprep.mubr.msk.f32.mxu1 %vm352_vm2, %v6069_v19  ;;  %5831 = vmatprep.subr.mxu0 %v4183_v18 }
0x31f6   :  { %5815 = vmatmul.mubr.msk.f32.vlgmr.msra.gmra.mxu1 %vm352_vm2, %v6071_v11  ;;  %5832 = vmatpush3.msra.mxu0 %v4183_v18 }
0x31f7   :  { %5840 = vmatprep.mubr.msk.bf16.mxu1 %vm6127_vm1, %v6126_v15  ;;  %5852 = vmatprep.subr.bf16.mxu0 %v6126_v15 }
0x31f8   :  { %5837 = vmatpush3.bf16.msra.mxu1 %v5952_v20 }
0x31f9   :  { %5838 = vmatprep.subr.bf16.mxu1 %v6126_v15 }
0x31fc   :  { %5839 = vmatpush3.bf16.msra.mxu1 %v5953_v50 }
0x31fd   :  { %5844 = vmatprep.subr.bf16.mxu1 %v6126_v15 }
0x32b6   :  { %v5816_v23 = vpop.f32.mrf.mxu1 }
0x32b7   :  { %6072 = vrcp.f32 %v5816_v23 }
0x32b8   :  { %v4161_v27 = vpop.f32.mrf.mxu1 }
0x32b9   :  { %6074 = vrcp.f32 %v4161_v27 }
0x32c4   :  { %v6073_v29 = vpop.eup %6072 }
0x32c5   :  { %v4173_v43 = vmul.f32 %v6073_v29, %v6071_v11 }
0x32c6   :  { %v6075_v48 = vpop.eup %6074 }
0x32c7   :  { %v4172_v13 = vmul.f32 %v6075_v48, %v6069_v19 }
0x32c9   :  { %5833 = vmatprep.mubr.msk.f32.mxu0 %vm352_vm2, %v4172_v13 }
0x32ca   :  { %5834 = vmatmul.mubr.msk.f32.vlgmr.msra.gmra.mxu0 %vm352_vm2, %v4173_v43 }
0x32cb   :  { %5868 = vmatprep.mubr.msk.bf16.mxu0 %vm6127_vm1, %v6126_v15  ;;  %5853 = vmatpush3.bf16.msra.mxu0 %v5956_v32 }
0x32cc   :  { %5854 = vmatprep.subr.bf16.mxu0 %v6126_v15 }
0x32cf   :  { %5855 = vmatpush3.bf16.msra.mxu0 %v5957_v22 }
0x32d0   :  { %5856 = vmatprep.subr.bf16.mxu0 %v6126_v15 }
0x32d3   :  { %5857 = vmatpush3.bf16.msra.mxu0 %v5958_v38 }
0x32d4   :  { %5858 = vmatprep.subr.bf16.mxu0 %v6126_v15 }
0x32d7   :  { %5859 = vmatpush3.bf16.msra.mxu0 %v5959_v62 }
0x32d8   :  { %5860 = vmatprep.subr.bf16.mxu0 %v6126_v15 }
0x32db   :  { %5861 = vmatpush3.bf16.msra.mxu0 %v5960_v34 }
0x32dc   :  { %5862 = vmatprep.subr.bf16.mxu0 %v6126_v15 }
0x32df   :  { %5863 = vmatpush3.bf16.msra.mxu0 %v5961_v46 }
0x32e0   :  { %5864 = vmatprep.subr.bf16.mxu0 %v6126_v15 }
0x32e3   :  { %5865 = vmatpush3.bf16.msra.mxu0 %v5962_v4 }
0x32e4   :  { %5866 = vmatprep.subr.bf16.mxu0 %v6126_v15 }
0x32e7   :  { %5867 = vmatpush3.bf16.msra.mxu0 %v5963_v45 }
0x338a   :  { %v5835_v28 = vpop.f32.mrf.mxu0 }
0x338c   :  { %v4278_v14 = vpop.f32.mrf.mxu0 }
0x338d   :  { %v4287_v16 = vpack.c.bf16 %v5835_v28, %v4278_v14 }
0x338f   :  { %5841 = vmatmul.mubr.msk.bf16.vlgmr.msra.gmra.mxu1 %vm63_vm0, %v4287_v16 }
0x3390   :  { %5848 = vmatprep.mubr.msk.bf16.mxu1 %vm6127_vm1, %v6126_v15  ;;  %5845 = vmatpush3.bf16.msra.mxu1 %v5954_v59 }
0x3391   :  { %5846 = vmatprep.subr.bf16.mxu1 %v6126_v15 }
0x3394   :  { %5847 = vmatpush3.bf16.msra.mxu1 %v5955_v31 }
0x344f   :  { %v4350_v26 = vpop.f32.mrf.mxu1 }
0x3450   :  { %v4351_v21 = vadd.f32 %v4939_v25, %v4350_v26 }
0x3451   :  { %v5842_v0 = vpop.f32.mrf.mxu1 }
0x3452   :  { %v7577_v53 = vadd.f32 %v4351_v21, %v7453_v52 }
0x3453   :  { %v4353_v35 = vpop.f32.mrf.mxu1 }
0x3454   :  { %v4354_v41 = vadd.f32 %v4939_v25, %v4353_v35  ;;  %v4359_v55 = vsel %vm63_vm0, %v7577_v53, 0.0  ;;  %v4969_v35 = vld [vmem:[%s7650_s8 + $0x5] ss:$0 sm:$0xff] }
0x3455   :  { %4360 = vadd.xlane.f32.xlu0 %v4359_v55  ;;  %v5843_v36 = vpop.f32.mrf.mxu1 }
0x3456   :  { %v7582_v44 = vadd.f32 %v4354_v41, %v7458_v60 }
0x3458   :  { %v4362_v37 = vsel %vm63_vm0, %v7582_v44, 0.0 }
0x3459   :  { %4363 = vadd.xlane.f32.xlu1 %v4362_v37 }
0x34de   :  { %v4361_v39 = vpop.xlane.xlu0 %4360 }
0x34df   :  { %v4365_v51 = vmul.f32 0.03125, %v4361_v39 }
0x34e1   :  { %v4367_v1 = vsub.f32 %v7577_v53, %v4365_v51 }
0x34e2   :  { %v4364_v52 = vpop.xlane.xlu1 %4363 }
0x34e3   :  { %v4366_v47 = vmul.f32 0.03125, %v4364_v52  ;;  %v4369_v57 = vmul.f32 %v4367_v1, %v4367_v1 }
0x34e5   :  { %v4368_v54 = vsub.f32 %v7582_v44, %v4366_v47  ;;  %v4371_v5 = vsel %vm63_vm0, %v4369_v57, 0.0 }
0x34e6   :  { %4372 = vadd.xlane.f32.xlu0 %v4371_v5 }
0x34e7   :  { %v4370_v58 = vmul.f32 %v4368_v54, %v4368_v54 }
0x34e9   :  { %v4374_v60 = vsel %vm63_vm0, %v4370_v58, 0.0 }
0x34ea   :  { %4375 = vadd.xlane.f32.xlu0 %v4374_v60 }
0x356f   :  { %v4373_v24 = vpop.xlane.xlu0 %4372 }
0x3570   :  { %v4377_v12 = vmul.f32 0.03125, %v4373_v24 }
0x3572   :  { %v4379_v33 = vadd.f32 1e-05, %v4377_v12 }
0x3573   :  { %v4376_v40 = vpop.xlane.xlu0 %4375 }
0x3574   :  { %v4378_v3 = vmul.f32 0.03125, %v4376_v40  ;;  %6076 = vrsqrt.f32 %v4379_v33 }
0x3576   :  { %v4380_v61 = vadd.f32 1e-05, %v4378_v3 }
0x3578   :  { %6078 = vrsqrt.f32 %v4380_v61 }
0x3581   :  { %v6077_v7 = vpop.eup %6076 }
0x3582   :  { %v4383_v17 = vmul.f32 %v6077_v7, %v4367_v1 }
0x3585   :  { %v6079_v63 = vpop.eup %6078 }
0x3586   :  { %v4384_v30 = vmul.f32 %v6079_v63, %v4368_v54 }
0x3588   :  { %v4385_v2 = vpack.c.bf16 %v4384_v30, %v4383_v17 }
0x358a   :  { %5849 = vmatmul.mubr.msk.bf16.vlgmr.msra.gmra.mxu1 %vm63_vm0, %v4385_v2 }
0x364a   :  { %v4448_v9 = vpop.f32.mrf.mxu1 }
0x364b   :  { %v4449_v10 = vadd.f32 %v4948_v6, %v4448_v9 }
0x364c   :  { %v5850_v42 = vpop.f32.mrf.mxu1 }
0x364d   :  { %v4457_v49 = vmul.f32 0.044715, %v4449_v10  ;;  %v4455_v14 = vmul.f32 0.5, %v4449_v10 }
0x364e   :  { %v4451_v8 = vpop.f32.mrf.mxu1 }
0x364f   :  { %v4459_v56 = vmul.f32 %v4457_v49, %v4449_v10  ;;  %v4452_v19 = vadd.f32 %v4948_v6, %v4451_v8 }
0x3650   :  { %v5851_v18 = vpop.f32.mrf.mxu1 }
0x3651   :  { %v4461_v11 = vmul.f32 %v4459_v56, %v4449_v10  ;;  %v4458_v20 = vmul.f32 0.044715, %v4452_v19  ;;  %v4456_v16 = vmul.f32 0.5, %v4452_v19 }
0x3653   :  { %v4463_v23 = vadd.f32 %v4461_v11, %v4449_v10  ;;  %v4460_v27 = vmul.f32 %v4458_v20, %v4452_v19 }
0x3655   :  { %v4465_v29 = vmul.f32 0.7978846, %v4463_v23  ;;  %v4462_v48 = vmul.f32 %v4460_v27, %v4452_v19 }
0x3657   :  { %6080 = vtanh.f32 %v4465_v29  ;;  %v4464_v15 = vadd.f32 %v4462_v48, %v4452_v19 }
0x3659   :  { %v4466_v13 = vmul.f32 0.7978846, %v4464_v15 }
0x365b   :  { %6082 = vtanh.f32 %v4466_v13 }
0x3664   :  { %v6081_v43 = vpop.eup %6080 }
0x3665   :  { %v4469_v50 = vadd.f32 1.0, %v6081_v43 }
0x3667   :  { %v4471_v26 = vmul.f32 %v4469_v50, %v4455_v14 }
0x3668   :  { %v6083_v28 = vpop.eup %6082 }
0x3669   :  { %v4470_v25 = vadd.f32 1.0, %v6083_v28 }
0x366b   :  { %v4472_v21 = vmul.f32 %v4470_v25, %v4456_v16 }
0x366d   :  { %v4473_v0 = vpack.c.bf16 %v4472_v21, %v4471_v26 }
0x366f   :  { %5869 = vmatmul.mubr.bf16.vlgmr.msra.gmra.mxu0 %v4473_v0 }
0x372f   :  { %v4581_v41 = vpop.f32.mrf.mxu0 }
0x3730   :  { %v4582_v55 = vadd.f32 %v4969_v35, %v4581_v41 }
0x3731   :  { %v5870_v36 = vpop.f32.mrf.mxu0 }
0x3732   :  { %v4588_v37 = vadd.f32 %v4582_v55, %v7577_v53 }
0x3733   :  { %v4584_v39 = vpop.f32.mrf.mxu0 }
0x3734   :  { %4590 = vst.msk [vmem:[#allocation2] sm:$0xff] %vm63_vm0, %v4588_v37  ;;  %v4585_v51 = vadd.f32 %v4969_v35, %v4584_v39 }
0x3735   :  { %v5871_v1 = vpop.f32.mrf.mxu0 }
0x3736   :  { %v4589_v52 = vadd.f32 %v4585_v51, %v7582_v44 }
0x3738   :  { %4591 = vst.msk [vmem:[#allocation2 + $0x8] sm:$0xff] %vm63_vm0, %v4589_v52 }
0x3739   :  { %6115 = shalt.err (!%p6112_p4)
}
0x373a   :  { %s6132_s8 = smov 128   ;;  %s6133_s30 = smov 8  }
0x373b   :  { %4603 = dma.vmem_to_hbm [thread:$0]  %s4598_s18, 256, %s7654_s12, [#allocation3], %s6132_s8, %s6132_s8, %s6133_s30  }
0x373c   :  { %6124 = dma.done.wait [#allocation3], 256  }
0x373d   :  { %6125 = vsyncadd [#allocation3], 4294967040 }
0x373e   :  { %4607 = vsyncpa [#allocation3], 1 }

</bundles_post_ra>
